<compile_context>
chip_gen: v7x
topology: tpu7x:2x2x1
jax: 0.10.0
libtpu: 0.0.40
codegen_flags: <defaults>
</compile_context>

<pallas_src>
import jax
import jax.numpy as jnp
import numpy as np
from jax import lax
from jax.experimental import pallas as pl
from jax.experimental.pallas import tpu as pltpu


def _cnn_fused_kernel(x_ref, w1_ref, b1_ref, w2_ref, b2_ref,
                      wf1_ref, bf1_ref, wf2_ref, bf2_ref, o_ref):
    """Full CNN forward for NB images, resident in VMEM.

    x_ref   : (NB, 14, 56)    f32   input, [n, t, i*28 + w] with image row h = 2t+i
    w1_ref  : (4, 120, 448)   bf16  conv1 pool-quadrant weights [q, (halo_row,w_in), (j,c)]
    b1_ref  : (1, 448)        f32   conv1 bias tiled over 14 pooled cols
    w2_ref  : (2, 1536, 448)  bf16  conv2 even/odd-column weights [(dh,w_in,cin), (j,cout)]
    b2_ref  : (1, 448)        f32   conv2 bias tiled over 7 pooled cols
    wf1_ref : (7, 448, 128)   bf16  fc1 weights, NCHW flatten folded in, split by pooled row
    bf1_ref : (1, 128)        f32
    wf2_ref : (128, 10)       bf16
    bf2_ref : (1, 10)         f32
    o_ref   : (1, NB, 10)     f32
    """
    f32, bf16 = jnp.float32, jnp.bfloat16
    nb = x_ref.shape[0]

    # ---- conv1 + fused 2x2 max-pool: 4 MXU dots, one per pool quadrant -------
    x = x_ref[...]                               # (nb, 14, 56)
    xe = x[:, :, 0:28]                           # image rows 2t
    xo = x[:, :, 28:56]                          # image rows 2t+1
    zr = jnp.zeros((nb, 1, 28), f32)
    halo_rows = (
        jnp.concatenate([zr, xo[:, 0:13, :]], axis=1),   # image row 2t-1 (zero pad)
        xe,                                              # image row 2t
        xo,                                              # image row 2t+1
        jnp.concatenate([xe[:, 1:14, :], zr], axis=1),   # image row 2t+2 (zero pad)
    )
    zc = jnp.zeros((nb, 14, 1), f32)
    lhs1 = jnp.concatenate(
        [jnp.concatenate([zc, r, zc], axis=2) for r in halo_rows], axis=2)  # (nb,14,120)
    lhs1 = lhs1.reshape(nb * 14, 120).astype(bf16)

    m = jnp.dot(lhs1, w1_ref[0], preferred_element_type=f32)               # (nb*14, 448)
    for q in range(1, 4):
        m = jnp.maximum(m, jnp.dot(lhs1, w1_ref[q], preferred_element_type=f32))
    # bias/ReLU commute with the max over the pool window (bias constant per channel).
    p1 = jnp.maximum(m + b1_ref[...], 0.0)       # pooled conv1: rows n*14+t, lanes j*32+c

    # ---- conv2 + fused 2x2 max-pool ------------------------------------------
    p1 = p1.reshape(nb, 14, 448)
    z32 = jnp.zeros((nb, 14, 32), f32)
    pw = jnp.concatenate([z32, p1, z32], axis=2)                 # (nb,14,512) padded width
    zrw = jnp.zeros((nb, 1, 512), f32)
    lhs2 = jnp.concatenate(
        [jnp.concatenate([zrw, pw[:, 0:13, :]], axis=1),         # padded row h
         pw,                                                     # padded row h+1
         jnp.concatenate([pw[:, 1:14, :], zrw], axis=1)],        # padded row h+2
        axis=2)                                                  # (nb,14,1536)
    lhs2 = lhs2.reshape(nb * 14, 1536).astype(bf16)

    a_even = jnp.dot(lhs2, w2_ref[0], preferred_element_type=f32)   # output cols 2j
    a_odd = jnp.dot(lhs2, w2_ref[1], preferred_element_type=f32)    # output cols 2j+1
    wmax = jnp.maximum(a_even, a_odd)                            # (nb*14,448) lanes j*64+c
    wmax = wmax.reshape(nb * 7, 2, 448)
    hmax = jnp.maximum(wmax[:, 0, :], wmax[:, 1, :])             # (nb*7, 448)
    p2 = jnp.maximum(hmax + b2_ref[...], 0.0)                    # pooled conv2

    # ---- flatten + fc1 + ReLU + fc2 -------------------------------------------
    # TODO(synk): training-mode dropout(p=0.25) not implemented (inference identity).
    p2 = p2.reshape(nb, 7, 448).astype(bf16)     # per pooled row h2; NCHW perm is in wf1
    acc = jnp.zeros((nb, 128), f32)
    for h2 in range(7):
        acc = acc + jnp.dot(p2[:, h2, :], wf1_ref[h2], preferred_element_type=f32)
    h1 = jnp.maximum(acc + bf1_ref[...], 0.0).astype(bf16)
    logits = jnp.dot(h1, wf2_ref[...], preferred_element_type=f32) + bf2_ref[...]
    o_ref[0] = logits.astype(o_ref.dtype)


def cnn_forward(kparams, x_nchw, nb=None):
    n = x_nchw.shape[0]
    if nb is None:
        nb = min(32, n)                          # images / grid step (VMEM-safe on v7x)
        if n >= 2 and pl.cdiv(n, nb) < 2:
            nb = pl.cdiv(n, 2)                   # keep >=2 steps so both v7x TCs get work
    g = pl.cdiv(n, nb)
    n_pad = g * nb

    # Cin == 1, so NCHW (N,1,28,28) -> (N,14,56) is a free reshape (row pairs folded).
    x = x_nchw.astype(jnp.float32).reshape(n, 14, 56)
    if n_pad != n:
        x = jnp.pad(x, ((0, n_pad - n), (0, 0), (0, 0)))

    out = pl.pallas_call(
        _cnn_fused_kernel,
        out_shape=jax.ShapeDtypeStruct((g, nb, 10), jnp.float32),
        grid=(g,),
        in_specs=[
            pl.BlockSpec((nb, 14, 56), lambda i: (i, 0, 0)),
            pl.BlockSpec((4, 120, 448), lambda i: (0, 0, 0)),
            pl.BlockSpec((1, 448), lambda i: (0, 0)),
            pl.BlockSpec((2, 1536, 448), lambda i: (0, 0, 0)),
            pl.BlockSpec((1, 448), lambda i: (0, 0)),
            pl.BlockSpec((7, 448, 128), lambda i: (0, 0, 0)),
            pl.BlockSpec((1, 128), lambda i: (0, 0)),
            pl.BlockSpec((128, 10), lambda i: (0, 0)),
            pl.BlockSpec((1, 10), lambda i: (0, 0)),
        ],
        out_specs=pl.BlockSpec((1, nb, 10), lambda i: (i, 0, 0)),
        compiler_params=pltpu.CompilerParams(
            dimension_semantics=("parallel",),
            vmem_limit_bytes=50 * 1024 * 1024),
    )(x, kparams["w1q"], kparams["b1t"], kparams["w2q"], kparams["b2t"],
      kparams["wf1"], kparams["bf1"], kparams["wf2"], kparams["bf2"])
    return out.reshape(n_pad, 10)[:n]


def init_torch_params(key):
    """Deterministic synthetic parameters in the torch layouts."""
    ks = jax.random.split(key, 8)
    return {
        "conv1_w": jax.random.normal(ks[0], (32, 1, 3, 3), jnp.float32) * 0.1,    # OIHW
        "conv1_b": jax.random.normal(ks[1], (32,), jnp.float32) * 0.1,
        "conv2_w": jax.random.normal(ks[2], (64, 32, 3, 3), jnp.float32) * 0.05,  # OIHW
        "conv2_b": jax.random.normal(ks[3], (64,), jnp.float32) * 0.05,
        "fc1_w": jax.random.normal(ks[4], (128, 64 * 7 * 7), jnp.float32) * 0.02,
        "fc1_b": jax.random.normal(ks[5], (128,), jnp.float32) * 0.02,
        "fc2_w": jax.random.normal(ks[6], (10, 128), jnp.float32) * 0.05,
        "fc2_b": jax.random.normal(ks[7], (10,), jnp.float32) * 0.05,
    }


def make_kernel_params(tp):
    """Convert torch-layout params into the lane-dense matrices the kernel consumes."""
    k1 = np.asarray(tp["conv1_w"]).transpose(2, 3, 1, 0).reshape(3, 3, 32)  # [dh,dw,c]
    k2 = np.asarray(tp["conv2_w"]).transpose(2, 3, 1, 0)                    # [dh,dw,cin,cout]

    # conv1: 4 pool-quadrant matrices. K = (4 halo rows)x(30 padded cols),
    # N = (14 pooled cols)x(32 channels). Quadrant (i,p) = (row parity, col parity).
    w1q = np.zeros((2, 2, 4, 30, 14, 32), np.float32)
    for i in range(2):
        for p in range(2):
            for dh in range(3):
                for dw in range(3):
                    for j in range(14):
                        w1q[i, p, i + dh, 2 * j + p + dw, j, :] = k1[dh, dw]
    w1q = w1q.reshape(4, 120, 448)

    # conv2: even/odd output-column matrices. K = (3 rows)x(16 padded cols)x(32 cin),
    # N = (7 pooled cols)x(64 cout).
    w2q = np.zeros((2, 3, 16, 32, 7, 64), np.float32)
    for p in range(2):
        for dh in range(3):
            for dw in range(3):
                for j in range(7):
                    w2q[p, dh, 2 * j + p + dw, :, j, :] = k2[dh, dw]
    w2q = w2q.reshape(2, 1536, 448)

    # fc1: fold torch's NCHW view(-1, 3136) into the weight and split by pooled row
    # h2 so the kernel consumes its (nb, 7, 448) NHWC activations directly.
    wf1 = np.asarray(tp["fc1_w"]).reshape(128, 64, 7, 7).transpose(2, 3, 1, 0)
    wf1 = wf1.reshape(7, 448, 128)

    return {
        "w1q": jnp.asarray(w1q, jnp.bfloat16),
        "b1t": jnp.asarray(np.tile(np.asarray(tp["conv1_b"]), 14)[None, :], jnp.float32),
        "w2q": jnp.asarray(w2q, jnp.bfloat16),
        "b2t": jnp.asarray(np.tile(np.asarray(tp["conv2_b"]), 7)[None, :], jnp.float32),
        "wf1": jnp.asarray(wf1, jnp.bfloat16),
        "bf1": jnp.asarray(tp["fc1_b"], jnp.float32)[None, :],
        "wf2": jnp.asarray(np.asarray(tp["fc2_w"]).T, jnp.bfloat16),
        "bf2": jnp.asarray(tp["fc2_b"], jnp.float32)[None, :],
    }


def cnn_reference(tp, x):
    """Pure-JAX f32 reference matching the PyTorch forward (eval mode)."""
    prec = lax.Precision.HIGHEST
    y = lax.conv_general_dilated(x, tp["conv1_w"], (1, 1), "SAME",
                                 dimension_numbers=("NCHW", "OIHW", "NCHW"),
                                 precision=prec)
    y = jax.nn.relu(y + tp["conv1_b"][None, :, None, None])
    y = lax.reduce_window(y, -jnp.inf, lax.max, (1, 1, 2, 2), (1, 1, 2, 2), "VALID")
    y = lax.conv_general_dilated(y, tp["conv2_w"], (1, 1), "SAME",
                                 dimension_numbers=("NCHW", "OIHW", "NCHW"),
                                 precision=prec)
    y = jax.nn.relu(y + tp["conv2_b"][None, :, None, None])
    y = lax.reduce_window(y, -jnp.inf, lax.max, (1, 1, 2, 2), (1, 1, 2, 2), "VALID")
    y = y.reshape(y.shape[0], -1)
    y = jax.nn.relu(y @ tp["fc1_w"].T + tp["fc1_b"])
    return y @ tp["fc2_w"].T + tp["fc2_b"]


if __name__ == "__main__":
    key = jax.random.PRNGKey(0)
    pkey, xkey = jax.random.split(key)
    torch_params = init_torch_params(pkey)
    kparams = make_kernel_params(torch_params)
    x = jax.random.normal(xkey, (2, 1, 28, 28), jnp.float32)   # batch=2, MNIST-sized

    out = jax.block_until_ready(cnn_forward(kparams, x))
    assert out.shape == (2, 10) and out.dtype == jnp.float32

    ref = jax.block_until_ready(cnn_reference(torch_params, x))
    max_err = float(np.max(np.abs(np.asarray(out) - np.asarray(ref))))
    assert max_err < 2e-2, f"kernel vs reference max abs err {max_err}"
    print("KERNEL_OK")
</pallas_src>

<mosaic_0001>
module attributes {stable_mosaic.version = 11 : i64} {
  func.func @_cnn_fused_kernel(%arg0: i32, %arg1: memref<1x14x56xf32, #tpu.memory_space<vmem>>, %arg2: memref<4x120x448xbf16, #tpu.memory_space<vmem>>, %arg3: memref<1x448xf32, #tpu.memory_space<vmem>>, %arg4: memref<2x1536x448xbf16, #tpu.memory_space<vmem>>, %arg5: memref<1x448xf32, #tpu.memory_space<vmem>>, %arg6: memref<7x448x128xbf16, #tpu.memory_space<vmem>>, %arg7: memref<1x128xf32, #tpu.memory_space<vmem>>, %arg8: memref<128x10xbf16, #tpu.memory_space<vmem>>, %arg9: memref<1x10xf32, #tpu.memory_space<vmem>>, %arg10: memref<1x1x10xf32, #tpu.memory_space<vmem>>) attributes {dimension_semantics = [#tpu.dimension_semantics<parallel>], iteration_bounds = array<i64: 2>, scalar_prefetch = 0 : i64, scratch_operands = 0 : i64, tpu.core_type = #tpu.core_type<tc>, window_params = [{transform_indices = @transform_0, window_bounds = array<i64: 1, 14, 56>}, {pipeline_mode = #tpu.pipeline_mode<synchronous>, transform_indices = @transform_1, window_bounds = array<i64: 4, 120, 448>}, {pipeline_mode = #tpu.pipeline_mode<synchronous>, transform_indices = @transform_2, window_bounds = array<i64: 1, 448>}, {pipeline_mode = #tpu.pipeline_mode<synchronous>, transform_indices = @transform_3, window_bounds = array<i64: 2, 1536, 448>}, {pipeline_mode = #tpu.pipeline_mode<synchronous>, transform_indices = @transform_4, window_bounds = array<i64: 1, 448>}, {pipeline_mode = #tpu.pipeline_mode<synchronous>, transform_indices = @transform_5, window_bounds = array<i64: 7, 448, 128>}, {pipeline_mode = #tpu.pipeline_mode<synchronous>, transform_indices = @transform_6, window_bounds = array<i64: 1, 128>}, {pipeline_mode = #tpu.pipeline_mode<synchronous>, transform_indices = @transform_7, window_bounds = array<i64: 128, 10>}, {pipeline_mode = #tpu.pipeline_mode<synchronous>, transform_indices = @transform_8, window_bounds = array<i64: 1, 10>}, {transform_indices = @transform_9, window_bounds = array<i64: 1, 1, 10>}]} {
    %c0 = arith.constant 0 : index
    %c0_0 = arith.constant 0 : index
    %c0_1 = arith.constant 0 : index
    %0 = vector.load %arg1[%c0, %c0_0, %c0_1] : memref<1x14x56xf32, #tpu.memory_space<vmem>>, vector<1x14x56xf32>
    %1 = vector.extract_strided_slice %0 {offsets = [0, 0, 0], sizes = [1, 14, 28], strides = [1, 1, 1]} : vector<1x14x56xf32> to vector<1x14x28xf32>
    %2 = vector.extract_strided_slice %0 {offsets = [0, 0, 28], sizes = [1, 14, 28], strides = [1, 1, 1]} : vector<1x14x56xf32> to vector<1x14x28xf32>
    %cst = arith.constant 0.000000e+00 : f32
    %3 = vector.broadcast %cst : f32 to vector<1x1x28xf32>
    %4 = vector.extract_strided_slice %2 {offsets = [0, 0, 0], sizes = [1, 13, 28], strides = [1, 1, 1]} : vector<1x14x28xf32> to vector<1x13x28xf32>
    %5 = tpu.concatenate %3, %4 in 1 : vector<1x1x28xf32>, vector<1x13x28xf32> -> vector<1x14x28xf32>
    %6 = vector.extract_strided_slice %1 {offsets = [0, 1, 0], sizes = [1, 13, 28], strides = [1, 1, 1]} : vector<1x14x28xf32> to vector<1x13x28xf32>
    %7 = tpu.concatenate %6, %3 in 1 : vector<1x13x28xf32>, vector<1x1x28xf32> -> vector<1x14x28xf32>
    %cst_2 = arith.constant 0.000000e+00 : f32
    %8 = vector.broadcast %cst_2 : f32 to vector<1x14x1xf32>
    %9 = tpu.concatenate %8, %5, %8 in 2 : vector<1x14x1xf32>, vector<1x14x28xf32>, vector<1x14x1xf32> -> vector<1x14x30xf32>
    %10 = tpu.concatenate %8, %1, %8 in 2 : vector<1x14x1xf32>, vector<1x14x28xf32>, vector<1x14x1xf32> -> vector<1x14x30xf32>
    %11 = tpu.concatenate %8, %2, %8 in 2 : vector<1x14x1xf32>, vector<1x14x28xf32>, vector<1x14x1xf32> -> vector<1x14x30xf32>
    %12 = tpu.concatenate %8, %7, %8 in 2 : vector<1x14x1xf32>, vector<1x14x28xf32>, vector<1x14x1xf32> -> vector<1x14x30xf32>
    %13 = tpu.concatenate %9, %10, %11, %12 in 2 : vector<1x14x30xf32>, vector<1x14x30xf32>, vector<1x14x30xf32>, vector<1x14x30xf32> -> vector<1x14x120xf32>
    %14 = vector.shape_cast %13 : vector<1x14x120xf32> to vector<14x120xf32>
    %15 = arith.truncf %14 : vector<14x120xf32> to vector<14x120xbf16>
    %c0_3 = arith.constant 0 : index
    %c0_4 = arith.constant 0 : index
    %c0_5 = arith.constant 0 : index
    %16 = vector.load %arg2[%c0_3, %c0_4, %c0_5] : memref<4x120x448xbf16, #tpu.memory_space<vmem>>, vector<1x120x448xbf16>
    %17 = vector.shape_cast %16 : vector<1x120x448xbf16> to vector<120x448xbf16>
    %cst_6 = arith.constant dense<0.000000e+00> : vector<14x448xf32>
    %18 = tpu.matmul %15, %17, %cst_6 {dimension_numbers = #tpu.dot_dimension_numbers<[1], [0], [0], [1], [0, 0, 1, 1], [], []>} : vector<14x120xbf16>, vector<120x448xbf16>, vector<14x448xf32> -> vector<14x448xf32>
    %c1 = arith.constant 1 : index
    %c0_7 = arith.constant 0 : index
    %c0_8 = arith.constant 0 : index
    %19 = vector.load %arg2[%c1, %c0_7, %c0_8] : memref<4x120x448xbf16, #tpu.memory_space<vmem>>, vector<1x120x448xbf16>
    %20 = vector.shape_cast %19 : vector<1x120x448xbf16> to vector<120x448xbf16>
    %cst_9 = arith.constant dense<0.000000e+00> : vector<14x448xf32>
    %21 = tpu.matmul %15, %20, %cst_9 {dimension_numbers = #tpu.dot_dimension_numbers<[1], [0], [0], [1], [0, 0, 1, 1], [], []>} : vector<14x120xbf16>, vector<120x448xbf16>, vector<14x448xf32> -> vector<14x448xf32>
    %22 = arith.maximumf %18, %21 : vector<14x448xf32>
    %c2 = arith.constant 2 : index
    %c0_10 = arith.constant 0 : index
    %c0_11 = arith.constant 0 : index
    %23 = vector.load %arg2[%c2, %c0_10, %c0_11] : memref<4x120x448xbf16, #tpu.memory_space<vmem>>, vector<1x120x448xbf16>
    %24 = vector.shape_cast %23 : vector<1x120x448xbf16> to vector<120x448xbf16>
    %cst_12 = arith.constant dense<0.000000e+00> : vector<14x448xf32>
    %25 = tpu.matmul %15, %24, %cst_12 {dimension_numbers = #tpu.dot_dimension_numbers<[1], [0], [0], [1], [0, 0, 1, 1], [], []>} : vector<14x120xbf16>, vector<120x448xbf16>, vector<14x448xf32> -> vector<14x448xf32>
    %26 = arith.maximumf %22, %25 : vector<14x448xf32>
    %c3 = arith.constant 3 : index
    %c0_13 = arith.constant 0 : index
    %c0_14 = arith.constant 0 : index
    %27 = vector.load %arg2[%c3, %c0_13, %c0_14] : memref<4x120x448xbf16, #tpu.memory_space<vmem>>, vector<1x120x448xbf16>
    %28 = vector.shape_cast %27 : vector<1x120x448xbf16> to vector<120x448xbf16>
    %cst_15 = arith.constant dense<0.000000e+00> : vector<14x448xf32>
    %29 = tpu.matmul %15, %28, %cst_15 {dimension_numbers = #tpu.dot_dimension_numbers<[1], [0], [0], [1], [0, 0, 1, 1], [], []>} : vector<14x120xbf16>, vector<120x448xbf16>, vector<14x448xf32> -> vector<14x448xf32>
    %30 = arith.maximumf %26, %29 : vector<14x448xf32>
    %c0_16 = arith.constant 0 : index
    %c0_17 = arith.constant 0 : index
    %31 = vector.load %arg3[%c0_16, %c0_17] : memref<1x448xf32, #tpu.memory_space<vmem>>, vector<1x448xf32>
    %32 = vector.broadcast %31 : vector<1x448xf32> to vector<14x448xf32>
    %33 = arith.addf %30, %32 : vector<14x448xf32>
    %cst_18 = arith.constant 0.000000e+00 : f32
    %34 = vector.broadcast %cst_18 : f32 to vector<14x448xf32>
    %35 = arith.maximumf %33, %34 : vector<14x448xf32>
    %36 = vector.shape_cast %35 : vector<14x448xf32> to vector<1x14x448xf32>
    %cst_19 = arith.constant 0.000000e+00 : f32
    %37 = vector.broadcast %cst_19 : f32 to vector<1x14x32xf32>
    %38 = tpu.concatenate %37, %36, %37 in 2 : vector<1x14x32xf32>, vector<1x14x448xf32>, vector<1x14x32xf32> -> vector<1x14x512xf32>
    %cst_20 = arith.constant 0.000000e+00 : f32
    %39 = vector.broadcast %cst_20 : f32 to vector<1x1x512xf32>
    %40 = vector.extract_strided_slice %38 {offsets = [0, 0, 0], sizes = [1, 13, 512], strides = [1, 1, 1]} : vector<1x14x512xf32> to vector<1x13x512xf32>
    %41 = tpu.concatenate %39, %40 in 1 : vector<1x1x512xf32>, vector<1x13x512xf32> -> vector<1x14x512xf32>
    %42 = vector.extract_strided_slice %38 {offsets = [0, 1, 0], sizes = [1, 13, 512], strides = [1, 1, 1]} : vector<1x14x512xf32> to vector<1x13x512xf32>
    %43 = tpu.concatenate %42, %39 in 1 : vector<1x13x512xf32>, vector<1x1x512xf32> -> vector<1x14x512xf32>
    %44 = tpu.concatenate %41, %38, %43 in 2 : vector<1x14x512xf32>, vector<1x14x512xf32>, vector<1x14x512xf32> -> vector<1x14x1536xf32>
    %45 = vector.shape_cast %44 : vector<1x14x1536xf32> to vector<14x1536xf32>
    %46 = arith.truncf %45 : vector<14x1536xf32> to vector<14x1536xbf16>
    %c0_21 = arith.constant 0 : index
    %c0_22 = arith.constant 0 : index
    %c0_23 = arith.constant 0 : index
    %47 = vector.load %arg4[%c0_21, %c0_22, %c0_23] : memref<2x1536x448xbf16, #tpu.memory_space<vmem>>, vector<1x1536x448xbf16>
    %48 = vector.shape_cast %47 : vector<1x1536x448xbf16> to vector<1536x448xbf16>
    %cst_24 = arith.constant dense<0.000000e+00> : vector<14x448xf32>
    %49 = tpu.matmul %46, %48, %cst_24 {dimension_numbers = #tpu.dot_dimension_numbers<[1], [0], [0], [1], [0, 0, 1, 1], [], []>} : vector<14x1536xbf16>, vector<1536x448xbf16>, vector<14x448xf32> -> vector<14x448xf32>
    %c1_25 = arith.constant 1 : index
    %c0_26 = arith.constant 0 : index
    %c0_27 = arith.constant 0 : index
    %50 = vector.load %arg4[%c1_25, %c0_26, %c0_27] : memref<2x1536x448xbf16, #tpu.memory_space<vmem>>, vector<1x1536x448xbf16>
    %51 = vector.shape_cast %50 : vector<1x1536x448xbf16> to vector<1536x448xbf16>
    %cst_28 = arith.constant dense<0.000000e+00> : vector<14x448xf32>
    %52 = tpu.matmul %46, %51, %cst_28 {dimension_numbers = #tpu.dot_dimension_numbers<[1], [0], [0], [1], [0, 0, 1, 1], [], []>} : vector<14x1536xbf16>, vector<1536x448xbf16>, vector<14x448xf32> -> vector<14x448xf32>
    %53 = arith.maximumf %49, %52 : vector<14x448xf32>
    %54 = vector.shape_cast %53 : vector<14x448xf32> to vector<7x2x448xf32>
    %55 = vector.extract_strided_slice %54 {offsets = [0, 0, 0], sizes = [7, 1, 448], strides = [1, 1, 1]} : vector<7x2x448xf32> to vector<7x1x448xf32>
    %56 = vector.shape_cast %55 : vector<7x1x448xf32> to vector<7x448xf32>
    %57 = vector.extract_strided_slice %54 {offsets = [0, 1, 0], sizes = [7, 1, 448], strides = [1, 1, 1]} : vector<7x2x448xf32> to vector<7x1x448xf32>
    %58 = vector.shape_cast %57 : vector<7x1x448xf32> to vector<7x448xf32>
    %59 = arith.maximumf %56, %58 : vector<7x448xf32>
    %c0_29 = arith.constant 0 : index
    %c0_30 = arith.constant 0 : index
    %60 = vector.load %arg5[%c0_29, %c0_30] : memref<1x448xf32, #tpu.memory_space<vmem>>, vector<1x448xf32>
    %61 = vector.broadcast %60 : vector<1x448xf32> to vector<7x448xf32>
    %62 = arith.addf %59, %61 : vector<7x448xf32>
    %cst_31 = arith.constant 0.000000e+00 : f32
    %63 = vector.broadcast %cst_31 : f32 to vector<7x448xf32>
    %64 = arith.maximumf %62, %63 : vector<7x448xf32>
    %65 = vector.shape_cast %64 : vector<7x448xf32> to vector<1x7x448xf32>
    %66 = arith.truncf %65 : vector<1x7x448xf32> to vector<1x7x448xbf16>
    %cst_32 = arith.constant 0.000000e+00 : f32
    %67 = vector.broadcast %cst_32 : f32 to vector<1x128xf32>
    %68 = vector.extract_strided_slice %66 {offsets = [0, 0, 0], sizes = [1, 1, 448], strides = [1, 1, 1]} : vector<1x7x448xbf16> to vector<1x1x448xbf16>
    %69 = vector.shape_cast %68 : vector<1x1x448xbf16> to vector<1x448xbf16>
    %c0_33 = arith.constant 0 : index
    %c0_34 = arith.constant 0 : index
    %c0_35 = arith.constant 0 : index
    %70 = vector.load %arg6[%c0_33, %c0_34, %c0_35] : memref<7x448x128xbf16, #tpu.memory_space<vmem>>, vector<1x448x128xbf16>
    %71 = vector.shape_cast %70 : vector<1x448x128xbf16> to vector<448x128xbf16>
    %cst_36 = arith.constant dense<0.000000e+00> : vector<1x128xf32>
    %72 = tpu.matmul %69, %71, %cst_36 {dimension_numbers = #tpu.dot_dimension_numbers<[1], [0], [0], [1], [0, 0, 1, 1], [], []>} : vector<1x448xbf16>, vector<448x128xbf16>, vector<1x128xf32> -> vector<1x128xf32>
    %73 = arith.addf %67, %72 : vector<1x128xf32>
    %74 = vector.extract_strided_slice %66 {offsets = [0, 1, 0], sizes = [1, 1, 448], strides = [1, 1, 1]} : vector<1x7x448xbf16> to vector<1x1x448xbf16>
    %75 = vector.shape_cast %74 : vector<1x1x448xbf16> to vector<1x448xbf16>
    %c1_37 = arith.constant 1 : index
    %c0_38 = arith.constant 0 : index
    %c0_39 = arith.constant 0 : index
    %76 = vector.load %arg6[%c1_37, %c0_38, %c0_39] : memref<7x448x128xbf16, #tpu.memory_space<vmem>>, vector<1x448x128xbf16>
    %77 = vector.shape_cast %76 : vector<1x448x128xbf16> to vector<448x128xbf16>
    %cst_40 = arith.constant dense<0.000000e+00> : vector<1x128xf32>
    %78 = tpu.matmul %75, %77, %cst_40 {dimension_numbers = #tpu.dot_dimension_numbers<[1], [0], [0], [1], [0, 0, 1, 1], [], []>} : vector<1x448xbf16>, vector<448x128xbf16>, vector<1x128xf32> -> vector<1x128xf32>
    %79 = arith.addf %73, %78 : vector<1x128xf32>
    %80 = vector.extract_strided_slice %66 {offsets = [0, 2, 0], sizes = [1, 1, 448], strides = [1, 1, 1]} : vector<1x7x448xbf16> to vector<1x1x448xbf16>
    %81 = vector.shape_cast %80 : vector<1x1x448xbf16> to vector<1x448xbf16>
    %c2_41 = arith.constant 2 : index
    %c0_42 = arith.constant 0 : index
    %c0_43 = arith.constant 0 : index
    %82 = vector.load %arg6[%c2_41, %c0_42, %c0_43] : memref<7x448x128xbf16, #tpu.memory_space<vmem>>, vector<1x448x128xbf16>
    %83 = vector.shape_cast %82 : vector<1x448x128xbf16> to vector<448x128xbf16>
    %cst_44 = arith.constant dense<0.000000e+00> : vector<1x128xf32>
    %84 = tpu.matmul %81, %83, %cst_44 {dimension_numbers = #tpu.dot_dimension_numbers<[1], [0], [0], [1], [0, 0, 1, 1], [], []>} : vector<1x448xbf16>, vector<448x128xbf16>, vector<1x128xf32> -> vector<1x128xf32>
    %85 = arith.addf %79, %84 : vector<1x128xf32>
    %86 = vector.extract_strided_slice %66 {offsets = [0, 3, 0], sizes = [1, 1, 448], strides = [1, 1, 1]} : vector<1x7x448xbf16> to vector<1x1x448xbf16>
    %87 = vector.shape_cast %86 : vector<1x1x448xbf16> to vector<1x448xbf16>
    %c3_45 = arith.constant 3 : index
    %c0_46 = arith.constant 0 : index
    %c0_47 = arith.constant 0 : index
    %88 = vector.load %arg6[%c3_45, %c0_46, %c0_47] : memref<7x448x128xbf16, #tpu.memory_space<vmem>>, vector<1x448x128xbf16>
    %89 = vector.shape_cast %88 : vector<1x448x128xbf16> to vector<448x128xbf16>
    %cst_48 = arith.constant dense<0.000000e+00> : vector<1x128xf32>
    %90 = tpu.matmul %87, %89, %cst_48 {dimension_numbers = #tpu.dot_dimension_numbers<[1], [0], [0], [1], [0, 0, 1, 1], [], []>} : vector<1x448xbf16>, vector<448x128xbf16>, vector<1x128xf32> -> vector<1x128xf32>
    %91 = arith.addf %85, %90 : vector<1x128xf32>
    %92 = vector.extract_strided_slice %66 {offsets = [0, 4, 0], sizes = [1, 1, 448], strides = [1, 1, 1]} : vector<1x7x448xbf16> to vector<1x1x448xbf16>
    %93 = vector.shape_cast %92 : vector<1x1x448xbf16> to vector<1x448xbf16>
    %c4 = arith.constant 4 : index
    %c0_49 = arith.constant 0 : index
    %c0_50 = arith.constant 0 : index
    %94 = vector.load %arg6[%c4, %c0_49, %c0_50] : memref<7x448x128xbf16, #tpu.memory_space<vmem>>, vector<1x448x128xbf16>
    %95 = vector.shape_cast %94 : vector<1x448x128xbf16> to vector<448x128xbf16>
    %cst_51 = arith.constant dense<0.000000e+00> : vector<1x128xf32>
    %96 = tpu.matmul %93, %95, %cst_51 {dimension_numbers = #tpu.dot_dimension_numbers<[1], [0], [0], [1], [0, 0, 1, 1], [], []>} : vector<1x448xbf16>, vector<448x128xbf16>, vector<1x128xf32> -> vector<1x128xf32>
    %97 = arith.addf %91, %96 : vector<1x128xf32>
    %98 = vector.extract_strided_slice %66 {offsets = [0, 5, 0], sizes = [1, 1, 448], strides = [1, 1, 1]} : vector<1x7x448xbf16> to vector<1x1x448xbf16>
    %99 = vector.shape_cast %98 : vector<1x1x448xbf16> to vector<1x448xbf16>
    %c5 = arith.constant 5 : index
    %c0_52 = arith.constant 0 : index
    %c0_53 = arith.constant 0 : index
    %100 = vector.load %arg6[%c5, %c0_52, %c0_53] : memref<7x448x128xbf16, #tpu.memory_space<vmem>>, vector<1x448x128xbf16>
    %101 = vector.shape_cast %100 : vector<1x448x128xbf16> to vector<448x128xbf16>
    %cst_54 = arith.constant dense<0.000000e+00> : vector<1x128xf32>
    %102 = tpu.matmul %99, %101, %cst_54 {dimension_numbers = #tpu.dot_dimension_numbers<[1], [0], [0], [1], [0, 0, 1, 1], [], []>} : vector<1x448xbf16>, vector<448x128xbf16>, vector<1x128xf32> -> vector<1x128xf32>
    %103 = arith.addf %97, %102 : vector<1x128xf32>
    %104 = vector.extract_strided_slice %66 {offsets = [0, 6, 0], sizes = [1, 1, 448], strides = [1, 1, 1]} : vector<1x7x448xbf16> to vector<1x1x448xbf16>
    %105 = vector.shape_cast %104 : vector<1x1x448xbf16> to vector<1x448xbf16>
    %c6 = arith.constant 6 : index
    %c0_55 = arith.constant 0 : index
    %c0_56 = arith.constant 0 : index
    %106 = vector.load %arg6[%c6, %c0_55, %c0_56] : memref<7x448x128xbf16, #tpu.memory_space<vmem>>, vector<1x448x128xbf16>
    %107 = vector.shape_cast %106 : vector<1x448x128xbf16> to vector<448x128xbf16>
    %cst_57 = arith.constant dense<0.000000e+00> : vector<1x128xf32>
    %108 = tpu.matmul %105, %107, %cst_57 {dimension_numbers = #tpu.dot_dimension_numbers<[1], [0], [0], [1], [0, 0, 1, 1], [], []>} : vector<1x448xbf16>, vector<448x128xbf16>, vector<1x128xf32> -> vector<1x128xf32>
    %109 = arith.addf %103, %108 : vector<1x128xf32>
    %c0_58 = arith.constant 0 : index
    %c0_59 = arith.constant 0 : index
    %110 = vector.load %arg7[%c0_58, %c0_59] : memref<1x128xf32, #tpu.memory_space<vmem>>, vector<1x128xf32>
    %111 = arith.addf %109, %110 : vector<1x128xf32>
    %cst_60 = arith.constant 0.000000e+00 : f32
    %112 = vector.broadcast %cst_60 : f32 to vector<1x128xf32>
    %113 = arith.maximumf %111, %112 : vector<1x128xf32>
    %114 = arith.truncf %113 : vector<1x128xf32> to vector<1x128xbf16>
    %c0_61 = arith.constant 0 : index
    %c0_62 = arith.constant 0 : index
    %115 = vector.load %arg8[%c0_61, %c0_62] : memref<128x10xbf16, #tpu.memory_space<vmem>>, vector<128x10xbf16>
    %cst_63 = arith.constant dense<0.000000e+00> : vector<1x10xf32>
    %116 = tpu.matmul %114, %115, %cst_63 {dimension_numbers = #tpu.dot_dimension_numbers<[1], [0], [0], [1], [0, 0, 1, 1], [], []>} : vector<1x128xbf16>, vector<128x10xbf16>, vector<1x10xf32> -> vector<1x10xf32>
    %c0_64 = arith.constant 0 : index
    %c0_65 = arith.constant 0 : index
    %117 = vector.load %arg9[%c0_64, %c0_65] : memref<1x10xf32, #tpu.memory_space<vmem>>, vector<1x10xf32>
    %118 = arith.addf %116, %117 : vector<1x10xf32>
    %c0_66 = arith.constant 0 : index
    %c0_67 = arith.constant 0 : index
    %c0_68 = arith.constant 0 : index
    %119 = vector.load %arg10[%c0_66, %c0_67, %c0_68] : memref<1x1x10xf32, #tpu.memory_space<vmem>>, vector<1x1x10xf32>
    %120 = vector.shape_cast %119 : vector<1x1x10xf32> to vector<1x10xf32>
    %121 = vector.shape_cast %118 : vector<1x10xf32> to vector<1x1x10xf32>
    tpu.vector_store %arg10[%c0_66, %c0_67, %c0_68], %121 {strides = array<i32>} : memref<1x1x10xf32, #tpu.memory_space<vmem>>, vector<1x1x10xf32>,
    return
  }
  func.func @transform_0(%arg0: i32) -> (i32, i32, i32) {
    %c0_i32 = arith.constant 0 : i32
    %c0_i32_0 = arith.constant 0 : i32
    %c0_i32_1 = arith.constant 0 : i32
    return %arg0, %c0_i32, %c0_i32_0 : i32, i32, i32
  }
  func.func @transform_1(%arg0: i32) -> (i32, i32, i32) {
    %c0_i32 = arith.constant 0 : i32
    %c0_i32_0 = arith.constant 0 : i32
    %c0_i32_1 = arith.constant 0 : i32
    %c0_i32_2 = arith.constant 0 : i32
    return %c0_i32, %c0_i32_0, %c0_i32_1 : i32, i32, i32
  }
  func.func @transform_2(%arg0: i32) -> (i32, i32) {
    %c0_i32 = arith.constant 0 : i32
    %c0_i32_0 = arith.constant 0 : i32
    %c0_i32_1 = arith.constant 0 : i32
    return %c0_i32, %c0_i32_0 : i32, i32
  }
  func.func @transform_3(%arg0: i32) -> (i32, i32, i32) {
    %c0_i32 = arith.constant 0 : i32
    %c0_i32_0 = arith.constant 0 : i32
    %c0_i32_1 = arith.constant 0 : i32
    %c0_i32_2 = arith.constant 0 : i32
    return %c0_i32, %c0_i32_0, %c0_i32_1 : i32, i32, i32
  }
  func.func @transform_4(%arg0: i32) -> (i32, i32) {
    %c0_i32 = arith.constant 0 : i32
    %c0_i32_0 = arith.constant 0 : i32
    %c0_i32_1 = arith.constant 0 : i32
    return %c0_i32, %c0_i32_0 : i32, i32
  }
  func.func @transform_5(%arg0: i32) -> (i32, i32, i32) {
    %c0_i32 = arith.constant 0 : i32
    %c0_i32_0 = arith.constant 0 : i32
    %c0_i32_1 = arith.constant 0 : i32
    %c0_i32_2 = arith.constant 0 : i32
    return %c0_i32, %c0_i32_0, %c0_i32_1 : i32, i32, i32
  }
  func.func @transform_6(%arg0: i32) -> (i32, i32) {
    %c0_i32 = arith.constant 0 : i32
    %c0_i32_0 = arith.constant 0 : i32
    %c0_i32_1 = arith.constant 0 : i32
    return %c0_i32, %c0_i32_0 : i32, i32
  }
  func.func @transform_7(%arg0: i32) -> (i32, i32) {
    %c0_i32 = arith.constant 0 : i32
    %c0_i32_0 = arith.constant 0 : i32
    %c0_i32_1 = arith.constant 0 : i32
    return %c0_i32, %c0_i32_0 : i32, i32
  }
  func.func @transform_8(%arg0: i32) -> (i32, i32) {
    %c0_i32 = arith.constant 0 : i32
    %c0_i32_0 = arith.constant 0 : i32
    %c0_i32_1 = arith.constant 0 : i32
    return %c0_i32, %c0_i32_0 : i32, i32
  }
  func.func @transform_9(%arg0: i32) -> (i32, i32, i32) {
    %c0_i32 = arith.constant 0 : i32
    %c0_i32_0 = arith.constant 0 : i32
    %c0_i32_1 = arith.constant 0 : i32
    return %arg0, %c0_i32, %c0_i32_0 : i32, i32, i32
  }
}

</mosaic_0001>

<bundles_post_ra>
// kernel: tpu_custom_call.1
= control target key start
LH: loop header
LB: loop body
LE: loop exit
PB: predicated region body
PF: predicated region fallthrough
CT: control target
= control target key end

     0   :  { %14 = vsyncpa [#allocation3], 0  ;;  %s18188_s0 = inlined_call_operand.vmem [shape: f32[2,14,56], index: 0, kind: input, shape index: {}]   ;;  %s18189_s1 = inlined_call_operand.vmem [shape: bf16[4,120,448], index: 1, kind: input, shape index: {}]   ;;  %s18190_s2 = inlined_call_operand.vmem [shape: f32[1,448], index: 2, kind: input, shape index: {}]   ;;  %s18191_s3 = inlined_call_operand.vmem [shape: bf16[2,1536,448], index: 3, kind: input, shape index: {}]   ;;  %s18192_s4 = inlined_call_operand.vmem [shape: f32[1,448], index: 4, kind: input, shape index: {}]   ;;  %s18193_s5 = inlined_call_operand.vmem [shape: bf16[7,448,128], index: 5, kind: input, shape index: {}]   ;;  %s18194_s6 = inlined_call_operand.vmem [shape: f32[1,128], index: 6, kind: input, shape index: {}]   ;;  %s18195_s7 = inlined_call_operand.vmem [shape: bf16[128,10], index: 7, kind: input, shape index: {}]   ;;  %s18196_s8 = inlined_call_operand.vmem [shape: f32[1,10], index: 8, kind: input, shape index: {}]   ;;  %s18197_s9 = inlined_call_operand.hbm [shape: f32[2,1,10], index: 9, kind: output, shape index: {}]  }
   0x1   :  { %16 = vsyncpa [#allocation3 + $0x1], 0  ;;  %s14211_s30 = smov 0   ;;  %s14213_s10 = smov 0  }
   0x2   :  { %s14215_s11 = smov 0   ;;  %s14217_s12 = smov 0  }
   0x3 LB: > { %s14232_s13 = sadd.s32 4294967295, %s14146_s12   ;;  %s10076_s14 = sadd.s32 4294967294, %s14146_s12   ;;  %s14146_s12 = sphi %s14217_s12, %s18214_s12   ;;  %s14142_s11 = sphi %s14215_s11, %s18213_s11   ;;  %s14138_s10 = sphi %s14213_s10, %s18212_s10   ;;  %s14134_s30 = sphi %s14211_s30, %s18211_s30  }
   0x4   : > { %s14236_s15 = sadd.s32 1, %s14146_s12   ;;  %s223_s16 = sadd.s32 1, %s14142_s11 }
   0x5   : > { %s220_s17 = ssub.s32 %s14146_s12, %s14236_s15  ;;  %p233_p0 = scmp.ne.s32.totalorder %s14142_s11, %s14138_s10 }
   0x6   : > { %p221_p1 = scmp.eq.s32.totalorder %s220_s17, 0  ;;  %p234_p2 = scmp.eq.s32.totalorder %s14232_s13, 1 }
   0x7   : > { %p239_p3 = scmp.ne.s32.totalorder %s14138_s10, %s14134_s30  ;;  %p240_p4 = scmp.eq.s32.totalorder %s10076_s14, 1 }
   0x8   : > { %s14247_s18 = scalar_select %p221_p1, %s14142_s11, %s223_s16  }
   0x9   : > { %p14249_p5 = por %p234_p2, %p233_p0  ;;  %p14253_p6 = por %p240_p4, %p239_p3 }
   0xa   : > { %p10079_p7 = scmp.ge.s32.totalorder %s14146_s12, 1  ;;  %p290_p8 = scmp.lt.s32.totalorder %s14146_s12, 3 }
   0xc   : > { %p291_p9 = pnand %p10079_p7, %p290_p8 }
   0xd   : > { %p325_p10 = scmp.lt.s32.totalorder (!%p291_p9), %s14232_s13, 1  ;;  %vm350_vm0 = vcmask (!%p291_p9), 1044480   ;;  %vm14148_vm1 = vmmov (!%p291_p9), 1   ;;  %vm335_vm3 = vcmask (!%p291_p9), 1040384   ;;  %vm345_vm4 = vcmask (!%p291_p9), 1046528   ;;  %s14149_s26 = smov (!%p291_p9), 101  }
   0xe   : > { %294 = sbr.rel (%p291_p9) target bundleno = 2388 (0x954), region = 56  ;;  %vm14263_vm2 = vmpackc.low (!%p291_p9), %vm350_vm0, %vm14148_vm1  ;;  %s14150_s27 = smov (!%p291_p9), 100   ;;  %v12544_v13 = vld [vmem:[%s18189_s1 + $0x4] ss:$16 sps:$4 sm:$0xff] (!%p291_p9)   ;;  %v12546_v14 = vld [vmem:[%s18189_s1 + $0xc] ss:$16 sps:$4 sm:$0xff] (!%p291_p9)  }
   0xf   : > { %s18198_s28 = smov (!%p291_p9), 1   ;;  %v12548_v15 = vld [vmem:[%s18189_s1] ss:$16 sps:$4 sm:$0xff] (!%p291_p9)   ;;  %v12549_v16 = vld [vmem:[%s18189_s1 + $0x8] ss:$16 sps:$4 sm:$0xff] (!%p291_p9)   ;;  %627 = vmatprep.subr.bf16.mxu0 (!%p291_p9), %v12544_v13  ;;  %670 = vmatprep.subr.bf16.mxu1 (!%p291_p9), %v12546_v14  ;;  %s18204_s29 = smov (!%p291_p9), 1   ;;  %vm10700_vm14 = vmneg (!%p291_p9), %vm335_vm3 }
  0x10   : > { %v12550_v17 = vld [vmem:[%s18189_s1 + $0x24] ss:$16 sps:$4 sm:$0xff] (!%p291_p9)   ;;  %v12552_v18 = vld [vmem:[%s18189_s1 + $0x2c] ss:$16 sps:$4 sm:$0xff] (!%p291_p9)   ;;  %628 = vmatpush1.bf16.msra.mxu0 (!%p291_p9), %v12548_v15  ;;  %v12554_v19 = vld [vmem:[%s18189_s1 + $0x20] ss:$16 sps:$4 sm:$0xff] (!%p291_p9)   ;;  %671 = vmatpush1.bf16.msra.mxu1 (!%p291_p9), %v12549_v16 }
  0x11   : > { %629 = vmatprep.subr.bf16.mxu0 (!%p291_p9), %v12550_v17  ;;  %v12555_v20 = vld [vmem:[%s18189_s1 + $0x28] ss:$16 sps:$4 sm:$0xff] (!%p291_p9)   ;;  %v12556_v21 = vld [vmem:[%s18189_s1 + $0x44] ss:$16 sps:$4 sm:$0xff] (!%p291_p9)   ;;  %672 = vmatprep.subr.bf16.mxu1 (!%p291_p9), %v12552_v18  ;;  %v12558_v22 = vld [vmem:[%s18189_s1 + $0x4c] ss:$16 sps:$4 sm:$0xff] (!%p291_p9)  }
  0x12   : > { %v12560_v23 = vld [vmem:[%s18189_s1 + $0x40] ss:$16 sps:$4 sm:$0xff] (!%p291_p9)   ;;  %v12561_v24 = vld [vmem:[%s18189_s1 + $0x48] ss:$16 sps:$4 sm:$0xff] (!%p291_p9)   ;;  %v12562_v25 = vld [vmem:[%s18189_s1 + $0x64] ss:$16 sps:$4 sm:$0xff] (!%p291_p9)  }
  0x13   : > { %v12564_v26 = vld [vmem:[%s18189_s1 + $0x6c] ss:$16 sps:$4 sm:$0xff] (!%p291_p9)   ;;  %v12566_v27 = vld [vmem:[%s18189_s1 + $0x60] ss:$16 sps:$4 sm:$0xff] (!%p291_p9)   ;;  %v12567_v28 = vld [vmem:[%s18189_s1 + $0x68] ss:$16 sps:$4 sm:$0xff] (!%p291_p9)  }
  0x14   : > { %630 = vmatpush1.bf16.msra.mxu0 (!%p291_p9), %v12554_v19  ;;  %673 = vmatpush1.bf16.msra.mxu1 (!%p291_p9), %v12555_v20  ;;  %v12568_v29 = vld [vmem:[%s18189_s1 + $0x84] ss:$16 sps:$4 sm:$0xff] (!%p291_p9)   ;;  %v12570_v30 = vld [vmem:[%s18189_s1 + $0x8c] ss:$16 sps:$4 sm:$0xff] (!%p291_p9)   ;;  %v12572_v31 = vld [vmem:[%s18189_s1 + $0x80] ss:$16 sps:$4 sm:$0xff] (!%p291_p9)  }
  0x15   : > { %s326_s21 = scalar_select %p325_p10, %s14232_s13, 1  ;;  %631 = vmatprep.subr.bf16.mxu0 %v12556_v21  ;;  %674 = vmatprep.subr.bf16.mxu1 %v12558_v22  ;;  %v12573_v32 = vld [vmem:[%s18189_s1 + $0x88] ss:$16 sps:$4 sm:$0xff]   ;;  %v12574_v33 = vld [vmem:[%s18189_s1 + $0xa4] ss:$16 sps:$4 sm:$0xff]   ;;  %vm359_vm5 = vcmask 7168   ;;  %vm14979_vm15 = vmpackc.low %vm14148_vm1, %vm10700_vm14 }
  0x16   : > { %v12576_v34 = vld [vmem:[%s18189_s1 + $0xac] ss:$16 sps:$4 sm:$0xff]   ;;  %v12578_v35 = vld [vmem:[%s18189_s1 + $0xa0] ss:$16 sps:$4 sm:$0xff]   ;;  %v12579_v36 = vld [vmem:[%s18189_s1 + $0xa8] ss:$16 sps:$4 sm:$0xff]  }
  0x17   : > { %s12169_s22 = sshll.u32 %s326_s21, 4  ;;  %v12580_v37 = vld [vmem:[%s18189_s1 + $0xc4] ss:$16 sps:$4 sm:$0xff]   ;;  %v12582_v38 = vld [vmem:[%s18189_s1 + $0xcc] ss:$16 sps:$4 sm:$0xff]   ;;  %vm362_vm6 = vcmask 236544  }
  0x18   : > { %s329_s25 = scalar_lea.vmem %s18188_s0, %s12169_s22  ;;  %632 = vmatpush1.bf16.msra.mxu0 %v12560_v23  ;;  %675 = vmatpush1.bf16.msra.mxu1 %v12561_v24  ;;  %v12584_v40 = vld [vmem:[%s18189_s1 + $0xc0] ss:$16 sps:$4 sm:$0xff]   ;;  %v12585_v41 = vld [vmem:[%s18189_s1 + $0xc8] ss:$16 sps:$4 sm:$0xff]   ;;  %vm614_vm7 = vcmask 1043456   ;;  %v14152_v15 = vmov 0  }
  0x19   : > { %v331_v1 = vld [vmem:[%s329_s25] sm:$0xff]  ;;  %v332_v2 = vld [vmem:[%s329_s25 + $0x8] sm:$0x3f]  ;;  %633 = vmatprep.subr.bf16.mxu0 %v12562_v25  ;;  %676 = vmatprep.subr.bf16.mxu1 %v12564_v26  ;;  %s14154_s25 = smov 30   ;;  %vm420_vm8 = vcmask 244736   ;;  %vm423_vm9 = vcmask 490496  }
  0x1a   : > { %v336_v3 = vrot.slane %v331_v1, 7  ;;  %v337_v4 = vrot.slane %v332_v2, 7  ;;  %v12494_v5 = vpack.i.bf16 %v332_v2, %v331_v1  ;;  %v346_v6 = vrot.slane %v331_v1, 1  ;;  %v458_v44 = vld [vmem:[%s18189_s1 + $0xe0] sm:$0xff]  ;;  %v459_v45 = vld [vmem:[%s18189_s1 + $0xe8] sm:$0xff]  ;;  %659 = vmatprep.mubr.bf16.mxu0 %v14152_v15  ;;  %702 = vmatprep.mubr.bf16.mxu1 %v14152_v15  ;;  %v13891_v0 = vld [vmem:[%s18193_s5 + $0xf0] sm:$0xff]  }
  0x1b   : > { %v347_v7 = vrot.slane %v332_v2, 1  ;;  %v10111_v49 = vcombine.high %v458_v44, %v458_v44  ;;  %v10113_v58 = vcombine.high %v459_v45, %v459_v45  ;;  %v10110_v59 = vcombine.low %v458_v44, %v458_v44  ;;  %s323_s17 = sand.u32 1, %s14138_s10   ;;  %s12166_s23 = sshll.u32 %s14232_s13, 4 }
  0x1c   : > { %v338_v8 = vsel %vm335_vm3, %v336_v3, %v337_v4  ;;  %12495 = vrot.lane.b32.xlu1 %v12494_v5, %s14149_s26  ;;  %634 = vmatpush1.bf16.msra.mxu0 %v12566_v27  ;;  %v10112_v62 = vcombine.low %v459_v45, %v459_v45  ;;  %v12592_v4 = vld [vmem:[%s18189_s1 + $0xf4] ss:$16 sps:$4 sm:$0xff]   ;;  %s14155_s26 = smov 90   ;;  %vm426_vm10 = vcmask 736256   ;;  %vm610_vm11 = vcmask 982016   ;;  %s10009_s13 = scalar_lea.sflag [#allocation3], %s323_s17 }
  0x1d   : > { %v12484_v9 = vpack.i.bf16 %v338_v8, %v336_v3  ;;  %v348_v10 = vsel %vm345_vm4, %v346_v6, %v347_v7  ;;  %v351_v11 = vsel %vm350_vm0, %v347_v7, 0.0  ;;  %677 = vmatpush1.bf16.msra.mxu1 %v12567_v28  ;;  %635 = vmatprep.subr.bf16.mxu0 %v12568_v29  ;;  %v616_v7 = vsel %vm614_vm7, %v10110_v59, 0  ;;  %v12596_v45 = vld [vmem:[%s18189_s1 + $0x110] ss:$16 sps:$4 sm:$0xff]   ;;  %v12622_v59 = vld [vmem:[%s18189_s1 + $0x194] ss:$16 sps:$4 sm:$0xff]  }
  0x1e   : > { %v12499_v12 = vpack.i.bf16 %v351_v11, %v348_v10  ;;  %678 = vmatprep.subr.bf16.mxu1 %v12570_v30  ;;  %v622_v8 = vsel %vm614_vm7, %v10112_v62, 0  ;;  %v12623_v62 = vld [vmem:[%s18189_s1 + $0x198] ss:$16 sps:$4 sm:$0xff]   ;;  %vm1636_vm12 = vcmask 261120   ;;  %vm1653_vm13 = vcmask 785408   ;;  %s14160_s14 = smov [#allocation2]  }
  0x1f   : > { %12485 = vrot.lane.b32.xlu0 %v12484_v9, %s14150_s27  ;;  %s14156_s27 = smov 32   ;;  %vm10716_vm0 = vmneg %vm1636_vm12  ;;  %s14088_s16 = sshll.u32 %s14160_s14, 4  ;;  %s14089_s16 = int_to_ptr.vmem [resolvable:$false] %s14088_s16 }
  0x20   : > { %12500 = vrot.lane.b32.xlu1 %v12499_v12, %s18198_s28  ;;  %636 = vmatpush1.bf16.msra.mxu0 %v12572_v31  ;;  %vm15416_vm1 = vmpackc.low %vm10716_vm0, %vm10716_vm0  ;;  %s324_s28 = scalar_lea.vmem [#allocation2], %s323_s17  ;;  %s14090_s21 = scalar_lea.vmem %s14089_s16, 32 }
  0x21   : > { %679 = vmatpush1.bf16.msra.mxu1 %v12573_v32  ;;  %637 = vmatprep.subr.bf16.mxu0 %v12574_v33  ;;  %s10021_s24 = sshll.u32 %s324_s28, 4  ;;  %s18148_s24 = int_to_ptr.vmem [resolvable:$true] %s10021_s24 }
  0x22   : > { %680 = vmatprep.subr.bf16.mxu1 %v12576_v34  ;;  %p14091_p0 = scmp.lt.s32.totalorder %s18148_s24, %s14089_s16 }
  0x23   : > { %12490 = vrot.lane.b32.xlu0 %v12494_v5, %s18204_s29  ;;  %v12595_v5 = vld [vmem:[%s18189_s1 + $0xfc] ss:$16 sps:$4 sm:$0xff]  }
  0x24   : > { %638 = vmatpush1.bf16.msra.mxu0 %v12578_v35 }
  0x25   : > { %681 = vmatpush1.bf16.msra.mxu1 %v12579_v36  ;;  %639 = vmatprep.subr.bf16.mxu0 %v12580_v37  ;;  %v12590_v36 = vld [vmem:[%s18189_s1 + $0xf0] ss:$16 sps:$4 sm:$0xff]   ;;  %v12593_v37 = vld [vmem:[%s18189_s1 + $0xf8] ss:$16 sps:$4 sm:$0xff]  }
  0x26   : > { %682 = vmatprep.subr.bf16.mxu1 %v12582_v38 }
  0x28   : > { %640 = vmatpush1.bf16.msra.mxu0 %v12584_v40  ;;  %v12598_v40 = vld [vmem:[%s18189_s1 + $0x114] ss:$16 sps:$4 sm:$0xff]  }
  0x29   : > { %683 = vmatpush1.bf16.msra.mxu1 %v12585_v41  ;;  %10114 = vmatprep.subr.msk.bf16.mxu0 %vm614_vm7, %v10111_v49  ;;  %v12601_v41 = vld [vmem:[%s18189_s1 + $0x11c] ss:$16 sps:$4 sm:$0xff]   ;;  %v12602_v49 = vld [vmem:[%s18189_s1 + $0x130] ss:$16 sps:$4 sm:$0xff]  }
  0x2a   : > { %10116 = vmatprep.subr.msk.bf16.mxu1 %vm614_vm7, %v10113_v58  ;;  %v12617_v58 = vld [vmem:[%s18189_s1 + $0x178] ss:$16 sps:$4 sm:$0xff]  }
  0x2c   : > { %642 = vmatpush1.bf16.msra.mxu0 %v616_v7 }
  0x2d   : > { %685 = vmatpush1.bf16.msra.mxu1 %v622_v8  ;;  %906 = vmatprep.subr.bf16.mxu0 %v12592_v4  ;;  %v12626_v4 = vld [vmem:[%s18189_s1 + $0x1b0] ss:$16 sps:$4 sm:$0xff]  }
  0x2e   : > { %949 = vmatprep.subr.bf16.mxu1 %v12595_v5  ;;  %v12629_v5 = vld [vmem:[%s18189_s1 + $0x1b8] ss:$16 sps:$4 sm:$0xff]  }
  0x8e   : > { %v12496_v39 = vpop.permute.xlu1 %12495 }
  0x8f   : > { %v12498_v42 = vunpack.i.h.bf16 %v12496_v39  ;;  %v12497_v43 = vunpack.i.l.bf16 %v12496_v39 }
  0x91   : > { %v12486_v46 = vpop.permute.xlu0 %12485  ;;  %v382_v47 = vsel %vm359_vm5, 0.0, %v12498_v42  ;;  %v381_v48 = vsel %vm359_vm5, 0.0, %v12497_v43 }
  0x92   : > { %v12488_v50 = vunpack.i.h.bf16 %v12486_v46  ;;  %v12487_v51 = vunpack.i.l.bf16 %v12486_v46  ;;  %v12501_v52 = vpop.permute.xlu1 %12500  ;;  %v384_v53 = vsel %vm362_vm6, %v382_v47, 0.0  ;;  %v383_v54 = vsel %vm362_vm6, %v381_v48, 0.0  ;;  %v12599_v46 = vld [vmem:[%s18189_s1 + $0x118] ss:$16 sps:$4 sm:$0xff]   ;;  %v12604_v47 = vld [vmem:[%s18189_s1 + $0x134] ss:$16 sps:$4 sm:$0xff]  }
  0x93   : > { %v12503_v55 = vunpack.i.h.bf16 %v12501_v52  ;;  %v12502_v56 = vunpack.i.l.bf16 %v12501_v52  ;;  %v12514_v6 = vpack.i.bf16 %v384_v53, %v383_v54  ;;  %v12607_v48 = vld [vmem:[%s18189_s1 + $0x13c] ss:$16 sps:$4 sm:$0xff]   ;;  %v12608_v53 = vld [vmem:[%s18189_s1 + $0x150] ss:$16 sps:$4 sm:$0xff]   ;;  %v12611_v54 = vld [vmem:[%s18189_s1 + $0x158] ss:$16 sps:$4 sm:$0xff]  }
  0x94   : > { %v344_v57 = vsel %vm335_vm3, 0.0, %v12487_v51  ;;  %v12610_v51 = vld [vmem:[%s18189_s1 + $0x154] ss:$16 sps:$4 sm:$0xff]   ;;  %v12613_v52 = vld [vmem:[%s18189_s1 + $0x15c] ss:$16 sps:$4 sm:$0xff]  }
  0x95   : > { %v12509_v60 = vpack.i.bf16 %v12488_v50, %v344_v57  ;;  %v12491_v61 = vpop.permute.xlu0 %12490  ;;  %v393_v2 = vsel %vm359_vm5, 0.0, %v12503_v55  ;;  %v392_v3 = vsel %vm359_vm5, 0.0, %v12502_v56  ;;  %v12605_v50 = vld [vmem:[%s18189_s1 + $0x138] ss:$16 sps:$4 sm:$0xff]   ;;  %v12616_v55 = vld [vmem:[%s18189_s1 + $0x174] ss:$16 sps:$4 sm:$0xff]  }
  0x96   : > { %v12493_v63 = vunpack.i.h.bf16 %v12491_v61  ;;  %v12492_v1 = vunpack.i.l.bf16 %v12491_v61  ;;  %v395_v13 = vsel %vm362_vm6, %v393_v2, 0.0  ;;  %v394_v14 = vsel %vm362_vm6, %v392_v3, 0.0  ;;  %v12619_v56 = vld [vmem:[%s18189_s1 + $0x17c] ss:$16 sps:$4 sm:$0xff]   ;;  %v12614_v57 = vld [vmem:[%s18189_s1 + $0x170] ss:$16 sps:$4 sm:$0xff]  }
  0x97   : > { %12510 = vrot.lane.b32.xlu0 %v12509_v60, %s18204_s29  ;;  %s14153_s29 = smov 60   ;;  %v12519_v17 = vpack.i.bf16 %v395_v13, %v394_v14  ;;  %v12625_v60 = vld [vmem:[%s18189_s1 + $0x19c] ss:$16 sps:$4 sm:$0xff]   ;;  %v12620_v61 = vld [vmem:[%s18189_s1 + $0x190] ss:$16 sps:$4 sm:$0xff]  }
  0x98   : > { %v372_v9 = vsel %vm359_vm5, 0.0, %v12493_v63  ;;  %v371_v10 = vsel %vm359_vm5, 0.0, %v12492_v1  ;;  %v12628_v63 = vld [vmem:[%s18189_s1 + $0x1b4] ss:$16 sps:$4 sm:$0xff]   ;;  %v12631_v1 = vld [vmem:[%s18189_s1 + $0x1bc] ss:$16 sps:$4 sm:$0xff]  }
  0x99   : > { %v374_v11 = vsel %vm362_vm6, %v372_v9, 0.0  ;;  %v373_v12 = vsel %vm362_vm6, %v371_v10, 0.0  ;;  %v10146_v2 = vld [vmem:[%s18189_s1 + $0x1d0] sm:$0xff]  ;;  %v10147_v3 = vld [vmem:[%s18189_s1 + $0x1d8] sm:$0xff] }
  0x9a   : > { %v12504_v16 = vpack.i.bf16 %v374_v11, %v373_v12  ;;  %v10179_v7 = vcombine.high %v10147_v3, %v10147_v3  ;;  %v10176_v8 = vcombine.low %v10146_v2, %v10146_v2  ;;  %v10178_v9 = vcombine.low %v10147_v3, %v10147_v3  ;;  %v12638_v10 = vld [vmem:[%s18189_s1 + $0x1e4] ss:$16 sps:$4 sm:$0xff]   ;;  %v12641_v11 = vld [vmem:[%s18189_s1 + $0x1ec] ss:$16 sps:$4 sm:$0xff]   ;;  %v12636_v14 = vld [vmem:[%s18189_s1 + $0x1e0] ss:$16 sps:$4 sm:$0xff]  }
  0x9b   : > { %12515 = vrot.lane.b32.xlu0 %v12514_v6, %s14153_s29  ;;  %v10177_v6 = vcombine.high %v10146_v2, %v10146_v2  ;;  %v12705_v2 = vld [vmem:[%s18189_s1 + $0x33c] ss:$16 sps:$4 sm:$0xff]   ;;  %v12700_v3 = vld [vmem:[%s18189_s1 + $0x330] ss:$16 sps:$4 sm:$0xff]  }
  0x9c   : > { %12505 = vrot.lane.b32.xlu1 %v12504_v16, %s14154_s25  ;;  %v895_v12 = vsel %vm614_vm7, %v10176_v8, 0  ;;  %v901_v13 = vsel %vm614_vm7, %v10178_v9, 0  ;;  %v12639_v16 = vld [vmem:[%s18189_s1 + $0x1e8] ss:$16 sps:$4 sm:$0xff]   ;;  %v12711_v8 = vld [vmem:[%s18189_s1 + $0x35c] ss:$16 sps:$4 sm:$0xff]  }
  0x9d   : > { %v12706_v9 = vld [vmem:[%s18189_s1 + $0x350] ss:$16 sps:$4 sm:$0xff]  }
  0xa0   : > { %12520 = vrot.lane.b32.xlu1 %v12519_v17, %s14155_s26  ;;  %v12644_v17 = vld [vmem:[%s18189_s1 + $0x204] ss:$16 sps:$4 sm:$0xff]   ;;  %s18146_s26 = scalar_lea.hbm %s18197_s9, %s12166_s23 }
 0x109   : > { %v12511_v18 = vpop.permute.xlu0 %12510 }
 0x10a   : > { %v12513_v19 = vunpack.i.h.bf16 %v12511_v18  ;;  %v12512_v20 = vunpack.i.l.bf16 %v12511_v18  ;;  %v12647_v18 = vld [vmem:[%s18189_s1 + $0x20c] ss:$16 sps:$4 sm:$0xff]  }
 0x10c   : > { %v361_v21 = vsel %vm359_vm5, 0.0, %v12513_v19  ;;  %v360_v22 = vsel %vm359_vm5, 0.0, %v12512_v20  ;;  %v12642_v19 = vld [vmem:[%s18189_s1 + $0x200] ss:$16 sps:$4 sm:$0xff]   ;;  %v12645_v20 = vld [vmem:[%s18189_s1 + $0x208] ss:$16 sps:$4 sm:$0xff]  }
 0x10d   : > { %v12516_v23 = vpop.permute.xlu0 %12515  ;;  %v364_v27 = vsel %vm362_vm6, %v361_v21, 0.0  ;;  %v363_v28 = vsel %vm362_vm6, %v360_v22, 0.0  ;;  %v12650_v21 = vld [vmem:[%s18189_s1 + $0x224] ss:$16 sps:$4 sm:$0xff]   ;;  %v12653_v22 = vld [vmem:[%s18189_s1 + $0x22c] ss:$16 sps:$4 sm:$0xff]  }
 0x10e   : > { %v12506_v24 = vpop.permute.xlu1 %12505  ;;  %v12518_v29 = vunpack.i.h.bf16 %v12516_v23  ;;  %v12517_v30 = vunpack.i.l.bf16 %v12516_v23  ;;  %v12648_v23 = vld [vmem:[%s18189_s1 + $0x220] ss:$16 sps:$4 sm:$0xff]   ;;  %vm10006_vm5 = vcmask 73728  }
 0x10f   : > { %v12508_v25 = vunpack.i.h.bf16 %v12506_v24  ;;  %v12507_v26 = vunpack.i.l.bf16 %v12506_v24  ;;  %v12651_v24 = vld [vmem:[%s18189_s1 + $0x228] ss:$16 sps:$4 sm:$0xff]  }
 0x111   : > { %v421_v31 = vsel %vm420_vm8, %v363_v28, %v12507_v26  ;;  %v422_v32 = vsel %vm420_vm8, %v364_v27, %v12508_v25  ;;  %v12656_v25 = vld [vmem:[%s18189_s1 + $0x244] ss:$16 sps:$4 sm:$0xff]   ;;  %v12659_v26 = vld [vmem:[%s18189_s1 + $0x24c] ss:$16 sps:$4 sm:$0xff]   ;;  %v12654_v27 = vld [vmem:[%s18189_s1 + $0x240] ss:$16 sps:$4 sm:$0xff]  }
 0x112   : > { %v12521_v33 = vpop.permute.xlu1 %12520  ;;  %v424_v38 = vsel %vm423_vm9, %v421_v31, %v12517_v30  ;;  %v425_v39 = vsel %vm423_vm9, %v422_v32, %v12518_v29  ;;  %v12657_v28 = vld [vmem:[%s18189_s1 + $0x248] ss:$16 sps:$4 sm:$0xff]   ;;  %v12662_v29 = vld [vmem:[%s18189_s1 + $0x264] ss:$16 sps:$4 sm:$0xff]   ;;  %v12665_v30 = vld [vmem:[%s18189_s1 + $0x26c] ss:$16 sps:$4 sm:$0xff]  }
 0x113   : > { %v12523_v34 = vunpack.i.h.bf16 %v12521_v33  ;;  %v12522_v35 = vunpack.i.l.bf16 %v12521_v33  ;;  %v12660_v31 = vld [vmem:[%s18189_s1 + $0x260] ss:$16 sps:$4 sm:$0xff]   ;;  %v12663_v32 = vld [vmem:[%s18189_s1 + $0x268] ss:$16 sps:$4 sm:$0xff]   ;;  %v12668_v33 = vld [vmem:[%s18189_s1 + $0x284] ss:$16 sps:$4 sm:$0xff]  }
 0x115   : > { %v427_v42 = vsel %vm426_vm10, %v424_v38, %v12522_v35  ;;  %v428_v43 = vsel %vm426_vm10, %v425_v39, %v12523_v34  ;;  %v12671_v34 = vld [vmem:[%s18189_s1 + $0x28c] ss:$16 sps:$4 sm:$0xff]   ;;  %v12666_v35 = vld [vmem:[%s18189_s1 + $0x280] ss:$16 sps:$4 sm:$0xff]  }
 0x116   : > { %v14407_v44 = vpack.c.bf16 %v428_v43, %v427_v42  ;;  %v12677_v38 = vld [vmem:[%s18189_s1 + $0x2ac] ss:$16 sps:$4 sm:$0xff]   ;;  %v10212_v39 = vld [vmem:[%s18189_s1 + $0x2c0] sm:$0xff]  ;;  %v12675_v42 = vld [vmem:[%s18189_s1 + $0x2a8] ss:$16 sps:$4 sm:$0xff]  }
 0x117   : > { %v10243_v43 = vcombine.high %v10212_v39, %v10212_v39 }
 0x118   : > { %10115 = vmatmul.mubr.msk.bf16.vlgmr.msra.gmra.mrb[0].mxu0 %vm610_vm11, %v14407_v44  ;;  %10117 = vmatmul.mubr.msk.bf16.vlgmr.msra.gmra.mrb[0].mxu1 %vm610_vm11, %v14407_v44 }
 0x119   : > { %907 = vmatpush1.bf16.msra.mxu0 %v12590_v36  ;;  %950 = vmatpush1.bf16.msra.mxu1 %v12593_v37  ;;  %v12669_v36 = vld [vmem:[%s18189_s1 + $0x288] ss:$16 sps:$4 sm:$0xff]   ;;  %v12674_v37 = vld [vmem:[%s18189_s1 + $0x2a4] ss:$16 sps:$4 sm:$0xff]  }
 0x11a   : > { %908 = vmatprep.subr.bf16.mxu0 %v12598_v40  ;;  %951 = vmatprep.subr.bf16.mxu1 %v12601_v41  ;;  %v10213_v40 = vld [vmem:[%s18189_s1 + $0x2c8] sm:$0xff]  ;;  %v12672_v41 = vld [vmem:[%s18189_s1 + $0x2a0] ss:$16 sps:$4 sm:$0xff]  }
 0x11b   : > { %938 = vmatprep.mubr.bf16.mxu0 %v14152_v15  ;;  %981 = vmatprep.mubr.bf16.mxu1 %v14152_v15 }
 0x11d   : > { %909 = vmatpush1.bf16.msra.mxu0 %v12596_v45  ;;  %952 = vmatpush1.bf16.msra.mxu1 %v12599_v46  ;;  %v10245_v45 = vcombine.high %v10213_v40, %v10213_v40  ;;  %v10242_v46 = vcombine.low %v10212_v39, %v10212_v39  ;;  %v12733_v39 = vld [vmem:[%s18191_s3 + $0xc] ss:$16 sps:$4 sm:$0xff]  }
 0x11e   : > { %910 = vmatprep.subr.bf16.mxu0 %v12604_v47  ;;  %953 = vmatprep.subr.bf16.mxu1 %v12607_v48  ;;  %v10244_v47 = vcombine.low %v10213_v40, %v10213_v40  ;;  %v12684_v48 = vld [vmem:[%s18189_s1 + $0x2d4] ss:$16 sps:$4 sm:$0xff]  }
 0x11f   : > { %v12736_v40 = vld [vmem:[%s18191_s3 + $0x24] ss:$16 sps:$4 sm:$0xff]  }
 0x121   : > { %911 = vmatpush1.bf16.msra.mxu0 %v12602_v49  ;;  %954 = vmatpush1.bf16.msra.mxu1 %v12605_v50  ;;  %v12687_v49 = vld [vmem:[%s18189_s1 + $0x2dc] ss:$16 sps:$4 sm:$0xff]   ;;  %v1182_v50 = vsel %vm614_vm7, %v10242_v46, 0 }
 0x122   : > { %912 = vmatprep.subr.bf16.mxu0 %v12610_v51  ;;  %955 = vmatprep.subr.bf16.mxu1 %v12613_v52  ;;  %v1188_v51 = vsel %vm614_vm7, %v10244_v47, 0  ;;  %v12682_v52 = vld [vmem:[%s18189_s1 + $0x2d0] ss:$16 sps:$4 sm:$0xff]   ;;  %v12745_v46 = vld [vmem:[%s18191_s3 + $0x4c] ss:$16 sps:$4 sm:$0xff]  }
 0x123   : > { %v12740_v47 = vld [vmem:[%s18191_s3 + $0x40] ss:$16 sps:$4 sm:$0xff]  }
 0x125   : > { %913 = vmatpush1.bf16.msra.mxu0 %v12608_v53  ;;  %956 = vmatpush1.bf16.msra.mxu1 %v12611_v54  ;;  %v12685_v53 = vld [vmem:[%s18189_s1 + $0x2d8] ss:$16 sps:$4 sm:$0xff]   ;;  %v12690_v54 = vld [vmem:[%s18189_s1 + $0x2f4] ss:$16 sps:$4 sm:$0xff]  }
 0x126   : > { %914 = vmatprep.subr.bf16.mxu0 %v12616_v55  ;;  %957 = vmatprep.subr.bf16.mxu1 %v12619_v56  ;;  %v12693_v55 = vld [vmem:[%s18189_s1 + $0x2fc] ss:$16 sps:$4 sm:$0xff]   ;;  %v12688_v56 = vld [vmem:[%s18189_s1 + $0x2f0] ss:$16 sps:$4 sm:$0xff]  }
 0x129   : > { %915 = vmatpush1.bf16.msra.mxu0 %v12614_v57  ;;  %958 = vmatpush1.bf16.msra.mxu1 %v12617_v58  ;;  %v12691_v57 = vld [vmem:[%s18189_s1 + $0x2f8] ss:$16 sps:$4 sm:$0xff]   ;;  %v12696_v58 = vld [vmem:[%s18189_s1 + $0x314] ss:$16 sps:$4 sm:$0xff]  }
 0x12a   : > { %916 = vmatprep.subr.bf16.mxu0 %v12622_v59  ;;  %959 = vmatprep.subr.bf16.mxu1 %v12625_v60  ;;  %v12699_v59 = vld [vmem:[%s18189_s1 + $0x31c] ss:$16 sps:$4 sm:$0xff]   ;;  %v10278_v60 = vld [vmem:[%s18189_s1 + $0x3b0] sm:$0xff] }
 0x12d   : > { %917 = vmatpush1.bf16.msra.mxu0 %v12620_v61  ;;  %960 = vmatpush1.bf16.msra.mxu1 %v12623_v62  ;;  %v10279_v61 = vld [vmem:[%s18189_s1 + $0x3b8] sm:$0xff]  ;;  %v12694_v62 = vld [vmem:[%s18189_s1 + $0x310] ss:$16 sps:$4 sm:$0xff]  }
 0x12e   : > { %918 = vmatprep.subr.bf16.mxu0 %v12628_v63  ;;  %961 = vmatprep.subr.bf16.mxu1 %v12631_v1  ;;  %v12697_v63 = vld [vmem:[%s18189_s1 + $0x318] ss:$16 sps:$4 sm:$0xff]   ;;  %v12702_v1 = vld [vmem:[%s18189_s1 + $0x334] ss:$16 sps:$4 sm:$0xff]  }
 0x131   : > { %919 = vmatpush1.bf16.msra.mxu0 %v12626_v4  ;;  %962 = vmatpush1.bf16.msra.mxu1 %v12629_v5  ;;  %v12703_v4 = vld [vmem:[%s18189_s1 + $0x338] ss:$16 sps:$4 sm:$0xff]   ;;  %v10308_v5 = vcombine.low %v10278_v60, %v10278_v60 }
 0x132   : > { %10180 = vmatprep.subr.msk.bf16.mxu0 %vm614_vm7, %v10177_v6  ;;  %10182 = vmatprep.subr.msk.bf16.mxu1 %vm614_vm7, %v10179_v7  ;;  %v10310_v6 = vcombine.low %v10279_v61, %v10279_v61  ;;  %v12708_v7 = vld [vmem:[%s18189_s1 + $0x354] ss:$16 sps:$4 sm:$0xff]  }
 0x135   : > { %921 = vmatpush1.bf16.msra.mxu0 %v895_v12  ;;  %964 = vmatpush1.bf16.msra.mxu1 %v901_v13  ;;  %v1475_v12 = vsel %vm614_vm7, %v10310_v6, 0  ;;  %v12714_v13 = vld [vmem:[%s18189_s1 + $0x374] ss:$16 sps:$4 sm:$0xff]  }
 0x136   : > { %1193 = vmatprep.subr.bf16.mxu0 %v12638_v10  ;;  %1236 = vmatprep.subr.bf16.mxu1 %v12641_v11  ;;  %v12709_v10 = vld [vmem:[%s18189_s1 + $0x358] ss:$16 sps:$4 sm:$0xff]   ;;  %v1469_v11 = vsel %vm614_vm7, %v10308_v5, 0  ;;  %v12766_v6 = vld [vmem:[%s18191_s3 + $0xc4] ss:$16 sps:$4 sm:$0xff]  }
 0x137   : > { %v12761_v5 = vld [vmem:[%s18191_s3 + $0xa8] ss:$16 sps:$4 sm:$0xff]  }
 0x138   : > { %10181 = vmatmul.mubr.msk.bf16.vlgmr.msra.gmra.mrb[4].mxu0 %vm610_vm11, %v14407_v44  ;;  %10183 = vmatmul.mubr.msk.bf16.vlgmr.msra.gmra.mrb[4].mxu1 %vm610_vm11, %v14407_v44 }
 0x139   : > { %1194 = vmatpush1.bf16.msra.mxu0 %v12636_v14  ;;  %1237 = vmatpush1.bf16.msra.mxu1 %v12639_v16  ;;  %v12717_v14 = vld [vmem:[%s18189_s1 + $0x37c] ss:$16 sps:$4 sm:$0xff]   ;;  %v12712_v16 = vld [vmem:[%s18189_s1 + $0x370] ss:$16 sps:$4 sm:$0xff]  }
 0x13a   : > { %1195 = vmatprep.subr.bf16.mxu0 %v12644_v17  ;;  %1238 = vmatprep.subr.bf16.mxu1 %v12647_v18  ;;  %v12715_v17 = vld [vmem:[%s18189_s1 + $0x378] ss:$16 sps:$4 sm:$0xff]   ;;  %v12720_v18 = vld [vmem:[%s18189_s1 + $0x394] ss:$16 sps:$4 sm:$0xff]  }
 0x13b   : > { %1225 = vmatprep.mubr.bf16.mxu0 %v14152_v15  ;;  %1268 = vmatprep.mubr.bf16.mxu1 %v14152_v15 }
 0x13d   : > { %1196 = vmatpush1.bf16.msra.mxu0 %v12642_v19  ;;  %1239 = vmatpush1.bf16.msra.mxu1 %v12645_v20  ;;  %v12723_v19 = vld [vmem:[%s18189_s1 + $0x39c] ss:$16 sps:$4 sm:$0xff]   ;;  %v12718_v20 = vld [vmem:[%s18189_s1 + $0x390] ss:$16 sps:$4 sm:$0xff]  }
 0x13e   : > { %1197 = vmatprep.subr.bf16.mxu0 %v12650_v21  ;;  %1240 = vmatprep.subr.bf16.mxu1 %v12653_v22  ;;  %v12721_v21 = vld [vmem:[%s18189_s1 + $0x398] ss:$16 sps:$4 sm:$0xff]   ;;  %v10309_v22 = vcombine.high %v10278_v60, %v10278_v60 }
 0x141   : > { %1198 = vmatpush1.bf16.msra.mxu0 %v12648_v23  ;;  %1241 = vmatpush1.bf16.msra.mxu1 %v12651_v24  ;;  %v10311_v23 = vcombine.high %v10279_v61, %v10279_v61  ;;  %v1576_v24 = vlaneseq }
 0x142   : > { %1199 = vmatprep.subr.bf16.mxu0 %v12656_v25  ;;  %1242 = vmatprep.subr.bf16.mxu1 %v12659_v26 }
 0x143   : > { %v14695_v25 = vshrl.u32 %v1576_v24, 7  ;;  %v12793_v24 = vld [vmem:[%s18191_s3 + $0x14c] ss:$16 sps:$4 sm:$0xff]  }
 0x145   : > { %1200 = vmatpush1.bf16.msra.mxu0 %v12654_v27  ;;  %1243 = vmatpush1.bf16.msra.mxu1 %v12657_v28  ;;  %v14698_v26 = vsub.s32 0, %v14695_v25  ;;  %v1582_v27 = vsub.s32 1, %v14695_v25  ;;  %v14702_v28 = vsub.s32 2, %v14695_v25 }
 0x146   : > { %1201 = vmatprep.subr.bf16.mxu0 %v12662_v29  ;;  %1244 = vmatprep.subr.bf16.mxu1 %v12665_v30  ;;  %v7483_v29 = vld [vmem:[%s18192_s4] sm:$0xf]  ;;  %v1590_v30 = vsub.s32 3, %v14695_v25 }
 0x149   : > { %1202 = vmatpush1.bf16.msra.mxu0 %v12660_v31  ;;  %1245 = vmatpush1.bf16.msra.mxu1 %v12663_v32  ;;  %v14709_v31 = vrot.slane %v7483_v29, %v14698_v26  ;;  %v14716_v32 = vrot.slane %v7483_v29, %v14702_v28 }
 0x14a   : > { %1203 = vmatprep.subr.bf16.mxu0 %v12668_v33  ;;  %1246 = vmatprep.subr.bf16.mxu1 %v12671_v34  ;;  %v14720_v33 = vrot.slane %v7483_v29, %v1590_v30 }
 0x14d   : > { %1204 = vmatpush1.bf16.msra.mxu0 %v12666_v35  ;;  %1247 = vmatpush1.bf16.msra.mxu1 %v12669_v36  ;;  %v7504_v35 = vcombine.high %v14716_v32, %v14720_v33  ;;  %v12728_v36 = vld [vmem:[%s18191_s3] ss:$16 sps:$4 sm:$0xff]  }
 0x14e   : > { %1205 = vmatprep.subr.bf16.mxu0 %v12674_v37  ;;  %1248 = vmatprep.subr.bf16.mxu1 %v12677_v38  ;;  %v12730_v37 = vld [vmem:[%s18191_s3 + $0x4] ss:$16 sps:$4 sm:$0xff]   ;;  %v12731_v38 = vld [vmem:[%s18191_s3 + $0x8] ss:$16 sps:$4 sm:$0xff]  }
 0x151   : > { %1206 = vmatpush1.bf16.msra.mxu0 %v12672_v41  ;;  %1249 = vmatpush1.bf16.msra.mxu1 %v12675_v42  ;;  %v12739_v41 = vld [vmem:[%s18191_s3 + $0x2c] ss:$16 sps:$4 sm:$0xff]   ;;  %v12734_v42 = vld [vmem:[%s18191_s3 + $0x20] ss:$16 sps:$4 sm:$0xff]  }
 0x152   : > { %10246 = vmatprep.subr.msk.bf16.mxu0 %vm614_vm7, %v10243_v43  ;;  %10248 = vmatprep.subr.msk.bf16.mxu1 %vm614_vm7, %v10245_v45  ;;  %v12737_v43 = vld [vmem:[%s18191_s3 + $0x28] ss:$16 sps:$4 sm:$0xff]   ;;  %v12742_v45 = vld [vmem:[%s18191_s3 + $0x44] ss:$16 sps:$4 sm:$0xff]  }
 0x155   : > { %1208 = vmatpush1.bf16.msra.mxu0 %v1182_v50  ;;  %1251 = vmatpush1.bf16.msra.mxu1 %v1188_v51  ;;  %v12751_v50 = vld [vmem:[%s18191_s3 + $0x6c] ss:$16 sps:$4 sm:$0xff]   ;;  %v12746_v51 = vld [vmem:[%s18191_s3 + $0x60] ss:$16 sps:$4 sm:$0xff]  }
 0x156   : > { %1480 = vmatprep.subr.bf16.mxu0 %v12684_v48  ;;  %1523 = vmatprep.subr.bf16.mxu1 %v12687_v49  ;;  %v12743_v48 = vld [vmem:[%s18191_s3 + $0x48] ss:$16 sps:$4 sm:$0xff]   ;;  %v12748_v49 = vld [vmem:[%s18191_s3 + $0x64] ss:$16 sps:$4 sm:$0xff]  }
 0x158   : > { %10247 = vmatmul.mubr.msk.bf16.vlgmr.msra.gmra.mrb[8].mxu0 %vm610_vm11, %v14407_v44  ;;  %10249 = vmatmul.mubr.msk.bf16.vlgmr.msra.gmra.mrb[8].mxu1 %vm610_vm11, %v14407_v44 }
 0x159   : > { %1481 = vmatpush1.bf16.msra.mxu0 %v12682_v52  ;;  %1524 = vmatpush1.bf16.msra.mxu1 %v12685_v53  ;;  %v12749_v52 = vld [vmem:[%s18191_s3 + $0x68] ss:$16 sps:$4 sm:$0xff]   ;;  %v12754_v53 = vld [vmem:[%s18191_s3 + $0x84] ss:$16 sps:$4 sm:$0xff]  }
 0x15a   : > { %1482 = vmatprep.subr.bf16.mxu0 %v12690_v54  ;;  %1525 = vmatprep.subr.bf16.mxu1 %v12693_v55  ;;  %v12757_v54 = vld [vmem:[%s18191_s3 + $0x8c] ss:$16 sps:$4 sm:$0xff]   ;;  %v12752_v55 = vld [vmem:[%s18191_s3 + $0x80] ss:$16 sps:$4 sm:$0xff]  }
 0x15b   : > { %1512 = vmatprep.mubr.bf16.mxu0 %v14152_v15  ;;  %1555 = vmatprep.mubr.bf16.mxu1 %v14152_v15 }
 0x15d   : > { %1483 = vmatpush1.bf16.msra.mxu0 %v12688_v56  ;;  %1526 = vmatpush1.bf16.msra.mxu1 %v12691_v57 }
 0x15e   : > { %1484 = vmatprep.subr.bf16.mxu0 %v12696_v58  ;;  %1527 = vmatprep.subr.bf16.mxu1 %v12699_v59  ;;  %v12755_v58 = vld [vmem:[%s18191_s3 + $0x88] ss:$16 sps:$4 sm:$0xff]   ;;  %v12760_v59 = vld [vmem:[%s18191_s3 + $0xa4] ss:$16 sps:$4 sm:$0xff]  }
 0x161   : > { %1485 = vmatpush1.bf16.msra.mxu0 %v12694_v62  ;;  %1528 = vmatpush1.bf16.msra.mxu1 %v12697_v63  ;;  %v12763_v62 = vld [vmem:[%s18191_s3 + $0xac] ss:$16 sps:$4 sm:$0xff]  }
 0x162   : > { %1486 = vmatprep.subr.bf16.mxu0 %v12702_v1  ;;  %1529 = vmatprep.subr.bf16.mxu1 %v12705_v2  ;;  %v12758_v2 = vld [vmem:[%s18191_s3 + $0xa0] ss:$16 sps:$4 sm:$0xff]  }
 0x165   : > { %1487 = vmatpush1.bf16.msra.mxu0 %v12700_v3  ;;  %1530 = vmatpush1.bf16.msra.mxu1 %v12703_v4 }
 0x166   : > { %1488 = vmatprep.subr.bf16.mxu0 %v12708_v7  ;;  %1531 = vmatprep.subr.bf16.mxu1 %v12711_v8  ;;  %v12769_v7 = vld [vmem:[%s18191_s3 + $0xcc] ss:$16 sps:$4 sm:$0xff]   ;;  %v12764_v8 = vld [vmem:[%s18191_s3 + $0xc0] ss:$16 sps:$4 sm:$0xff]  }
 0x169   : > { %1489 = vmatpush1.bf16.msra.mxu0 %v12706_v9  ;;  %1532 = vmatpush1.bf16.msra.mxu1 %v12709_v10  ;;  %v12767_v9 = vld [vmem:[%s18191_s3 + $0xc8] ss:$16 sps:$4 sm:$0xff]   ;;  %v12772_v10 = vld [vmem:[%s18191_s3 + $0xe4] ss:$16 sps:$4 sm:$0xff]  }
 0x16a   : > { %1490 = vmatprep.subr.bf16.mxu0 %v12714_v13  ;;  %1533 = vmatprep.subr.bf16.mxu1 %v12717_v14  ;;  %v12773_v13 = vld [vmem:[%s18191_s3 + $0xe8] ss:$16 sps:$4 sm:$0xff]   ;;  %v12778_v14 = vld [vmem:[%s18191_s3 + $0x104] ss:$16 sps:$4 sm:$0xff]  }
 0x16d   : > { %1491 = vmatpush1.bf16.msra.mxu0 %v12712_v16  ;;  %1534 = vmatpush1.bf16.msra.mxu1 %v12715_v17  ;;  %v12781_v16 = vld [vmem:[%s18191_s3 + $0x10c] ss:$16 sps:$4 sm:$0xff]   ;;  %v12776_v17 = vld [vmem:[%s18191_s3 + $0x100] ss:$16 sps:$4 sm:$0xff]  }
 0x16e   : > { %1492 = vmatprep.subr.bf16.mxu0 %v12720_v18  ;;  %1535 = vmatprep.subr.bf16.mxu1 %v12723_v19  ;;  %v12779_v18 = vld [vmem:[%s18191_s3 + $0x108] ss:$16 sps:$4 sm:$0xff]   ;;  %v12784_v19 = vld [vmem:[%s18191_s3 + $0x124] ss:$16 sps:$4 sm:$0xff]  }
 0x171   : > { %1493 = vmatpush1.bf16.msra.mxu0 %v12718_v20  ;;  %1536 = vmatpush1.bf16.msra.mxu1 %v12721_v21  ;;  %v12787_v20 = vld [vmem:[%s18191_s3 + $0x12c] ss:$16 sps:$4 sm:$0xff]   ;;  %v12782_v21 = vld [vmem:[%s18191_s3 + $0x120] ss:$16 sps:$4 sm:$0xff]  }
 0x172   : > { %10312 = vmatprep.subr.msk.bf16.mxu0 %vm614_vm7, %v10309_v22  ;;  %10314 = vmatprep.subr.msk.bf16.mxu1 %vm614_vm7, %v10311_v23  ;;  %v12785_v22 = vld [vmem:[%s18191_s3 + $0x128] ss:$16 sps:$4 sm:$0xff]   ;;  %v12790_v23 = vld [vmem:[%s18191_s3 + $0x144] ss:$16 sps:$4 sm:$0xff]  }
 0x175   : > { %1495 = vmatpush1.bf16.msra.mxu0 %v1469_v11  ;;  %1538 = vmatpush1.bf16.msra.mxu1 %v1475_v12  ;;  %v12775_v11 = vld [vmem:[%s18191_s3 + $0xec] ss:$16 sps:$4 sm:$0xff]   ;;  %v12770_v12 = vld [vmem:[%s18191_s3 + $0xe0] ss:$16 sps:$4 sm:$0xff]  }
 0x176   : > { %4024 = vmatprep.subr.bf16.mxu0 %v12730_v37  ;;  %4282 = vmatprep.subr.bf16.mxu1 %v12733_v39  ;;  %v12796_v37 = vld [vmem:[%s18191_s3 + $0x164] ss:$16 sps:$4 sm:$0xff]   ;;  %v12794_v39 = vld [vmem:[%s18191_s3 + $0x160] ss:$16 sps:$4 sm:$0xff]  }
 0x178   : > { %10313 = vmatmul.mubr.msk.bf16.vlgmr.msra.gmra.mrb[12].mxu0 %vm610_vm11, %v14407_v44  ;;  %10315 = vmatmul.mubr.msk.bf16.vlgmr.msra.gmra.mrb[12].mxu1 %vm610_vm11, %v14407_v44  ;;  %v14713_v44 = vrot.slane %v7483_v29, %v1582_v27  ;;  %v12788_v29 = vld [vmem:[%s18191_s3 + $0x140] ss:$16 sps:$4 sm:$0xff]  }
 0x179   : > { %4025 = vmatpush1.bf16.msra.mxu0 %v12728_v36  ;;  %4283 = vmatpush1.bf16.msra.mxu1 %v12731_v38  ;;  %v12791_v36 = vld [vmem:[%s18191_s3 + $0x148] ss:$16 sps:$4 sm:$0xff]   ;;  %v12799_v38 = vld [vmem:[%s18191_s3 + $0x16c] ss:$16 sps:$4 sm:$0xff]  }
 0x17a   : > { %v7502_v34 = vcombine.high %v14709_v31, %v14713_v44  ;;  %4026 = vmatprep.subr.bf16.mxu0 %v12736_v40  ;;  %4284 = vmatprep.subr.bf16.mxu1 %v12739_v41  ;;  %v12797_v40 = vld [vmem:[%s18191_s3 + $0x168] ss:$16 sps:$4 sm:$0xff]   ;;  %v12802_v41 = vld [vmem:[%s18191_s3 + $0x184] ss:$16 sps:$4 sm:$0xff]  }
 0x17d   : > { %4027 = vmatpush1.bf16.msra.mxu0 %v12734_v42  ;;  %4285 = vmatpush1.bf16.msra.mxu1 %v12737_v43  ;;  %v12805_v42 = vld [vmem:[%s18191_s3 + $0x18c] ss:$16 sps:$4 sm:$0xff]   ;;  %v12800_v43 = vld [vmem:[%s18191_s3 + $0x180] ss:$16 sps:$4 sm:$0xff]  }
 0x17e   : > { %4028 = vmatprep.subr.bf16.mxu0 %v12742_v45  ;;  %4286 = vmatprep.subr.bf16.mxu1 %v12745_v46 }
 0x181   : > { %4029 = vmatpush1.bf16.msra.mxu0 %v12740_v47  ;;  %4287 = vmatpush1.bf16.msra.mxu1 %v12743_v48  ;;  %v12803_v47 = vld [vmem:[%s18191_s3 + $0x188] ss:$16 sps:$4 sm:$0xff]   ;;  %v12808_v48 = vld [vmem:[%s18191_s3 + $0x1a4] ss:$16 sps:$4 sm:$0xff]  }
 0x182   : > { %4030 = vmatprep.subr.bf16.mxu0 %v12748_v49  ;;  %4288 = vmatprep.subr.bf16.mxu1 %v12751_v50 }
 0x185   : > { %4031 = vmatpush1.bf16.msra.mxu0 %v12746_v51  ;;  %4289 = vmatpush1.bf16.msra.mxu1 %v12749_v52 }
 0x186   : > { %4032 = vmatprep.subr.bf16.mxu0 %v12754_v53  ;;  %4290 = vmatprep.subr.bf16.mxu1 %v12757_v54  ;;  %v12811_v53 = vld [vmem:[%s18191_s3 + $0x1ac] ss:$16 sps:$4 sm:$0xff]  }
 0x189   : > { %4033 = vmatpush1.bf16.msra.mxu0 %v12752_v55  ;;  %4291 = vmatpush1.bf16.msra.mxu1 %v12755_v58 }
 0x18a   : > { %4034 = vmatprep.subr.bf16.mxu0 %v12760_v59  ;;  %4292 = vmatprep.subr.bf16.mxu1 %v12763_v62 }
 0x18d   : > { %4035 = vmatpush1.bf16.msra.mxu0 %v12758_v2  ;;  %4293 = vmatpush1.bf16.msra.mxu1 %v12761_v5 }
 0x18e   : > { %4036 = vmatprep.subr.bf16.mxu0 %v12766_v6  ;;  %4294 = vmatprep.subr.bf16.mxu1 %v12769_v7 }
 0x191   : > { %4037 = vmatpush1.bf16.msra.mxu0 %v12764_v8  ;;  %4295 = vmatpush1.bf16.msra.mxu1 %v12767_v9 }
 0x192   : > { %4038 = vmatprep.subr.bf16.mxu0 %v12772_v10  ;;  %4296 = vmatprep.subr.bf16.mxu1 %v12775_v11 }
 0x195   : > { %4039 = vmatpush1.bf16.msra.mxu0 %v12770_v12  ;;  %4297 = vmatpush1.bf16.msra.mxu1 %v12773_v13 }
 0x196   : > { %4040 = vmatprep.subr.bf16.mxu0 %v12778_v14  ;;  %4298 = vmatprep.subr.bf16.mxu1 %v12781_v16 }
 0x199   : > { %4041 = vmatpush1.bf16.msra.mxu0 %v12776_v17  ;;  %4299 = vmatpush1.bf16.msra.mxu1 %v12779_v18 }
 0x19a   : > { %4042 = vmatprep.subr.bf16.mxu0 %v12784_v19  ;;  %4300 = vmatprep.subr.bf16.mxu1 %v12787_v20  ;;  %v1574_v20 = vld [vmem:[%s18190_s2] sm:$0xf] }
 0x19d   : > { %4043 = vmatpush1.bf16.msra.mxu0 %v12782_v21  ;;  %4301 = vmatpush1.bf16.msra.mxu1 %v12785_v22  ;;  %v12814_v21 = vld [vmem:[%s18191_s3 + $0x1c4] ss:$16 sps:$4 sm:$0xff]   ;;  %v12817_v22 = vld [vmem:[%s18191_s3 + $0x1cc] ss:$16 sps:$4 sm:$0xff]  }
 0x19e   : > { %4044 = vmatprep.subr.bf16.mxu0 %v12790_v23  ;;  %4302 = vmatprep.subr.bf16.mxu1 %v12793_v24  ;;  %v12812_v23 = vld [vmem:[%s18191_s3 + $0x1c0] ss:$16 sps:$4 sm:$0xff]   ;;  %v12815_v24 = vld [vmem:[%s18191_s3 + $0x1c8] ss:$16 sps:$4 sm:$0xff]  }
 0x1a1   : > { %4045 = vmatpush1.bf16.msra.mxu0 %v12788_v29  ;;  %4303 = vmatpush1.bf16.msra.mxu1 %v12791_v36  ;;  %v1579_v29 = vrot.slane %v1574_v20, %v14698_v26  ;;  %v1587_v36 = vrot.slane %v1574_v20, %v14702_v28 }
 0x1a2   : > { %4046 = vmatprep.subr.bf16.mxu0 %v12796_v37  ;;  %4304 = vmatprep.subr.bf16.mxu1 %v12799_v38 }
 0x1a5   : > { %4047 = vmatpush1.bf16.msra.mxu0 %v12794_v39  ;;  %4305 = vmatpush1.bf16.msra.mxu1 %v12797_v40  ;;  %v1583_v39 = vrot.slane %v1574_v20, %v1582_v27  ;;  %v1591_v40 = vrot.slane %v1574_v20, %v1590_v30 }
 0x1a6   : > { %4048 = vmatprep.subr.bf16.mxu0 %v12802_v41  ;;  %4306 = vmatprep.subr.bf16.mxu1 %v12805_v42 }
 0x1a9   : > { %4049 = vmatpush1.bf16.msra.mxu0 %v12800_v43  ;;  %4307 = vmatpush1.bf16.msra.mxu1 %v12803_v47 }
 0x1aa   : > { %4050 = vmatprep.subr.bf16.mxu0 %v12808_v48  ;;  %4308 = vmatprep.subr.bf16.mxu1 %v12811_v53 }
 0x1eb   : > { %v14783_v56 = vpop.f32.mrb[0].mxu0  ;;  %v14785_v57 = vpop.f32.mrb[0].mxu1 }
 0x1ec   : > { %v14793_v60 = vpop.f32.mrb[1].mxu0  ;;  %v14795_v61 = vpop.f32.mrb[1].mxu1 }
 0x1ed   : > { %v14800_v63 = vpop.f32.mrb[2].mxu0  ;;  %v14802_v1 = vpop.f32.mrb[2].mxu1 }
 0x1ee   : > { %v14807_v3 = vpop.f32.mrb[3].mxu0  ;;  %v14809_v4 = vpop.f32.mrb[3].mxu1 }
 0x20b   : > { %v940_v45 = vpop.f32.mrb[4].mxu0  ;;  %v983_v46 = vpop.f32.mrb[4].mxu1 }
 0x20c   : > { %v992_v49 = vmax.f32 %v14783_v56, %v940_v45  ;;  %v994_v50 = vmax.f32 %v14785_v57, %v983_v46  ;;  %v942_v51 = vpop.f32.mrb[5].mxu0  ;;  %v985_v52 = vpop.f32.mrb[5].mxu1  ;;  %v12806_v57 = vld [vmem:[%s18191_s3 + $0x1a0] ss:$16 sps:$4 sm:$0xff]  }
 0x20d   : > { %v993_v54 = vmax.f32 %v14793_v60, %v942_v51  ;;  %v995_v55 = vmax.f32 %v14795_v61, %v985_v52  ;;  %v944_v58 = vpop.f32.mrb[6].mxu0  ;;  %v987_v59 = vpop.f32.mrb[6].mxu1  ;;  %v12809_v60 = vld [vmem:[%s18191_s3 + $0x1a8] ss:$16 sps:$4 sm:$0xff]   ;;  %4051 = vmatpush1.bf16.msra.mxu0 %v12806_v57 }
 0x20e   : > { %v996_v62 = vmax.f32 %v14800_v63, %v944_v58  ;;  %v998_v2 = vmax.f32 %v14802_v1, %v987_v59  ;;  %v946_v56 = vpop.f32.mrb[7].mxu0  ;;  %v989_v5 = vpop.f32.mrb[7].mxu1  ;;  %4309 = vmatpush1.bf16.msra.mxu1 %v12809_v60  ;;  %4052 = vmatprep.subr.bf16.mxu0 %v12814_v21  ;;  %v12821_v60 = vld [vmem:[%s18191_s3 + $0x1e8] ss:$16 sps:$4 sm:$0xff]  }
 0x20f   : > { %v997_v6 = vmax.f32 %v14807_v3, %v946_v56  ;;  %v999_v7 = vmax.f32 %v14809_v4, %v989_v5  ;;  %4310 = vmatprep.subr.bf16.mxu1 %v12817_v22 }
 0x211   : > { %4053 = vmatpush1.bf16.msra.mxu0 %v12812_v23 }
 0x212   : > { %4311 = vmatpush1.bf16.msra.mxu1 %v12815_v24 }
 0x22b   : > { %v1227_v61 = vpop.f32.mrb[8].mxu0  ;;  %v1270_v63 = vpop.f32.mrb[8].mxu1 }
 0x22c   : > { %v1279_v1 = vmax.f32 %v992_v49, %v1227_v61  ;;  %v1281_v8 = vmax.f32 %v994_v50, %v1270_v63  ;;  %v1229_v9 = vpop.f32.mrb[9].mxu0  ;;  %v1272_v10 = vpop.f32.mrb[9].mxu1 }
 0x22d   : > { %v1280_v11 = vmax.f32 %v993_v54, %v1229_v9  ;;  %v1282_v12 = vmax.f32 %v995_v55, %v1272_v10  ;;  %v1231_v3 = vpop.f32.mrb[10].mxu0  ;;  %v1274_v13 = vpop.f32.mrb[10].mxu1 }
 0x22e   : > { %v1283_v4 = vmax.f32 %v996_v62, %v1231_v3  ;;  %v1285_v14 = vmax.f32 %v998_v2, %v1274_v13  ;;  %v1233_v16 = vpop.f32.mrb[11].mxu0  ;;  %v1276_v17 = vpop.f32.mrb[11].mxu1  ;;  %v12820_v62 = vld [vmem:[%s18191_s3 + $0x1e4] ss:$16 sps:$4 sm:$0xff]   ;;  %v12823_v2 = vld [vmem:[%s18191_s3 + $0x1ec] ss:$16 sps:$4 sm:$0xff]  }
 0x22f   : > { %v1284_v18 = vmax.f32 %v997_v6, %v1233_v16  ;;  %v1286_v19 = vmax.f32 %v999_v7, %v1276_v17  ;;  %v12818_v7 = vld [vmem:[%s18191_s3 + $0x1e0] ss:$16 sps:$4 sm:$0xff]   ;;  %4054 = vmatprep.subr.bf16.mxu0 %v12820_v62  ;;  %4312 = vmatprep.subr.bf16.mxu1 %v12823_v2 }
 0x230   : > { %4055 = vmatpush1.bf16.msra.mxu0 %v12818_v7  ;;  %4313 = vmatpush1.bf16.msra.mxu1 %v12821_v60 }
 0x24b   : > { %v1514_v37 = vpop.f32.mrb[12].mxu0  ;;  %v1557_v38 = vpop.f32.mrb[12].mxu1 }
 0x24c   : > { %v1566_v41 = vmax.f32 %v1279_v1, %v1514_v37  ;;  %v1568_v42 = vmax.f32 %v1281_v8, %v1557_v38  ;;  %v1516_v43 = vpop.f32.mrb[13].mxu0  ;;  %v1559_v45 = vpop.f32.mrb[13].mxu1 }
 0x24d   : > { %v1567_v46 = vmax.f32 %v1280_v11, %v1516_v43  ;;  %v1569_v47 = vmax.f32 %v1282_v12, %v1559_v45  ;;  %v1518_v48 = vpop.f32.mrb[14].mxu0  ;;  %v1561_v49 = vpop.f32.mrb[14].mxu1 }
 0x24e   : > { %v1596_v50 = vadd.f32 %v1579_v29, %v1566_v41  ;;  %v1598_v51 = vadd.f32 %v1587_v36, %v1568_v42  ;;  %v1570_v52 = vmax.f32 %v1283_v4, %v1518_v48  ;;  %v1572_v53 = vmax.f32 %v1285_v14, %v1561_v49  ;;  %v1520_v54 = vpop.f32.mrb[15].mxu0  ;;  %v1563_v55 = vpop.f32.mrb[15].mxu1  ;;  %v12826_v4 = vld [vmem:[%s18191_s3 + $0x204] ss:$16 sps:$4 sm:$0xff]   ;;  %v12829_v14 = vld [vmem:[%s18191_s3 + $0x20c] ss:$16 sps:$4 sm:$0xff]  }
 0x24f   : > { %v1597_v27 = vadd.f32 %v1583_v39, %v1567_v46  ;;  %v1599_v58 = vadd.f32 %v1591_v40, %v1569_v47  ;;  %v1571_v59 = vmax.f32 %v1284_v18, %v1520_v54  ;;  %v1573_v30 = vmax.f32 %v1286_v19, %v1563_v55  ;;  %4067 = vmatprep.subr.bf16.mxu0 %v12826_v4 }
 0x250   : > { %v1604_v56 = vmax.f32 %v1596_v50, 0.0  ;;  %v1606_v5 = vmax.f32 %v1598_v51, 0.0  ;;  %v1600_v57 = vadd.f32 %v1579_v29, %v1570_v52  ;;  %v1602_v6 = vadd.f32 %v1587_v36, %v1572_v53  ;;  %4325 = vmatprep.subr.bf16.mxu1 %v12829_v14  ;;  %v12824_v14 = vld [vmem:[%s18191_s3 + $0x200] ss:$16 sps:$4 sm:$0xff]  }
 0x251   : > { %v1605_v61 = vmax.f32 %v1597_v27, 0.0  ;;  %v1607_v63 = vmax.f32 %v1599_v58, 0.0  ;;  %v1601_v1 = vadd.f32 %v1583_v39, %v1571_v59  ;;  %v1603_v8 = vadd.f32 %v1591_v40, %v1573_v30 }
 0x252   : > { %v1608_v9 = vmax.f32 %v1600_v57, 0.0  ;;  %v1610_v10 = vmax.f32 %v1602_v6, 0.0 }
 0x253   : > { %v1609_v11 = vmax.f32 %v1601_v1, 0.0  ;;  %v1611_v12 = vmax.f32 %v1603_v8, 0.0  ;;  %v12524_v3 = vpack.i.bf16 %v1605_v61, %v1604_v56  ;;  %v12534_v13 = vpack.i.bf16 %v1607_v63, %v1606_v5  ;;  %v13513_v8 = vld [vmem:[%s18191_s3 + $0x104c] ss:$16 sps:$4 sm:$0xff]  }
 0x255   : > { %12525 = vrot.lane.b32.xlu0 %v12524_v3, %s14156_s27  ;;  %v12529_v16 = vpack.i.bf16 %v1609_v11, %v1608_v9  ;;  %v12539_v17 = vpack.i.bf16 %v1611_v12, %v1610_v10 }
 0x257   : > { %12530 = vrot.lane.b32.xlu1 %v12529_v16, %s14156_s27  ;;  %v12827_v16 = vld [vmem:[%s18191_s3 + $0x208] ss:$16 sps:$4 sm:$0xff]  }
 0x259   : > { %12535 = vrot.lane.b32.xlu0 %v12534_v13, %s14156_s27 }
 0x25b   : > { %12540 = vrot.lane.b32.xlu1 %v12539_v17, %s14156_s27  ;;  %s14084_s27 = scalar_lea.vmem %s18148_s24, 16 }
 0x25c   : > { %p14085_p11 = scmp.ne.s32.totalorder %s18148_s24, %s14084_s27  ;;  %p14092_p1 = scmp.lt.s32.totalorder %s14090_s21, %s14084_s27 }
 0x25e   : > { %p14086_p12 = pnand %p14085_p11, %p14249_p5  ;;  %p14093_p2 = por %p14092_p1, %p14091_p0 }
 0x260   : > { %p14087_p13 = pneg %p14086_p12 }
 0x262   : > { %p14094_p3 = pnand %p14093_p2, %p14087_p13 }
 0x2c7   : > { %v12526_v18 = vpop.permute.xlu0 %12525 }
 0x2c8   : > { %v12528_v19 = vunpack.i.h.bf16 %v12526_v18  ;;  %v12527_v20 = vunpack.i.l.bf16 %v12526_v18 }
 0x2c9   : > { %v12531_v21 = vpop.permute.xlu1 %12530 }
 0x2ca   : > { %v1637_v22 = vsel %vm1636_vm12, %v12527_v20, %v12528_v19  ;;  %v1651_v23 = vsel %vm1636_vm12, 0.0, %v12527_v20  ;;  %v12533_v24 = vunpack.i.h.bf16 %v12531_v21  ;;  %v12532_v29 = vunpack.i.l.bf16 %v12531_v21 }
 0x2cb   : > { %v1660_v36 = vrot.slane %v1651_v23, 7  ;;  %v1661_v37 = vrot.slane %v1637_v22, 7  ;;  %v1684_v38 = vrot.slane %v1651_v23, 1  ;;  %v1687_v39 = vrot.slane %v1637_v22, 1  ;;  %v12536_v40 = vpop.permute.xlu0 %12535 }
 0x2cc   : > { %v1640_v41 = vsel %vm1636_vm12, %v12532_v29, %v12533_v24  ;;  %v1652_v42 = vsel %vm1636_vm12, 0.0, %v12532_v29  ;;  %v14961_v43 = vpack.c.bf16 %v12532_v29, %v12527_v20  ;;  %v12538_v45 = vunpack.i.h.bf16 %v12536_v40  ;;  %v12835_v20 = vld [vmem:[%s18191_s3 + $0x22c] ss:$16 sps:$4 sm:$0xff]  }
 0x2cd   : > { %v1664_v46 = vrot.slane %v1652_v42, 7  ;;  %v1666_v47 = vrot.slane %v1640_v41, 7  ;;  %v1685_v48 = vrot.slane %v1652_v42, 1  ;;  %v1688_v49 = vrot.slane %v1640_v41, 1  ;;  %v12541_v50 = vpop.permute.xlu1 %12540  ;;  %v12836_v42 = vld [vmem:[%s18191_s3 + $0x240] ss:$16 sps:$4 sm:$0xff]  }
 0x2ce   : > { %v12537_v51 = vunpack.i.l.bf16 %v12536_v40  ;;  %v12543_v52 = vunpack.i.h.bf16 %v12541_v50  ;;  %v12542_v53 = vunpack.i.l.bf16 %v12541_v50  ;;  %v14963_v54 = vpack.c.bf16 %v1640_v41, %v1637_v22  ;;  %v12838_v40 = vld [vmem:[%s18191_s3 + $0x244] ss:$16 sps:$4 sm:$0xff]   ;;  %v12841_v41 = vld [vmem:[%s18191_s3 + $0x24c] ss:$16 sps:$4 sm:$0xff]  }
 0x2cf   : > { %v1665_v55 = vsel %vm335_vm3, %v1660_v36, %v1664_v46  ;;  %v1686_v27 = vsel %vm345_vm4, %v1684_v38, %v1685_v48  ;;  %v1667_v58 = vsel %vm335_vm3, %v1661_v37, %v1666_v47  ;;  %v1689_v59 = vsel %vm345_vm4, %v1687_v39, %v1688_v49  ;;  %v12830_v38 = vld [vmem:[%s18191_s3 + $0x220] ss:$16 sps:$4 sm:$0xff]   ;;  %v12833_v39 = vld [vmem:[%s18191_s3 + $0x228] ss:$16 sps:$4 sm:$0xff]   ;;  %v12844_v46 = vld [vmem:[%s18191_s3 + $0x264] ss:$16 sps:$4 sm:$0xff]  }
 0x2d0   : > { %v14970_v30 = vpack.c.bf16 %v1685_v48, %v1686_v27  ;;  %v1638_v62 = vsel %vm1636_vm12, %v12528_v19, %v12537_v51  ;;  %v1639_v2 = vsel %vm1636_vm12, %v12537_v51, %v12538_v45  ;;  %v1641_v56 = vsel %vm1636_vm12, %v12533_v24, %v12542_v53  ;;  %v12832_v19 = vld [vmem:[%s18191_s3 + $0x224] ss:$16 sps:$4 sm:$0xff]   ;;  %v12839_v45 = vld [vmem:[%s18191_s3 + $0x248] ss:$16 sps:$4 sm:$0xff]   ;;  %v12847_v47 = vld [vmem:[%s18191_s3 + $0x26c] ss:$16 sps:$4 sm:$0xff]  }
 0x2d1   : > { %v1654_v5 = vsel %vm1653_vm13, %v1639_v2, 0.0  ;;  %v1662_v57 = vrot.slane %v1638_v62, 7  ;;  %v1690_v6 = vrot.slane %v1638_v62, 1  ;;  %v1642_v7 = vsel %vm1636_vm12, %v12542_v53, %v12543_v52  ;;  %v12842_v48 = vld [vmem:[%s18191_s3 + $0x260] ss:$16 sps:$4 sm:$0xff]  }
 0x2d2   : > { %v1663_v60 = vrot.slane %v1654_v5, 7  ;;  %v1693_v61 = vrot.slane %v1654_v5, 1  ;;  %v1655_v63 = vsel %vm1653_vm13, %v1642_v7, 0.0  ;;  %v1668_v1 = vrot.slane %v1641_v56, 7  ;;  %v12850_v50 = vld [vmem:[%s18191_s3 + $0x284] ss:$16 sps:$4 sm:$0xff]  }
 0x2d3   : > { %v1670_v9 = vrot.slane %v1655_v63, 7  ;;  %v1691_v10 = vrot.slane %v1641_v56, 1  ;;  %v1694_v11 = vrot.slane %v1655_v63, 1  ;;  %v14983_v12 = vpack.c.bf16 %v1641_v56, %v1638_v62  ;;  %v12853_v51 = vld [vmem:[%s18191_s3 + $0x28c] ss:$16 sps:$4 sm:$0xff]  }
 0x2d4   : > { %v1669_v3 = vsel %vm335_vm3, %v1662_v57, %v1668_v1  ;;  %v14986_v13 = vpack.c.bf16 %v1642_v7, %v1639_v2  ;;  %v14988_v4 = vpack.c.bf16 %v1667_v58, %v1661_v37  ;;  %v14996_v17 = vpack.c.bf16 %v1665_v55, %v1660_v36  ;;  %v12848_v52 = vld [vmem:[%s18191_s3 + $0x280] ss:$16 sps:$4 sm:$0xff]   ;;  %v12851_v53 = vld [vmem:[%s18191_s3 + $0x288] ss:$16 sps:$4 sm:$0xff]   ;;  %v12856_v55 = vld [vmem:[%s18191_s3 + $0x2a4] ss:$16 sps:$4 sm:$0xff]  }
 0x2d5   : > { %v1692_v18 = vsel %vm345_vm4, %v1690_v6, %v1691_v10  ;;  %v1671_v21 = vsel %vm335_vm3, %v1663_v60, %v1670_v9  ;;  %v15006_v22 = vpack.c.bf16 %v1669_v3, %v1662_v57  ;;  %v15008_v23 = vpack.c.bf16 %v1688_v49, %v1689_v59  ;;  %v12845_v49 = vld [vmem:[%s18191_s3 + $0x268] ss:$16 sps:$4 sm:$0xff]   ;;  %v12859_v27 = vld [vmem:[%s18191_s3 + $0x2ac] ss:$16 sps:$4 sm:$0xff]   ;;  %v12854_v58 = vld [vmem:[%s18191_s3 + $0x2a0] ss:$16 sps:$4 sm:$0xff]  }
 0x2d6   : > { %v15010_v24 = vpack.c.bf16 %v1691_v10, %v1692_v18  ;;  %10703 = vmatprep.mubr.msk.bf16.mxu0 %vm14979_vm15, %v14988_v4  ;;  %10739 = vmatprep.mubr.msk.bf16.mxu1 %vm14979_vm15, %v14988_v4  ;;  %v15018_v29 = vpack.c.bf16 %v1671_v21, %v1663_v60  ;;  %v1695_v36 = vsel %vm345_vm4, %v1693_v61, %v1694_v11  ;;  %v12857_v59 = vld [vmem:[%s18191_s3 + $0x2a8] ss:$16 sps:$4 sm:$0xff]   ;;  %v12862_v62 = vld [vmem:[%s18191_s3 + $0x2c4] ss:$16 sps:$4 sm:$0xff]   ;;  %v12865_v2 = vld [vmem:[%s18191_s3 + $0x2cc] ss:$16 sps:$4 sm:$0xff]  }
 0x2d7   : > { %10707 = vmatmul.mubr.msk.bf16.vlgmr.msra.gmra.mrb[16].mxu0 %vm14979_vm15, %v14996_v17  ;;  %10743 = vmatmul.mubr.msk.bf16.vlgmr.msra.gmra.mrb[16].mxu1 %vm14979_vm15, %v14996_v17  ;;  %v15027_v37 = vpack.c.bf16 %v1694_v11, %v1695_v36  ;;  %v12860_v56 = vld [vmem:[%s18191_s3 + $0x2c0] ss:$16 sps:$4 sm:$0xff]   ;;  %v12863_v5 = vld [vmem:[%s18191_s3 + $0x2c8] ss:$16 sps:$4 sm:$0xff]   ;;  %v12868_v57 = vld [vmem:[%s18191_s3 + $0x2e4] ss:$16 sps:$4 sm:$0xff]  }
 0x2d8   : > { %4068 = vmatpush1.bf16.msra.mxu0 %v12824_v14  ;;  %4326 = vmatpush1.bf16.msra.mxu1 %v12827_v16  ;;  %v12871_v6 = vld [vmem:[%s18191_s3 + $0x2ec] ss:$16 sps:$4 sm:$0xff]   ;;  %v12866_v7 = vld [vmem:[%s18191_s3 + $0x2e0] ss:$16 sps:$4 sm:$0xff]   ;;  %v12869_v60 = vld [vmem:[%s18191_s3 + $0x2e8] ss:$16 sps:$4 sm:$0xff]  }
 0x2d9   : > { %4069 = vmatprep.subr.bf16.mxu0 %v12832_v19  ;;  %4327 = vmatprep.subr.bf16.mxu1 %v12835_v20  ;;  %v12874_v61 = vld [vmem:[%s18191_s3 + $0x304] ss:$16 sps:$4 sm:$0xff]   ;;  %v12877_v63 = vld [vmem:[%s18191_s3 + $0x30c] ss:$16 sps:$4 sm:$0xff]   ;;  %v12872_v1 = vld [vmem:[%s18191_s3 + $0x300] ss:$16 sps:$4 sm:$0xff]  }
 0x2da   : > { %10711 = vmatprep.mubr.msk.bf16.mxu0 %vm14979_vm15, %v15018_v29  ;;  %10747 = vmatprep.mubr.msk.bf16.mxu1 %vm14979_vm15, %v15018_v29  ;;  %v12875_v9 = vld [vmem:[%s18191_s3 + $0x308] ss:$16 sps:$4 sm:$0xff]   ;;  %v12880_v10 = vld [vmem:[%s18191_s3 + $0x324] ss:$16 sps:$4 sm:$0xff]   ;;  %v12883_v11 = vld [vmem:[%s18191_s3 + $0x32c] ss:$16 sps:$4 sm:$0xff]  }
 0x2db   : > { %v12878_v3 = vld [vmem:[%s18191_s3 + $0x320] ss:$16 sps:$4 sm:$0xff]   ;;  %v12881_v14 = vld [vmem:[%s18191_s3 + $0x328] ss:$16 sps:$4 sm:$0xff]   ;;  %v12886_v16 = vld [vmem:[%s18191_s3 + $0x344] ss:$16 sps:$4 sm:$0xff]  }
 0x2dc   : > { %4070 = vmatpush1.bf16.msra.mxu0 %v12830_v38  ;;  %4328 = vmatpush1.bf16.msra.mxu1 %v12833_v39  ;;  %v12889_v18 = vld [vmem:[%s18191_s3 + $0x34c] ss:$16 sps:$4 sm:$0xff]   ;;  %v12884_v19 = vld [vmem:[%s18191_s3 + $0x340] ss:$16 sps:$4 sm:$0xff]   ;;  %v12887_v20 = vld [vmem:[%s18191_s3 + $0x348] ss:$16 sps:$4 sm:$0xff]  }
 0x2dd   : > { %4071 = vmatprep.subr.bf16.mxu0 %v12838_v40  ;;  %4329 = vmatprep.subr.bf16.mxu1 %v12841_v41  ;;  %v12892_v21 = vld [vmem:[%s18191_s3 + $0x364] ss:$16 sps:$4 sm:$0xff]   ;;  %v12895_v36 = vld [vmem:[%s18191_s3 + $0x36c] ss:$16 sps:$4 sm:$0xff]   ;;  %v12890_v38 = vld [vmem:[%s18191_s3 + $0x360] ss:$16 sps:$4 sm:$0xff]  }
 0x2de   : > { %v12893_v39 = vld [vmem:[%s18191_s3 + $0x368] ss:$16 sps:$4 sm:$0xff]   ;;  %v12898_v40 = vld [vmem:[%s18191_s3 + $0x384] ss:$16 sps:$4 sm:$0xff]   ;;  %v12901_v41 = vld [vmem:[%s18191_s3 + $0x38c] ss:$16 sps:$4 sm:$0xff]  }
 0x2df   : > { %vm15428_vm3 = vmpackc.low %vm1653_vm13, %vm1653_vm13  ;;  %vm14159_vm4 = vmmov 0  }
 0x2e0   : > { %4072 = vmatpush1.bf16.msra.mxu0 %v12836_v42  ;;  %4330 = vmatpush1.bf16.msra.mxu1 %v12839_v45  ;;  %v12896_v42 = vld [vmem:[%s18191_s3 + $0x380] ss:$16 sps:$4 sm:$0xff]   ;;  %v12899_v45 = vld [vmem:[%s18191_s3 + $0x388] ss:$16 sps:$4 sm:$0xff]  }
 0x2e1   : > { %4073 = vmatprep.subr.bf16.mxu0 %v12844_v46  ;;  %4331 = vmatprep.subr.bf16.mxu1 %v12847_v47  ;;  %v12904_v46 = vld [vmem:[%s18191_s3 + $0x3a4] ss:$16 sps:$4 sm:$0xff]   ;;  %v12907_v47 = vld [vmem:[%s18191_s3 + $0x3ac] ss:$16 sps:$4 sm:$0xff]  }
 0x2e4   : > { %4074 = vmatpush1.bf16.msra.mxu0 %v12842_v48  ;;  %4332 = vmatpush1.bf16.msra.mxu1 %v12845_v49  ;;  %v12902_v48 = vld [vmem:[%s18191_s3 + $0x3a0] ss:$16 sps:$4 sm:$0xff]   ;;  %v12905_v49 = vld [vmem:[%s18191_s3 + $0x3a8] ss:$16 sps:$4 sm:$0xff]  }
 0x2e5   : > { %4075 = vmatprep.subr.bf16.mxu0 %v12850_v50  ;;  %4333 = vmatprep.subr.bf16.mxu1 %v12853_v51  ;;  %v12910_v50 = vld [vmem:[%s18191_s3 + $0x3c4] ss:$16 sps:$4 sm:$0xff]   ;;  %v12913_v51 = vld [vmem:[%s18191_s3 + $0x3cc] ss:$16 sps:$4 sm:$0xff]  }
 0x2e8   : > { %4076 = vmatpush1.bf16.msra.mxu0 %v12848_v52  ;;  %4334 = vmatpush1.bf16.msra.mxu1 %v12851_v53  ;;  %v12908_v52 = vld [vmem:[%s18191_s3 + $0x3c0] ss:$16 sps:$4 sm:$0xff]   ;;  %v12911_v53 = vld [vmem:[%s18191_s3 + $0x3c8] ss:$16 sps:$4 sm:$0xff]  }
 0x2e9   : > { %4077 = vmatprep.subr.bf16.mxu0 %v12856_v55  ;;  %4335 = vmatprep.subr.bf16.mxu1 %v12859_v27  ;;  %v12916_v55 = vld [vmem:[%s18191_s3 + $0x3e4] ss:$16 sps:$4 sm:$0xff]   ;;  %v12919_v27 = vld [vmem:[%s18191_s3 + $0x3ec] ss:$16 sps:$4 sm:$0xff]  }
 0x2ec   : > { %4078 = vmatpush1.bf16.msra.mxu0 %v12854_v58  ;;  %4336 = vmatpush1.bf16.msra.mxu1 %v12857_v59  ;;  %v12914_v58 = vld [vmem:[%s18191_s3 + $0x3e0] ss:$16 sps:$4 sm:$0xff]   ;;  %v12917_v59 = vld [vmem:[%s18191_s3 + $0x3e8] ss:$16 sps:$4 sm:$0xff]  }
 0x2ed   : > { %4079 = vmatprep.subr.bf16.mxu0 %v12862_v62  ;;  %4337 = vmatprep.subr.bf16.mxu1 %v12865_v2  ;;  %v12922_v62 = vld [vmem:[%s18191_s3 + $0x404] ss:$16 sps:$4 sm:$0xff]   ;;  %v12925_v2 = vld [vmem:[%s18191_s3 + $0x40c] ss:$16 sps:$4 sm:$0xff]  }
 0x2f0   : > { %4080 = vmatpush1.bf16.msra.mxu0 %v12860_v56  ;;  %4338 = vmatpush1.bf16.msra.mxu1 %v12863_v5  ;;  %v12920_v56 = vld [vmem:[%s18191_s3 + $0x400] ss:$16 sps:$4 sm:$0xff]   ;;  %v12923_v5 = vld [vmem:[%s18191_s3 + $0x408] ss:$16 sps:$4 sm:$0xff]  }
 0x2f1   : > { %4081 = vmatprep.subr.bf16.mxu0 %v12868_v57  ;;  %4339 = vmatprep.subr.bf16.mxu1 %v12871_v6  ;;  %v12928_v57 = vld [vmem:[%s18191_s3 + $0x424] ss:$16 sps:$4 sm:$0xff]   ;;  %v12931_v6 = vld [vmem:[%s18191_s3 + $0x42c] ss:$16 sps:$4 sm:$0xff]  }
 0x2f4   : > { %4082 = vmatpush1.bf16.msra.mxu0 %v12866_v7  ;;  %4340 = vmatpush1.bf16.msra.mxu1 %v12869_v60  ;;  %v12926_v7 = vld [vmem:[%s18191_s3 + $0x420] ss:$16 sps:$4 sm:$0xff]   ;;  %v12929_v60 = vld [vmem:[%s18191_s3 + $0x428] ss:$16 sps:$4 sm:$0xff]  }
 0x2f5   : > { %4083 = vmatprep.subr.bf16.mxu0 %v12874_v61  ;;  %4341 = vmatprep.subr.bf16.mxu1 %v12877_v63  ;;  %v12934_v61 = vld [vmem:[%s18191_s3 + $0x444] ss:$16 sps:$4 sm:$0xff]   ;;  %v12937_v63 = vld [vmem:[%s18191_s3 + $0x44c] ss:$16 sps:$4 sm:$0xff]  }
 0x2f8   : > { %4084 = vmatpush1.bf16.msra.mxu0 %v12872_v1  ;;  %4342 = vmatpush1.bf16.msra.mxu1 %v12875_v9  ;;  %v12932_v1 = vld [vmem:[%s18191_s3 + $0x440] ss:$16 sps:$4 sm:$0xff]   ;;  %v12935_v9 = vld [vmem:[%s18191_s3 + $0x448] ss:$16 sps:$4 sm:$0xff]  }
 0x2f9   : > { %4085 = vmatprep.subr.bf16.mxu0 %v12880_v10  ;;  %4343 = vmatprep.subr.bf16.mxu1 %v12883_v11  ;;  %v12940_v10 = vld [vmem:[%s18191_s3 + $0x464] ss:$16 sps:$4 sm:$0xff]   ;;  %v12943_v11 = vld [vmem:[%s18191_s3 + $0x46c] ss:$16 sps:$4 sm:$0xff]  }
 0x2fc   : > { %4086 = vmatpush1.bf16.msra.mxu0 %v12878_v3  ;;  %4344 = vmatpush1.bf16.msra.mxu1 %v12881_v14  ;;  %v12938_v3 = vld [vmem:[%s18191_s3 + $0x460] ss:$16 sps:$4 sm:$0xff]   ;;  %v12941_v14 = vld [vmem:[%s18191_s3 + $0x468] ss:$16 sps:$4 sm:$0xff]  }
 0x2fd   : > { %4087 = vmatprep.subr.bf16.mxu0 %v12886_v16  ;;  %4345 = vmatprep.subr.bf16.mxu1 %v12889_v18  ;;  %v12946_v16 = vld [vmem:[%s18191_s3 + $0x484] ss:$16 sps:$4 sm:$0xff]   ;;  %v12949_v18 = vld [vmem:[%s18191_s3 + $0x48c] ss:$16 sps:$4 sm:$0xff]  }
 0x300   : > { %4088 = vmatpush1.bf16.msra.mxu0 %v12884_v19  ;;  %4346 = vmatpush1.bf16.msra.mxu1 %v12887_v20  ;;  %v12944_v19 = vld [vmem:[%s18191_s3 + $0x480] ss:$16 sps:$4 sm:$0xff]   ;;  %v12947_v20 = vld [vmem:[%s18191_s3 + $0x488] ss:$16 sps:$4 sm:$0xff]  }
 0x301   : > { %4089 = vmatprep.subr.bf16.mxu0 %v12892_v21  ;;  %4347 = vmatprep.subr.bf16.mxu1 %v12895_v36  ;;  %v12952_v21 = vld [vmem:[%s18191_s3 + $0x4a4] ss:$16 sps:$4 sm:$0xff]   ;;  %v12955_v36 = vld [vmem:[%s18191_s3 + $0x4ac] ss:$16 sps:$4 sm:$0xff]  }
 0x304   : > { %4090 = vmatpush1.bf16.msra.mxu0 %v12890_v38  ;;  %4348 = vmatpush1.bf16.msra.mxu1 %v12893_v39  ;;  %v12950_v38 = vld [vmem:[%s18191_s3 + $0x4a0] ss:$16 sps:$4 sm:$0xff]   ;;  %v12953_v39 = vld [vmem:[%s18191_s3 + $0x4a8] ss:$16 sps:$4 sm:$0xff]  }
 0x305   : > { %4091 = vmatprep.subr.bf16.mxu0 %v12898_v40  ;;  %4349 = vmatprep.subr.bf16.mxu1 %v12901_v41  ;;  %v12958_v40 = vld [vmem:[%s18191_s3 + $0x4c4] ss:$16 sps:$4 sm:$0xff]   ;;  %v12961_v41 = vld [vmem:[%s18191_s3 + $0x4cc] ss:$16 sps:$4 sm:$0xff]  }
 0x308   : > { %4092 = vmatpush1.bf16.msra.mxu0 %v12896_v42  ;;  %4350 = vmatpush1.bf16.msra.mxu1 %v12899_v45  ;;  %v12956_v42 = vld [vmem:[%s18191_s3 + $0x4c0] ss:$16 sps:$4 sm:$0xff]   ;;  %v12959_v45 = vld [vmem:[%s18191_s3 + $0x4c8] ss:$16 sps:$4 sm:$0xff]  }
 0x309   : > { %4093 = vmatprep.subr.bf16.mxu0 %v12904_v46  ;;  %4351 = vmatprep.subr.bf16.mxu1 %v12907_v47  ;;  %v12964_v46 = vld [vmem:[%s18191_s3 + $0x4e4] ss:$16 sps:$4 sm:$0xff]   ;;  %v12967_v47 = vld [vmem:[%s18191_s3 + $0x4ec] ss:$16 sps:$4 sm:$0xff]  }
 0x30c   : > { %4094 = vmatpush1.bf16.msra.mxu0 %v12902_v48  ;;  %4352 = vmatpush1.bf16.msra.mxu1 %v12905_v49  ;;  %v12962_v48 = vld [vmem:[%s18191_s3 + $0x4e0] ss:$16 sps:$4 sm:$0xff]   ;;  %v12965_v49 = vld [vmem:[%s18191_s3 + $0x4e8] ss:$16 sps:$4 sm:$0xff]  }
 0x30d   : > { %4095 = vmatprep.subr.bf16.mxu0 %v12910_v50  ;;  %4353 = vmatprep.subr.bf16.mxu1 %v12913_v51  ;;  %v12970_v50 = vld [vmem:[%s18191_s3 + $0x504] ss:$16 sps:$4 sm:$0xff]   ;;  %v12973_v51 = vld [vmem:[%s18191_s3 + $0x50c] ss:$16 sps:$4 sm:$0xff]  }
 0x310   : > { %4096 = vmatpush1.bf16.msra.mxu0 %v12908_v52  ;;  %4354 = vmatpush1.bf16.msra.mxu1 %v12911_v53  ;;  %v12968_v52 = vld [vmem:[%s18191_s3 + $0x500] ss:$16 sps:$4 sm:$0xff]   ;;  %v12971_v53 = vld [vmem:[%s18191_s3 + $0x508] ss:$16 sps:$4 sm:$0xff]  }
 0x311   : > { %4097 = vmatprep.subr.bf16.mxu0 %v12916_v55  ;;  %4355 = vmatprep.subr.bf16.mxu1 %v12919_v27  ;;  %v12976_v55 = vld [vmem:[%s18191_s3 + $0x524] ss:$16 sps:$4 sm:$0xff]   ;;  %v12979_v27 = vld [vmem:[%s18191_s3 + $0x52c] ss:$16 sps:$4 sm:$0xff]  }
 0x314   : > { %4098 = vmatpush1.bf16.msra.mxu0 %v12914_v58  ;;  %4356 = vmatpush1.bf16.msra.mxu1 %v12917_v59  ;;  %v12974_v58 = vld [vmem:[%s18191_s3 + $0x520] ss:$16 sps:$4 sm:$0xff]   ;;  %v12977_v59 = vld [vmem:[%s18191_s3 + $0x528] ss:$16 sps:$4 sm:$0xff]  }
 0x315   : > { %4110 = vmatprep.subr.bf16.mxu0 %v12922_v62  ;;  %4368 = vmatprep.subr.bf16.mxu1 %v12925_v2  ;;  %v12982_v62 = vld [vmem:[%s18191_s3 + $0x544] ss:$16 sps:$4 sm:$0xff]   ;;  %v12985_v2 = vld [vmem:[%s18191_s3 + $0x54c] ss:$16 sps:$4 sm:$0xff]  }
 0x317   : > { %10715 = vmatmul.mubr.msk.bf16.vlgmr.msra.gmra.mrb[16].mxu0 %vm14979_vm15, %v15006_v22  ;;  %10751 = vmatmul.mubr.msk.bf16.vlgmr.msra.gmra.mrb[16].mxu1 %vm14979_vm15, %v15006_v22 }
 0x318   : > { %4111 = vmatpush1.bf16.msra.mxu0 %v12920_v56  ;;  %4142 = vmatprep.mubr.bf16.mxu0 %v14963_v54  ;;  %v12980_v56 = vld [vmem:[%s18191_s3 + $0x540] ss:$16 sps:$4 sm:$0xff]  }
 0x319   : > { %4369 = vmatpush1.bf16.msra.mxu1 %v12923_v5  ;;  %4400 = vmatprep.mubr.bf16.mxu1 %v14963_v54  ;;  %v12983_v5 = vld [vmem:[%s18191_s3 + $0x548] ss:$16 sps:$4 sm:$0xff]  }
 0x31a   : > { %4112 = vmatprep.subr.bf16.mxu0 %v12928_v57  ;;  %4370 = vmatprep.subr.bf16.mxu1 %v12931_v6  ;;  %v12988_v57 = vld [vmem:[%s18191_s3 + $0x564] ss:$16 sps:$4 sm:$0xff]   ;;  %v12991_v6 = vld [vmem:[%s18191_s3 + $0x56c] ss:$16 sps:$4 sm:$0xff]  }
 0x31c   : > { %4113 = vmatpush1.bf16.msra.mxu0 %v12926_v7  ;;  %v12986_v7 = vld [vmem:[%s18191_s3 + $0x560] ss:$16 sps:$4 sm:$0xff]  }
 0x31d   : > { %4371 = vmatpush1.bf16.msra.mxu1 %v12929_v60  ;;  %4114 = vmatprep.subr.bf16.mxu0 %v12934_v61  ;;  %v12989_v60 = vld [vmem:[%s18191_s3 + $0x568] ss:$16 sps:$4 sm:$0xff]   ;;  %v12994_v61 = vld [vmem:[%s18191_s3 + $0x584] ss:$16 sps:$4 sm:$0xff]  }
 0x31e   : > { %4372 = vmatprep.subr.bf16.mxu1 %v12937_v63  ;;  %v12997_v63 = vld [vmem:[%s18191_s3 + $0x58c] ss:$16 sps:$4 sm:$0xff]  }
 0x320   : > { %4115 = vmatpush1.bf16.msra.mxu0 %v12932_v1  ;;  %v12992_v1 = vld [vmem:[%s18191_s3 + $0x580] ss:$16 sps:$4 sm:$0xff]  }
 0x321   : > { %4373 = vmatpush1.bf16.msra.mxu1 %v12935_v9  ;;  %4116 = vmatprep.subr.bf16.mxu0 %v12940_v10  ;;  %v12995_v9 = vld [vmem:[%s18191_s3 + $0x588] ss:$16 sps:$4 sm:$0xff]   ;;  %v13000_v10 = vld [vmem:[%s18191_s3 + $0x5a4] ss:$16 sps:$4 sm:$0xff]  }
 0x322   : > { %4374 = vmatprep.subr.bf16.mxu1 %v12943_v11  ;;  %v13003_v11 = vld [vmem:[%s18191_s3 + $0x5ac] ss:$16 sps:$4 sm:$0xff]  }
 0x324   : > { %4117 = vmatpush1.bf16.msra.mxu0 %v12938_v3  ;;  %v12998_v3 = vld [vmem:[%s18191_s3 + $0x5a0] ss:$16 sps:$4 sm:$0xff]  }
 0x325   : > { %4375 = vmatpush1.bf16.msra.mxu1 %v12941_v14  ;;  %4118 = vmatprep.subr.bf16.mxu0 %v12946_v16  ;;  %v13001_v14 = vld [vmem:[%s18191_s3 + $0x5a8] ss:$16 sps:$4 sm:$0xff]   ;;  %v13006_v16 = vld [vmem:[%s18191_s3 + $0x5c4] ss:$16 sps:$4 sm:$0xff]  }
 0x326   : > { %4376 = vmatprep.subr.bf16.mxu1 %v12949_v18  ;;  %v13009_v18 = vld [vmem:[%s18191_s3 + $0x5cc] ss:$16 sps:$4 sm:$0xff]  }
 0x328   : > { %4119 = vmatpush1.bf16.msra.mxu0 %v12944_v19  ;;  %v13004_v19 = vld [vmem:[%s18191_s3 + $0x5c0] ss:$16 sps:$4 sm:$0xff]  }
 0x329   : > { %4377 = vmatpush1.bf16.msra.mxu1 %v12947_v20  ;;  %4120 = vmatprep.subr.bf16.mxu0 %v12952_v21  ;;  %v13007_v20 = vld [vmem:[%s18191_s3 + $0x5c8] ss:$16 sps:$4 sm:$0xff]   ;;  %v13012_v21 = vld [vmem:[%s18191_s3 + $0x5e4] ss:$16 sps:$4 sm:$0xff]  }
 0x32a   : > { %4378 = vmatprep.subr.bf16.mxu1 %v12955_v36  ;;  %v13015_v36 = vld [vmem:[%s18191_s3 + $0x5ec] ss:$16 sps:$4 sm:$0xff]  }
 0x32c   : > { %4121 = vmatpush1.bf16.msra.mxu0 %v12950_v38  ;;  %v13010_v38 = vld [vmem:[%s18191_s3 + $0x5e0] ss:$16 sps:$4 sm:$0xff]  }
 0x32d   : > { %4379 = vmatpush1.bf16.msra.mxu1 %v12953_v39  ;;  %4122 = vmatprep.subr.bf16.mxu0 %v12958_v40  ;;  %v13013_v39 = vld [vmem:[%s18191_s3 + $0x5e8] ss:$16 sps:$4 sm:$0xff]   ;;  %v13018_v40 = vld [vmem:[%s18191_s3 + $0x604] ss:$16 sps:$4 sm:$0xff]  }
 0x32e   : > { %4380 = vmatprep.subr.bf16.mxu1 %v12961_v41  ;;  %v13021_v41 = vld [vmem:[%s18191_s3 + $0x60c] ss:$16 sps:$4 sm:$0xff]  }
 0x330   : > { %4123 = vmatpush1.bf16.msra.mxu0 %v12956_v42  ;;  %v13604_v42 = vld [vmem:[%s18191_s3 + $0x1240] ss:$16 sps:$4 sm:$0xff]  }
 0x331   : > { %4381 = vmatpush1.bf16.msra.mxu1 %v12959_v45  ;;  %4124 = vmatprep.subr.bf16.mxu0 %v12964_v46  ;;  %v13016_v45 = vld [vmem:[%s18191_s3 + $0x600] ss:$16 sps:$4 sm:$0xff]   ;;  %v13019_v46 = vld [vmem:[%s18191_s3 + $0x608] ss:$16 sps:$4 sm:$0xff]  }
 0x332   : > { %4382 = vmatprep.subr.bf16.mxu1 %v12967_v47  ;;  %v13615_v47 = vld [vmem:[%s18191_s3 + $0x126c] ss:$16 sps:$4 sm:$0xff]  }
 0x334   : > { %4125 = vmatpush1.bf16.msra.mxu0 %v12962_v48  ;;  %v13024_v48 = vld [vmem:[%s18191_s3 + $0x624] ss:$16 sps:$4 sm:$0xff]  }
 0x335   : > { %4383 = vmatpush1.bf16.msra.mxu1 %v12965_v49  ;;  %4126 = vmatprep.subr.bf16.mxu0 %v12970_v50  ;;  %v13027_v49 = vld [vmem:[%s18191_s3 + $0x62c] ss:$16 sps:$4 sm:$0xff]   ;;  %v13022_v50 = vld [vmem:[%s18191_s3 + $0x620] ss:$16 sps:$4 sm:$0xff]  }
 0x336   : > { %4384 = vmatprep.subr.bf16.mxu1 %v12973_v51  ;;  %v13025_v51 = vld [vmem:[%s18191_s3 + $0x628] ss:$16 sps:$4 sm:$0xff]  }
 0x338   : > { %4127 = vmatpush1.bf16.msra.mxu0 %v12968_v52  ;;  %v13030_v52 = vld [vmem:[%s18191_s3 + $0x644] ss:$16 sps:$4 sm:$0xff]  }
 0x339   : > { %4385 = vmatpush1.bf16.msra.mxu1 %v12971_v53  ;;  %4128 = vmatprep.subr.bf16.mxu0 %v12976_v55  ;;  %v13033_v53 = vld [vmem:[%s18191_s3 + $0x64c] ss:$16 sps:$4 sm:$0xff]   ;;  %v13028_v55 = vld [vmem:[%s18191_s3 + $0x640] ss:$16 sps:$4 sm:$0xff]  }
 0x33a   : > { %4386 = vmatprep.subr.bf16.mxu1 %v12979_v27  ;;  %v13031_v27 = vld [vmem:[%s18191_s3 + $0x648] ss:$16 sps:$4 sm:$0xff]  }
 0x33c   : > { %4129 = vmatpush1.bf16.msra.mxu0 %v12974_v58  ;;  %v13036_v58 = vld [vmem:[%s18191_s3 + $0x664] ss:$16 sps:$4 sm:$0xff]  }
 0x33d   : > { %4387 = vmatpush1.bf16.msra.mxu1 %v12977_v59  ;;  %4130 = vmatprep.subr.bf16.mxu0 %v12982_v62  ;;  %v13039_v59 = vld [vmem:[%s18191_s3 + $0x66c] ss:$16 sps:$4 sm:$0xff]   ;;  %v13034_v62 = vld [vmem:[%s18191_s3 + $0x660] ss:$16 sps:$4 sm:$0xff]  }
 0x33e   : > { %4388 = vmatprep.subr.bf16.mxu1 %v12985_v2  ;;  %v13037_v2 = vld [vmem:[%s18191_s3 + $0x668] ss:$16 sps:$4 sm:$0xff]  }
 0x340   : > { %4131 = vmatpush1.bf16.msra.mxu0 %v12980_v56  ;;  %v13042_v56 = vld [vmem:[%s18191_s3 + $0x684] ss:$16 sps:$4 sm:$0xff]  }
 0x341   : > { %4389 = vmatpush1.bf16.msra.mxu1 %v12983_v5  ;;  %4132 = vmatprep.subr.bf16.mxu0 %v12988_v57  ;;  %v13045_v5 = vld [vmem:[%s18191_s3 + $0x68c] ss:$16 sps:$4 sm:$0xff]   ;;  %v13040_v57 = vld [vmem:[%s18191_s3 + $0x680] ss:$16 sps:$4 sm:$0xff]  }
 0x342   : > { %4390 = vmatprep.subr.bf16.mxu1 %v12991_v6  ;;  %v13043_v6 = vld [vmem:[%s18191_s3 + $0x688] ss:$16 sps:$4 sm:$0xff]  }
 0x344   : > { %4133 = vmatpush1.bf16.msra.mxu0 %v12986_v7  ;;  %v13048_v7 = vld [vmem:[%s18191_s3 + $0x6a4] ss:$16 sps:$4 sm:$0xff]  }
 0x345   : > { %4391 = vmatpush1.bf16.msra.mxu1 %v12989_v60  ;;  %4134 = vmatprep.subr.bf16.mxu0 %v12994_v61  ;;  %v13051_v60 = vld [vmem:[%s18191_s3 + $0x6ac] ss:$16 sps:$4 sm:$0xff]   ;;  %v13046_v61 = vld [vmem:[%s18191_s3 + $0x6a0] ss:$16 sps:$4 sm:$0xff]  }
 0x346   : > { %4392 = vmatprep.subr.bf16.mxu1 %v12997_v63  ;;  %v13049_v63 = vld [vmem:[%s18191_s3 + $0x6a8] ss:$16 sps:$4 sm:$0xff]  }
 0x348   : > { %4135 = vmatpush1.bf16.msra.mxu0 %v12992_v1  ;;  %v13054_v1 = vld [vmem:[%s18191_s3 + $0x6c4] ss:$16 sps:$4 sm:$0xff]  }
 0x349   : > { %4393 = vmatpush1.bf16.msra.mxu1 %v12995_v9  ;;  %4136 = vmatprep.subr.bf16.mxu0 %v13000_v10  ;;  %v13057_v9 = vld [vmem:[%s18191_s3 + $0x6cc] ss:$16 sps:$4 sm:$0xff]   ;;  %v13052_v10 = vld [vmem:[%s18191_s3 + $0x6c0] ss:$16 sps:$4 sm:$0xff]  }
 0x34a   : > { %4394 = vmatprep.subr.bf16.mxu1 %v13003_v11  ;;  %v13055_v11 = vld [vmem:[%s18191_s3 + $0x6c8] ss:$16 sps:$4 sm:$0xff]  }
 0x34c   : > { %4137 = vmatpush1.bf16.msra.mxu0 %v12998_v3  ;;  %v13060_v3 = vld [vmem:[%s18191_s3 + $0x6e4] ss:$16 sps:$4 sm:$0xff]  }
 0x34d   : > { %4395 = vmatpush1.bf16.msra.mxu1 %v13001_v14  ;;  %4138 = vmatprep.subr.bf16.mxu0 %v13006_v16  ;;  %v13063_v14 = vld [vmem:[%s18191_s3 + $0x6ec] ss:$16 sps:$4 sm:$0xff]   ;;  %v13058_v16 = vld [vmem:[%s18191_s3 + $0x6e0] ss:$16 sps:$4 sm:$0xff]  }
 0x34e   : > { %4396 = vmatprep.subr.bf16.mxu1 %v13009_v18  ;;  %v13061_v18 = vld [vmem:[%s18191_s3 + $0x6e8] ss:$16 sps:$4 sm:$0xff]  }
 0x350   : > { %4139 = vmatpush1.bf16.msra.mxu0 %v13004_v19  ;;  %v13066_v19 = vld [vmem:[%s18191_s3 + $0x704] ss:$16 sps:$4 sm:$0xff]  }
 0x351   : > { %4397 = vmatpush1.bf16.msra.mxu1 %v13007_v20  ;;  %4140 = vmatprep.subr.bf16.mxu0 %v13012_v21  ;;  %v13069_v20 = vld [vmem:[%s18191_s3 + $0x70c] ss:$16 sps:$4 sm:$0xff]   ;;  %v13064_v21 = vld [vmem:[%s18191_s3 + $0x700] ss:$16 sps:$4 sm:$0xff]  }
 0x352   : > { %4398 = vmatprep.subr.bf16.mxu1 %v13015_v36  ;;  %v13067_v36 = vld [vmem:[%s18191_s3 + $0x708] ss:$16 sps:$4 sm:$0xff]  }
 0x354   : > { %4141 = vmatpush1.bf16.msra.mxu0 %v13010_v38  ;;  %v13072_v38 = vld [vmem:[%s18191_s3 + $0x724] ss:$16 sps:$4 sm:$0xff]  }
 0x355   : > { %4399 = vmatpush1.bf16.msra.mxu1 %v13013_v39  ;;  %4153 = vmatprep.subr.bf16.mxu0 %v13018_v40  ;;  %v13075_v39 = vld [vmem:[%s18191_s3 + $0x72c] ss:$16 sps:$4 sm:$0xff]   ;;  %v13070_v40 = vld [vmem:[%s18191_s3 + $0x720] ss:$16 sps:$4 sm:$0xff]  }
 0x356   : > { %4411 = vmatprep.subr.bf16.mxu1 %v13021_v41  ;;  %v13073_v41 = vld [vmem:[%s18191_s3 + $0x728] ss:$16 sps:$4 sm:$0xff]  }
 0x357   : > { %10720 = vmatmul.mubr.msk.bf16.vlgmr.msra.gmra.mrb[16].mxu0 %vm15416_vm1, %v14961_v43 }
 0x358   : > { %10756 = vmatmul.mubr.msk.bf16.vlgmr.msra.gmra.mrb[16].mxu1 %vm15416_vm1, %v14961_v43  ;;  %4154 = vmatpush1.bf16.msra.mxu0 %v13016_v45  ;;  %v13078_v45 = vld [vmem:[%s18191_s3 + $0x744] ss:$16 sps:$4 sm:$0xff]  }
 0x359   : > { %10723 = vmatprep.mubr.msk.bf16.mxu0 %vm15428_vm3, %v14986_v13  ;;  %4412 = vmatpush1.bf16.msra.mxu1 %v13019_v46  ;;  %v13081_v46 = vld [vmem:[%s18191_s3 + $0x74c] ss:$16 sps:$4 sm:$0xff]  }
 0x35a   : > { %10759 = vmatprep.mubr.msk.bf16.mxu1 %vm15428_vm3, %v14986_v13  ;;  %4155 = vmatprep.subr.bf16.mxu0 %v13024_v48  ;;  %v13076_v48 = vld [vmem:[%s18191_s3 + $0x740] ss:$16 sps:$4 sm:$0xff]  }
 0x35b   : > { %4413 = vmatprep.subr.bf16.mxu1 %v13027_v49  ;;  %v13079_v49 = vld [vmem:[%s18191_s3 + $0x748] ss:$16 sps:$4 sm:$0xff]  }
 0x35c   : > { %4156 = vmatpush1.bf16.msra.mxu0 %v13022_v50  ;;  %v13084_v50 = vld [vmem:[%s18191_s3 + $0x764] ss:$16 sps:$4 sm:$0xff]  }
 0x35d   : > { %4414 = vmatpush1.bf16.msra.mxu1 %v13025_v51  ;;  %4157 = vmatprep.subr.bf16.mxu0 %v13030_v52  ;;  %v13087_v51 = vld [vmem:[%s18191_s3 + $0x76c] ss:$16 sps:$4 sm:$0xff]   ;;  %v13082_v52 = vld [vmem:[%s18191_s3 + $0x760] ss:$16 sps:$4 sm:$0xff]  }
 0x35e   : > { %4415 = vmatprep.subr.bf16.mxu1 %v13033_v53  ;;  %v13085_v53 = vld [vmem:[%s18191_s3 + $0x768] ss:$16 sps:$4 sm:$0xff]  }
 0x360   : > { %4158 = vmatpush1.bf16.msra.mxu0 %v13028_v55  ;;  %v13090_v55 = vld [vmem:[%s18191_s3 + $0x784] ss:$16 sps:$4 sm:$0xff]  }
 0x361   : > { %4416 = vmatpush1.bf16.msra.mxu1 %v13031_v27  ;;  %4159 = vmatprep.subr.bf16.mxu0 %v13036_v58  ;;  %v13093_v27 = vld [vmem:[%s18191_s3 + $0x78c] ss:$16 sps:$4 sm:$0xff]   ;;  %v13088_v58 = vld [vmem:[%s18191_s3 + $0x780] ss:$16 sps:$4 sm:$0xff]  }
 0x362   : > { %4417 = vmatprep.subr.bf16.mxu1 %v13039_v59  ;;  %v13091_v59 = vld [vmem:[%s18191_s3 + $0x788] ss:$16 sps:$4 sm:$0xff]  }
 0x364   : > { %4160 = vmatpush1.bf16.msra.mxu0 %v13034_v62  ;;  %v13096_v62 = vld [vmem:[%s18191_s3 + $0x7a4] ss:$16 sps:$4 sm:$0xff]  }
 0x365   : > { %4418 = vmatpush1.bf16.msra.mxu1 %v13037_v2  ;;  %4161 = vmatprep.subr.bf16.mxu0 %v13042_v56  ;;  %v13099_v2 = vld [vmem:[%s18191_s3 + $0x7ac] ss:$16 sps:$4 sm:$0xff]   ;;  %v13094_v56 = vld [vmem:[%s18191_s3 + $0x7a0] ss:$16 sps:$4 sm:$0xff]  }
 0x366   : > { %4419 = vmatprep.subr.bf16.mxu1 %v13045_v5  ;;  %v13097_v5 = vld [vmem:[%s18191_s3 + $0x7a8] ss:$16 sps:$4 sm:$0xff]  }
 0x368   : > { %4162 = vmatpush1.bf16.msra.mxu0 %v13040_v57  ;;  %v13102_v57 = vld [vmem:[%s18191_s3 + $0x7c4] ss:$16 sps:$4 sm:$0xff]  }
 0x369   : > { %4420 = vmatpush1.bf16.msra.mxu1 %v13043_v6  ;;  %4163 = vmatprep.subr.bf16.mxu0 %v13048_v7  ;;  %v13105_v6 = vld [vmem:[%s18191_s3 + $0x7cc] ss:$16 sps:$4 sm:$0xff]   ;;  %v13100_v7 = vld [vmem:[%s18191_s3 + $0x7c0] ss:$16 sps:$4 sm:$0xff]  }
 0x36a   : > { %4421 = vmatprep.subr.bf16.mxu1 %v13051_v60  ;;  %v13103_v60 = vld [vmem:[%s18191_s3 + $0x7c8] ss:$16 sps:$4 sm:$0xff]  }
 0x36c   : > { %4164 = vmatpush1.bf16.msra.mxu0 %v13046_v61  ;;  %v13108_v61 = vld [vmem:[%s18191_s3 + $0x7e4] ss:$16 sps:$4 sm:$0xff]  }
 0x36d   : > { %4422 = vmatpush1.bf16.msra.mxu1 %v13049_v63  ;;  %4165 = vmatprep.subr.bf16.mxu0 %v13054_v1  ;;  %v13111_v63 = vld [vmem:[%s18191_s3 + $0x7ec] ss:$16 sps:$4 sm:$0xff]   ;;  %v13106_v1 = vld [vmem:[%s18191_s3 + $0x7e0] ss:$16 sps:$4 sm:$0xff]  }
 0x36e   : > { %4423 = vmatprep.subr.bf16.mxu1 %v13057_v9  ;;  %v13109_v9 = vld [vmem:[%s18191_s3 + $0x7e8] ss:$16 sps:$4 sm:$0xff]  }
 0x370   : > { %4166 = vmatpush1.bf16.msra.mxu0 %v13052_v10  ;;  %v13114_v10 = vld [vmem:[%s18191_s3 + $0x804] ss:$16 sps:$4 sm:$0xff]  }
 0x371   : > { %4424 = vmatpush1.bf16.msra.mxu1 %v13055_v11  ;;  %4167 = vmatprep.subr.bf16.mxu0 %v13060_v3  ;;  %v13117_v11 = vld [vmem:[%s18191_s3 + $0x80c] ss:$16 sps:$4 sm:$0xff]   ;;  %v13112_v3 = vld [vmem:[%s18191_s3 + $0x800] ss:$16 sps:$4 sm:$0xff]  }
 0x372   : > { %4425 = vmatprep.subr.bf16.mxu1 %v13063_v14  ;;  %v13115_v14 = vld [vmem:[%s18191_s3 + $0x808] ss:$16 sps:$4 sm:$0xff]  }
 0x374   : > { %4168 = vmatpush1.bf16.msra.mxu0 %v13058_v16  ;;  %v13120_v16 = vld [vmem:[%s18191_s3 + $0x824] ss:$16 sps:$4 sm:$0xff]  }
 0x375   : > { %4426 = vmatpush1.bf16.msra.mxu1 %v13061_v18  ;;  %4169 = vmatprep.subr.bf16.mxu0 %v13066_v19  ;;  %v13123_v18 = vld [vmem:[%s18191_s3 + $0x82c] ss:$16 sps:$4 sm:$0xff]   ;;  %v13118_v19 = vld [vmem:[%s18191_s3 + $0x820] ss:$16 sps:$4 sm:$0xff]  }
 0x376   : > { %4427 = vmatprep.subr.bf16.mxu1 %v13069_v20  ;;  %v13121_v20 = vld [vmem:[%s18191_s3 + $0x828] ss:$16 sps:$4 sm:$0xff]  }
 0x378   : > { %4170 = vmatpush1.bf16.msra.mxu0 %v13064_v21  ;;  %v13126_v21 = vld [vmem:[%s18191_s3 + $0x844] ss:$16 sps:$4 sm:$0xff]  }
 0x379   : > { %4428 = vmatpush1.bf16.msra.mxu1 %v13067_v36  ;;  %4171 = vmatprep.subr.bf16.mxu0 %v13072_v38  ;;  %v13129_v36 = vld [vmem:[%s18191_s3 + $0x84c] ss:$16 sps:$4 sm:$0xff]   ;;  %v13124_v38 = vld [vmem:[%s18191_s3 + $0x840] ss:$16 sps:$4 sm:$0xff]  }
 0x37a   : > { %4429 = vmatprep.subr.bf16.mxu1 %v13075_v39  ;;  %v13127_v39 = vld [vmem:[%s18191_s3 + $0x848] ss:$16 sps:$4 sm:$0xff]  }
 0x37c   : > { %4172 = vmatpush1.bf16.msra.mxu0 %v13070_v40  ;;  %v13132_v40 = vld [vmem:[%s18191_s3 + $0x864] ss:$16 sps:$4 sm:$0xff]  }
 0x37d   : > { %4430 = vmatpush1.bf16.msra.mxu1 %v13073_v41  ;;  %4173 = vmatprep.subr.bf16.mxu0 %v13078_v45  ;;  %v13135_v41 = vld [vmem:[%s18191_s3 + $0x86c] ss:$16 sps:$4 sm:$0xff]   ;;  %v13130_v45 = vld [vmem:[%s18191_s3 + $0x860] ss:$16 sps:$4 sm:$0xff]  }
 0x37e   : > { %4431 = vmatprep.subr.bf16.mxu1 %v13081_v46  ;;  %v13133_v46 = vld [vmem:[%s18191_s3 + $0x868] ss:$16 sps:$4 sm:$0xff]  }
 0x380   : > { %4174 = vmatpush1.bf16.msra.mxu0 %v13076_v48  ;;  %v13138_v48 = vld [vmem:[%s18191_s3 + $0x884] ss:$16 sps:$4 sm:$0xff]  }
 0x381   : > { %4432 = vmatpush1.bf16.msra.mxu1 %v13079_v49  ;;  %4175 = vmatprep.subr.bf16.mxu0 %v13084_v50  ;;  %v13141_v49 = vld [vmem:[%s18191_s3 + $0x88c] ss:$16 sps:$4 sm:$0xff]   ;;  %v13136_v50 = vld [vmem:[%s18191_s3 + $0x880] ss:$16 sps:$4 sm:$0xff]  }
 0x382   : > { %4433 = vmatprep.subr.bf16.mxu1 %v13087_v51  ;;  %v13139_v51 = vld [vmem:[%s18191_s3 + $0x888] ss:$16 sps:$4 sm:$0xff]  }
 0x384   : > { %4176 = vmatpush1.bf16.msra.mxu0 %v13082_v52  ;;  %v13144_v52 = vld [vmem:[%s18191_s3 + $0x8a4] ss:$16 sps:$4 sm:$0xff]  }
 0x385   : > { %4434 = vmatpush1.bf16.msra.mxu1 %v13085_v53  ;;  %4177 = vmatprep.subr.bf16.mxu0 %v13090_v55  ;;  %v13147_v53 = vld [vmem:[%s18191_s3 + $0x8ac] ss:$16 sps:$4 sm:$0xff]   ;;  %v13142_v55 = vld [vmem:[%s18191_s3 + $0x8a0] ss:$16 sps:$4 sm:$0xff]  }
 0x386   : > { %4435 = vmatprep.subr.bf16.mxu1 %v13093_v27  ;;  %v13145_v27 = vld [vmem:[%s18191_s3 + $0x8a8] ss:$16 sps:$4 sm:$0xff]  }
 0x388   : > { %4178 = vmatpush1.bf16.msra.mxu0 %v13088_v58  ;;  %v13150_v58 = vld [vmem:[%s18191_s3 + $0x8c4] ss:$16 sps:$4 sm:$0xff]  }
 0x389   : > { %4436 = vmatpush1.bf16.msra.mxu1 %v13091_v59  ;;  %4179 = vmatprep.subr.bf16.mxu0 %v13096_v62  ;;  %v13153_v59 = vld [vmem:[%s18191_s3 + $0x8cc] ss:$16 sps:$4 sm:$0xff]   ;;  %v13148_v62 = vld [vmem:[%s18191_s3 + $0x8c0] ss:$16 sps:$4 sm:$0xff]  }
 0x38a   : > { %4437 = vmatprep.subr.bf16.mxu1 %v13099_v2  ;;  %v13151_v2 = vld [vmem:[%s18191_s3 + $0x8c8] ss:$16 sps:$4 sm:$0xff]  }
 0x38c   : > { %4180 = vmatpush1.bf16.msra.mxu0 %v13094_v56  ;;  %v13156_v56 = vld [vmem:[%s18191_s3 + $0x8e4] ss:$16 sps:$4 sm:$0xff]  }
 0x38d   : > { %4438 = vmatpush1.bf16.msra.mxu1 %v13097_v5  ;;  %4181 = vmatprep.subr.bf16.mxu0 %v13102_v57  ;;  %v13159_v5 = vld [vmem:[%s18191_s3 + $0x8ec] ss:$16 sps:$4 sm:$0xff]   ;;  %v13154_v57 = vld [vmem:[%s18191_s3 + $0x8e0] ss:$16 sps:$4 sm:$0xff]  }
 0x38e   : > { %4439 = vmatprep.subr.bf16.mxu1 %v13105_v6  ;;  %v13157_v6 = vld [vmem:[%s18191_s3 + $0x8e8] ss:$16 sps:$4 sm:$0xff]  }
 0x390   : > { %4182 = vmatpush1.bf16.msra.mxu0 %v13100_v7  ;;  %v13162_v7 = vld [vmem:[%s18191_s3 + $0x904] ss:$16 sps:$4 sm:$0xff]  }
 0x391   : > { %4440 = vmatpush1.bf16.msra.mxu1 %v13103_v60  ;;  %4183 = vmatprep.subr.bf16.mxu0 %v13108_v61  ;;  %v13165_v60 = vld [vmem:[%s18191_s3 + $0x90c] ss:$16 sps:$4 sm:$0xff]   ;;  %v13160_v61 = vld [vmem:[%s18191_s3 + $0x900] ss:$16 sps:$4 sm:$0xff]  }
 0x392   : > { %4441 = vmatprep.subr.bf16.mxu1 %v13111_v63  ;;  %v13163_v63 = vld [vmem:[%s18191_s3 + $0x908] ss:$16 sps:$4 sm:$0xff]  }
 0x394   : > { %4184 = vmatpush1.bf16.msra.mxu0 %v13106_v1  ;;  %v13168_v1 = vld [vmem:[%s18191_s3 + $0x924] ss:$16 sps:$4 sm:$0xff]  }
 0x395   : > { %4442 = vmatpush1.bf16.msra.mxu1 %v13109_v9  ;;  %4196 = vmatprep.subr.bf16.mxu0 %v13114_v10  ;;  %v13171_v9 = vld [vmem:[%s18191_s3 + $0x92c] ss:$16 sps:$4 sm:$0xff]   ;;  %v13166_v10 = vld [vmem:[%s18191_s3 + $0x920] ss:$16 sps:$4 sm:$0xff]  }
 0x396   : > { %4454 = vmatprep.subr.bf16.mxu1 %v13117_v11  ;;  %v13169_v11 = vld [vmem:[%s18191_s3 + $0x928] ss:$16 sps:$4 sm:$0xff]  }
 0x397   : > { %4186 = vmatmul.mubr.bf16.vlgmr.msra.gmra.mrb[16].mxu0 %v14983_v12 }
 0x398   : > { %4444 = vmatmul.mubr.bf16.vlgmr.msra.gmra.mrb[16].mxu1 %v14983_v12  ;;  %4197 = vmatpush1.bf16.msra.mxu0 %v13112_v3  ;;  %v13174_v3 = vld [vmem:[%s18191_s3 + $0x944] ss:$16 sps:$4 sm:$0xff]  }
 0x399   : > { %10726 = vmatprep.mubr.msk.bf16.mxu0 %vm14263_vm2, %v15008_v23  ;;  %4455 = vmatpush1.bf16.msra.mxu1 %v13115_v14  ;;  %v13177_v14 = vld [vmem:[%s18191_s3 + $0x94c] ss:$16 sps:$4 sm:$0xff]  }
 0x39a   : > { %10762 = vmatprep.mubr.msk.bf16.mxu1 %vm14263_vm2, %v15008_v23  ;;  %4198 = vmatprep.subr.bf16.mxu0 %v13120_v16  ;;  %v13172_v16 = vld [vmem:[%s18191_s3 + $0x940] ss:$16 sps:$4 sm:$0xff]  }
 0x39b   : > { %4456 = vmatprep.subr.bf16.mxu1 %v13123_v18  ;;  %v13175_v18 = vld [vmem:[%s18191_s3 + $0x948] ss:$16 sps:$4 sm:$0xff]  }
 0x39c   : > { %4199 = vmatpush1.bf16.msra.mxu0 %v13118_v19  ;;  %v13180_v19 = vld [vmem:[%s18191_s3 + $0x964] ss:$16 sps:$4 sm:$0xff]  }
 0x39d   : > { %4457 = vmatpush1.bf16.msra.mxu1 %v13121_v20  ;;  %4200 = vmatprep.subr.bf16.mxu0 %v13126_v21  ;;  %v13183_v20 = vld [vmem:[%s18191_s3 + $0x96c] ss:$16 sps:$4 sm:$0xff]   ;;  %v13178_v21 = vld [vmem:[%s18191_s3 + $0x960] ss:$16 sps:$4 sm:$0xff]  }
 0x39e   : > { %4458 = vmatprep.subr.bf16.mxu1 %v13129_v36  ;;  %v13181_v36 = vld [vmem:[%s18191_s3 + $0x968] ss:$16 sps:$4 sm:$0xff]  }
 0x3a0   : > { %4201 = vmatpush1.bf16.msra.mxu0 %v13124_v38  ;;  %v13186_v38 = vld [vmem:[%s18191_s3 + $0x984] ss:$16 sps:$4 sm:$0xff]  }
 0x3a1   : > { %4459 = vmatpush1.bf16.msra.mxu1 %v13127_v39  ;;  %4202 = vmatprep.subr.bf16.mxu0 %v13132_v40  ;;  %v13189_v39 = vld [vmem:[%s18191_s3 + $0x98c] ss:$16 sps:$4 sm:$0xff]   ;;  %v13184_v40 = vld [vmem:[%s18191_s3 + $0x980] ss:$16 sps:$4 sm:$0xff]  }
 0x3a2   : > { %4460 = vmatprep.subr.bf16.mxu1 %v13135_v41  ;;  %v13187_v41 = vld [vmem:[%s18191_s3 + $0x988] ss:$16 sps:$4 sm:$0xff]  }
 0x3a4   : > { %4203 = vmatpush1.bf16.msra.mxu0 %v13130_v45  ;;  %v13192_v45 = vld [vmem:[%s18191_s3 + $0x9a4] ss:$16 sps:$4 sm:$0xff]  }
 0x3a5   : > { %4461 = vmatpush1.bf16.msra.mxu1 %v13133_v46  ;;  %4204 = vmatprep.subr.bf16.mxu0 %v13138_v48  ;;  %v13195_v46 = vld [vmem:[%s18191_s3 + $0x9ac] ss:$16 sps:$4 sm:$0xff]   ;;  %v13190_v48 = vld [vmem:[%s18191_s3 + $0x9a0] ss:$16 sps:$4 sm:$0xff]  }
 0x3a6   : > { %4462 = vmatprep.subr.bf16.mxu1 %v13141_v49  ;;  %v13193_v49 = vld [vmem:[%s18191_s3 + $0x9a8] ss:$16 sps:$4 sm:$0xff]  }
 0x3a8   : > { %4205 = vmatpush1.bf16.msra.mxu0 %v13136_v50  ;;  %v13198_v50 = vld [vmem:[%s18191_s3 + $0x9c4] ss:$16 sps:$4 sm:$0xff]  }
 0x3a9   : > { %4463 = vmatpush1.bf16.msra.mxu1 %v13139_v51  ;;  %4206 = vmatprep.subr.bf16.mxu0 %v13144_v52  ;;  %v13201_v51 = vld [vmem:[%s18191_s3 + $0x9cc] ss:$16 sps:$4 sm:$0xff]   ;;  %v13196_v52 = vld [vmem:[%s18191_s3 + $0x9c0] ss:$16 sps:$4 sm:$0xff]  }
 0x3aa   : > { %4464 = vmatprep.subr.bf16.mxu1 %v13147_v53  ;;  %v13199_v53 = vld [vmem:[%s18191_s3 + $0x9c8] ss:$16 sps:$4 sm:$0xff]  }
 0x3ac   : > { %4207 = vmatpush1.bf16.msra.mxu0 %v13142_v55  ;;  %v13204_v55 = vld [vmem:[%s18191_s3 + $0x9e4] ss:$16 sps:$4 sm:$0xff]  }
 0x3ad   : > { %4465 = vmatpush1.bf16.msra.mxu1 %v13145_v27  ;;  %4208 = vmatprep.subr.bf16.mxu0 %v13150_v58  ;;  %v13207_v27 = vld [vmem:[%s18191_s3 + $0x9ec] ss:$16 sps:$4 sm:$0xff]   ;;  %v13202_v58 = vld [vmem:[%s18191_s3 + $0x9e0] ss:$16 sps:$4 sm:$0xff]  }
 0x3ae   : > { %4466 = vmatprep.subr.bf16.mxu1 %v13153_v59  ;;  %v13205_v59 = vld [vmem:[%s18191_s3 + $0x9e8] ss:$16 sps:$4 sm:$0xff]  }
 0x3b0   : > { %4209 = vmatpush1.bf16.msra.mxu0 %v13148_v62  ;;  %v13210_v62 = vld [vmem:[%s18191_s3 + $0xa04] ss:$16 sps:$4 sm:$0xff]  }
 0x3b1   : > { %4467 = vmatpush1.bf16.msra.mxu1 %v13151_v2  ;;  %4210 = vmatprep.subr.bf16.mxu0 %v13156_v56  ;;  %v13213_v2 = vld [vmem:[%s18191_s3 + $0xa0c] ss:$16 sps:$4 sm:$0xff]   ;;  %v13208_v56 = vld [vmem:[%s18191_s3 + $0xa00] ss:$16 sps:$4 sm:$0xff]  }
 0x3b2   : > { %4468 = vmatprep.subr.bf16.mxu1 %v13159_v5  ;;  %v13211_v5 = vld [vmem:[%s18191_s3 + $0xa08] ss:$16 sps:$4 sm:$0xff]  }
 0x3b4   : > { %4211 = vmatpush1.bf16.msra.mxu0 %v13154_v57  ;;  %v13216_v57 = vld [vmem:[%s18191_s3 + $0xa24] ss:$16 sps:$4 sm:$0xff]  }
 0x3b5   : > { %4469 = vmatpush1.bf16.msra.mxu1 %v13157_v6  ;;  %4212 = vmatprep.subr.bf16.mxu0 %v13162_v7  ;;  %v13219_v6 = vld [vmem:[%s18191_s3 + $0xa2c] ss:$16 sps:$4 sm:$0xff]   ;;  %v13214_v7 = vld [vmem:[%s18191_s3 + $0xa20] ss:$16 sps:$4 sm:$0xff]  }
 0x3b6   : > { %4470 = vmatprep.subr.bf16.mxu1 %v13165_v60  ;;  %v13217_v60 = vld [vmem:[%s18191_s3 + $0xa28] ss:$16 sps:$4 sm:$0xff]  }
 0x3b8   : > { %4213 = vmatpush1.bf16.msra.mxu0 %v13160_v61  ;;  %v13222_v61 = vld [vmem:[%s18191_s3 + $0xa44] ss:$16 sps:$4 sm:$0xff]  }
 0x3b9   : > { %4471 = vmatpush1.bf16.msra.mxu1 %v13163_v63  ;;  %4214 = vmatprep.subr.bf16.mxu0 %v13168_v1  ;;  %v13225_v63 = vld [vmem:[%s18191_s3 + $0xa4c] ss:$16 sps:$4 sm:$0xff]   ;;  %v13220_v1 = vld [vmem:[%s18191_s3 + $0xa40] ss:$16 sps:$4 sm:$0xff]  }
 0x3ba   : > { %4472 = vmatprep.subr.bf16.mxu1 %v13171_v9  ;;  %v13223_v9 = vld [vmem:[%s18191_s3 + $0xa48] ss:$16 sps:$4 sm:$0xff]  }
 0x3bc   : > { %4215 = vmatpush1.bf16.msra.mxu0 %v13166_v10  ;;  %v13228_v10 = vld [vmem:[%s18191_s3 + $0xa64] ss:$16 sps:$4 sm:$0xff]  }
 0x3bd   : > { %4473 = vmatpush1.bf16.msra.mxu1 %v13169_v11  ;;  %4216 = vmatprep.subr.bf16.mxu0 %v13174_v3  ;;  %v13231_v11 = vld [vmem:[%s18191_s3 + $0xa6c] ss:$16 sps:$4 sm:$0xff]   ;;  %v13226_v3 = vld [vmem:[%s18191_s3 + $0xa60] ss:$16 sps:$4 sm:$0xff]  }
 0x3be   : > { %4474 = vmatprep.subr.bf16.mxu1 %v13177_v14  ;;  %v13229_v14 = vld [vmem:[%s18191_s3 + $0xa68] ss:$16 sps:$4 sm:$0xff]  }
 0x3c0   : > { %4217 = vmatpush1.bf16.msra.mxu0 %v13172_v16  ;;  %v13234_v16 = vld [vmem:[%s18191_s3 + $0xa84] ss:$16 sps:$4 sm:$0xff]  }
 0x3c1   : > { %4475 = vmatpush1.bf16.msra.mxu1 %v13175_v18  ;;  %4218 = vmatprep.subr.bf16.mxu0 %v13180_v19  ;;  %v13237_v18 = vld [vmem:[%s18191_s3 + $0xa8c] ss:$16 sps:$4 sm:$0xff]   ;;  %v13232_v19 = vld [vmem:[%s18191_s3 + $0xa80] ss:$16 sps:$4 sm:$0xff]  }
 0x3c2   : > { %4476 = vmatprep.subr.bf16.mxu1 %v13183_v20  ;;  %v13235_v20 = vld [vmem:[%s18191_s3 + $0xa88] ss:$16 sps:$4 sm:$0xff]  }
 0x3c4   : > { %4219 = vmatpush1.bf16.msra.mxu0 %v13178_v21  ;;  %v13240_v21 = vld [vmem:[%s18191_s3 + $0xaa4] ss:$16 sps:$4 sm:$0xff]  }
 0x3c5   : > { %4477 = vmatpush1.bf16.msra.mxu1 %v13181_v36  ;;  %4220 = vmatprep.subr.bf16.mxu0 %v13186_v38  ;;  %v13243_v36 = vld [vmem:[%s18191_s3 + $0xaac] ss:$16 sps:$4 sm:$0xff]   ;;  %v13238_v38 = vld [vmem:[%s18191_s3 + $0xaa0] ss:$16 sps:$4 sm:$0xff]  }
 0x3c6   : > { %4478 = vmatprep.subr.bf16.mxu1 %v13189_v39  ;;  %v13241_v39 = vld [vmem:[%s18191_s3 + $0xaa8] ss:$16 sps:$4 sm:$0xff]  }
 0x3c8   : > { %4221 = vmatpush1.bf16.msra.mxu0 %v13184_v40  ;;  %v13246_v40 = vld [vmem:[%s18191_s3 + $0xac4] ss:$16 sps:$4 sm:$0xff]  }
 0x3c9   : > { %4479 = vmatpush1.bf16.msra.mxu1 %v13187_v41  ;;  %4222 = vmatprep.subr.bf16.mxu0 %v13192_v45  ;;  %v13249_v41 = vld [vmem:[%s18191_s3 + $0xacc] ss:$16 sps:$4 sm:$0xff]   ;;  %v13244_v45 = vld [vmem:[%s18191_s3 + $0xac0] ss:$16 sps:$4 sm:$0xff]  }
 0x3ca   : > { %4480 = vmatprep.subr.bf16.mxu1 %v13195_v46  ;;  %v13247_v46 = vld [vmem:[%s18191_s3 + $0xac8] ss:$16 sps:$4 sm:$0xff]  }
 0x3cc   : > { %4223 = vmatpush1.bf16.msra.mxu0 %v13190_v48  ;;  %v13252_v48 = vld [vmem:[%s18191_s3 + $0xae4] ss:$16 sps:$4 sm:$0xff]  }
 0x3cd   : > { %4481 = vmatpush1.bf16.msra.mxu1 %v13193_v49  ;;  %4224 = vmatprep.subr.bf16.mxu0 %v13198_v50  ;;  %v13255_v49 = vld [vmem:[%s18191_s3 + $0xaec] ss:$16 sps:$4 sm:$0xff]   ;;  %v13250_v50 = vld [vmem:[%s18191_s3 + $0xae0] ss:$16 sps:$4 sm:$0xff]  }
 0x3ce   : > { %4482 = vmatprep.subr.bf16.mxu1 %v13201_v51  ;;  %v13253_v51 = vld [vmem:[%s18191_s3 + $0xae8] ss:$16 sps:$4 sm:$0xff]  }
 0x3d0   : > { %4225 = vmatpush1.bf16.msra.mxu0 %v13196_v52  ;;  %v13258_v52 = vld [vmem:[%s18191_s3 + $0xb04] ss:$16 sps:$4 sm:$0xff]  }
 0x3d1   : > { %4483 = vmatpush1.bf16.msra.mxu1 %v13199_v53  ;;  %4226 = vmatprep.subr.bf16.mxu0 %v13204_v55  ;;  %v13261_v53 = vld [vmem:[%s18191_s3 + $0xb0c] ss:$16 sps:$4 sm:$0xff]   ;;  %v13256_v55 = vld [vmem:[%s18191_s3 + $0xb00] ss:$16 sps:$4 sm:$0xff]  }
 0x3d2   : > { %4484 = vmatprep.subr.bf16.mxu1 %v13207_v27  ;;  %v13259_v27 = vld [vmem:[%s18191_s3 + $0xb08] ss:$16 sps:$4 sm:$0xff]  }
 0x3d4   : > { %4227 = vmatpush1.bf16.msra.mxu0 %v13202_v58  ;;  %v13264_v58 = vld [vmem:[%s18191_s3 + $0xb24] ss:$16 sps:$4 sm:$0xff]  }
 0x3d5   : > { %4485 = vmatpush1.bf16.msra.mxu1 %v13205_v59  ;;  %4239 = vmatprep.subr.bf16.mxu0 %v13210_v62  ;;  %v13267_v59 = vld [vmem:[%s18191_s3 + $0xb2c] ss:$16 sps:$4 sm:$0xff]   ;;  %v13262_v62 = vld [vmem:[%s18191_s3 + $0xb20] ss:$16 sps:$4 sm:$0xff]  }
 0x3d6   : > { %4497 = vmatprep.subr.bf16.mxu1 %v13213_v2  ;;  %v13265_v2 = vld [vmem:[%s18191_s3 + $0xb28] ss:$16 sps:$4 sm:$0xff]  }
 0x3d7   : > { %10729 = vmatmul.mubr.msk.bf16.vlgmr.msra.gmra.mrb[16].mxu0 %vm14263_vm2, %v14970_v30 }
 0x3d8   : > { %10765 = vmatmul.mubr.msk.bf16.vlgmr.msra.gmra.mrb[16].mxu1 %vm14263_vm2, %v14970_v30  ;;  %4240 = vmatpush1.bf16.msra.mxu0 %v13208_v56  ;;  %v13270_v56 = vld [vmem:[%s18191_s3 + $0xb44] ss:$16 sps:$4 sm:$0xff]  }
 0x3d9   : > { %10732 = vmatprep.mubr.msk.bf16.mxu0 %vm14263_vm2, %v15027_v37  ;;  %4498 = vmatpush1.bf16.msra.mxu1 %v13211_v5  ;;  %v13273_v5 = vld [vmem:[%s18191_s3 + $0xb4c] ss:$16 sps:$4 sm:$0xff]  }
 0x3da   : > { %10768 = vmatprep.mubr.msk.bf16.mxu1 %vm14263_vm2, %v15027_v37  ;;  %4241 = vmatprep.subr.bf16.mxu0 %v13216_v57  ;;  %v13268_v57 = vld [vmem:[%s18191_s3 + $0xb40] ss:$16 sps:$4 sm:$0xff]  }
 0x3db   : > { %4499 = vmatprep.subr.bf16.mxu1 %v13219_v6  ;;  %v13271_v6 = vld [vmem:[%s18191_s3 + $0xb48] ss:$16 sps:$4 sm:$0xff]  }
 0x3dc   : > { %4242 = vmatpush1.bf16.msra.mxu0 %v13214_v7  ;;  %v13276_v7 = vld [vmem:[%s18191_s3 + $0xb64] ss:$16 sps:$4 sm:$0xff]  }
 0x3dd   : > { %4500 = vmatpush1.bf16.msra.mxu1 %v13217_v60  ;;  %4243 = vmatprep.subr.bf16.mxu0 %v13222_v61  ;;  %v13279_v60 = vld [vmem:[%s18191_s3 + $0xb6c] ss:$16 sps:$4 sm:$0xff]   ;;  %v13274_v61 = vld [vmem:[%s18191_s3 + $0xb60] ss:$16 sps:$4 sm:$0xff]  }
 0x3de   : > { %4501 = vmatprep.subr.bf16.mxu1 %v13225_v63  ;;  %v13277_v63 = vld [vmem:[%s18191_s3 + $0xb68] ss:$16 sps:$4 sm:$0xff]  }
 0x3e0   : > { %4244 = vmatpush1.bf16.msra.mxu0 %v13220_v1  ;;  %v13282_v1 = vld [vmem:[%s18191_s3 + $0xb84] ss:$16 sps:$4 sm:$0xff]  }
 0x3e1   : > { %4502 = vmatpush1.bf16.msra.mxu1 %v13223_v9  ;;  %4245 = vmatprep.subr.bf16.mxu0 %v13228_v10  ;;  %v13285_v9 = vld [vmem:[%s18191_s3 + $0xb8c] ss:$16 sps:$4 sm:$0xff]   ;;  %v13280_v10 = vld [vmem:[%s18191_s3 + $0xb80] ss:$16 sps:$4 sm:$0xff]  }
 0x3e2   : > { %4503 = vmatprep.subr.bf16.mxu1 %v13231_v11  ;;  %v13283_v11 = vld [vmem:[%s18191_s3 + $0xb88] ss:$16 sps:$4 sm:$0xff]  }
 0x3e4   : > { %4246 = vmatpush1.bf16.msra.mxu0 %v13226_v3  ;;  %v13288_v3 = vld [vmem:[%s18191_s3 + $0xba4] ss:$16 sps:$4 sm:$0xff]  }
 0x3e5   : > { %4504 = vmatpush1.bf16.msra.mxu1 %v13229_v14  ;;  %4247 = vmatprep.subr.bf16.mxu0 %v13234_v16  ;;  %v13291_v14 = vld [vmem:[%s18191_s3 + $0xbac] ss:$16 sps:$4 sm:$0xff]   ;;  %v13286_v16 = vld [vmem:[%s18191_s3 + $0xba0] ss:$16 sps:$4 sm:$0xff]  }
 0x3e6   : > { %4505 = vmatprep.subr.bf16.mxu1 %v13237_v18  ;;  %v13289_v18 = vld [vmem:[%s18191_s3 + $0xba8] ss:$16 sps:$4 sm:$0xff]  }
 0x3e8   : > { %4248 = vmatpush1.bf16.msra.mxu0 %v13232_v19  ;;  %v13294_v19 = vld [vmem:[%s18191_s3 + $0xbc4] ss:$16 sps:$4 sm:$0xff]  }
 0x3e9   : > { %4506 = vmatpush1.bf16.msra.mxu1 %v13235_v20  ;;  %4249 = vmatprep.subr.bf16.mxu0 %v13240_v21  ;;  %v13297_v20 = vld [vmem:[%s18191_s3 + $0xbcc] ss:$16 sps:$4 sm:$0xff]   ;;  %v13292_v21 = vld [vmem:[%s18191_s3 + $0xbc0] ss:$16 sps:$4 sm:$0xff]  }
 0x3ea   : > { %4507 = vmatprep.subr.bf16.mxu1 %v13243_v36  ;;  %v13295_v36 = vld [vmem:[%s18191_s3 + $0xbc8] ss:$16 sps:$4 sm:$0xff]  }
 0x3ec   : > { %4250 = vmatpush1.bf16.msra.mxu0 %v13238_v38  ;;  %v13300_v38 = vld [vmem:[%s18191_s3 + $0xbe4] ss:$16 sps:$4 sm:$0xff]  }
 0x3ed   : > { %4508 = vmatpush1.bf16.msra.mxu1 %v13241_v39  ;;  %4251 = vmatprep.subr.bf16.mxu0 %v13246_v40  ;;  %v13303_v39 = vld [vmem:[%s18191_s3 + $0xbec] ss:$16 sps:$4 sm:$0xff]   ;;  %v13298_v40 = vld [vmem:[%s18191_s3 + $0xbe0] ss:$16 sps:$4 sm:$0xff]  }
 0x3ee   : > { %4509 = vmatprep.subr.bf16.mxu1 %v13249_v41  ;;  %v13301_v41 = vld [vmem:[%s18191_s3 + $0xbe8] ss:$16 sps:$4 sm:$0xff]  }
 0x3f0   : > { %4252 = vmatpush1.bf16.msra.mxu0 %v13244_v45  ;;  %v13306_v45 = vld [vmem:[%s18191_s3 + $0xc04] ss:$16 sps:$4 sm:$0xff]  }
 0x3f1   : > { %4510 = vmatpush1.bf16.msra.mxu1 %v13247_v46  ;;  %4253 = vmatprep.subr.bf16.mxu0 %v13252_v48  ;;  %v13309_v46 = vld [vmem:[%s18191_s3 + $0xc0c] ss:$16 sps:$4 sm:$0xff]   ;;  %v13304_v48 = vld [vmem:[%s18191_s3 + $0xc00] ss:$16 sps:$4 sm:$0xff]  }
 0x3f2   : > { %4511 = vmatprep.subr.bf16.mxu1 %v13255_v49  ;;  %v13307_v49 = vld [vmem:[%s18191_s3 + $0xc08] ss:$16 sps:$4 sm:$0xff]  }
 0x3f4   : > { %4254 = vmatpush1.bf16.msra.mxu0 %v13250_v50  ;;  %v13312_v50 = vld [vmem:[%s18191_s3 + $0xc24] ss:$16 sps:$4 sm:$0xff]  }
 0x3f5   : > { %4512 = vmatpush1.bf16.msra.mxu1 %v13253_v51  ;;  %4255 = vmatprep.subr.bf16.mxu0 %v13258_v52  ;;  %v13315_v51 = vld [vmem:[%s18191_s3 + $0xc2c] ss:$16 sps:$4 sm:$0xff]   ;;  %v13310_v52 = vld [vmem:[%s18191_s3 + $0xc20] ss:$16 sps:$4 sm:$0xff]  }
 0x3f6   : > { %4513 = vmatprep.subr.bf16.mxu1 %v13261_v53  ;;  %v13313_v53 = vld [vmem:[%s18191_s3 + $0xc28] ss:$16 sps:$4 sm:$0xff]  }
 0x3f8   : > { %4256 = vmatpush1.bf16.msra.mxu0 %v13256_v55  ;;  %v13318_v55 = vld [vmem:[%s18191_s3 + $0xc44] ss:$16 sps:$4 sm:$0xff]  }
 0x3f9   : > { %4514 = vmatpush1.bf16.msra.mxu1 %v13259_v27  ;;  %4257 = vmatprep.subr.bf16.mxu0 %v13264_v58  ;;  %v13321_v27 = vld [vmem:[%s18191_s3 + $0xc4c] ss:$16 sps:$4 sm:$0xff]   ;;  %v13316_v58 = vld [vmem:[%s18191_s3 + $0xc40] ss:$16 sps:$4 sm:$0xff]  }
 0x3fa   : > { %4515 = vmatprep.subr.bf16.mxu1 %v13267_v59  ;;  %v13319_v59 = vld [vmem:[%s18191_s3 + $0xc48] ss:$16 sps:$4 sm:$0xff]  }
 0x3fc   : > { %4258 = vmatpush1.bf16.msra.mxu0 %v13262_v62  ;;  %v13327_v62 = vld [vmem:[%s18191_s3 + $0xc6c] ss:$16 sps:$4 sm:$0xff]  }
 0x3fd   : > { %4516 = vmatpush1.bf16.msra.mxu1 %v13265_v2  ;;  %4259 = vmatprep.subr.bf16.mxu0 %v13270_v56  ;;  %v13322_v2 = vld [vmem:[%s18191_s3 + $0xc60] ss:$16 sps:$4 sm:$0xff]   ;;  %v13325_v56 = vld [vmem:[%s18191_s3 + $0xc68] ss:$16 sps:$4 sm:$0xff]  }
 0x3fe   : > { %4517 = vmatprep.subr.bf16.mxu1 %v13273_v5  ;;  %v13330_v5 = vld [vmem:[%s18191_s3 + $0xc84] ss:$16 sps:$4 sm:$0xff]  }
 0x400   : > { %4260 = vmatpush1.bf16.msra.mxu0 %v13268_v57  ;;  %v13333_v57 = vld [vmem:[%s18191_s3 + $0xc8c] ss:$16 sps:$4 sm:$0xff]  }
 0x401   : > { %4518 = vmatpush1.bf16.msra.mxu1 %v13271_v6  ;;  %4261 = vmatprep.subr.bf16.mxu0 %v13276_v7  ;;  %v13328_v6 = vld [vmem:[%s18191_s3 + $0xc80] ss:$16 sps:$4 sm:$0xff]   ;;  %v13331_v7 = vld [vmem:[%s18191_s3 + $0xc88] ss:$16 sps:$4 sm:$0xff]  }
 0x402   : > { %4519 = vmatprep.subr.bf16.mxu1 %v13279_v60  ;;  %v13336_v60 = vld [vmem:[%s18191_s3 + $0xca4] ss:$16 sps:$4 sm:$0xff]  }
 0x404   : > { %4262 = vmatpush1.bf16.msra.mxu0 %v13274_v61  ;;  %v13339_v61 = vld [vmem:[%s18191_s3 + $0xcac] ss:$16 sps:$4 sm:$0xff]  }
 0x405   : > { %4520 = vmatpush1.bf16.msra.mxu1 %v13277_v63  ;;  %4263 = vmatprep.subr.bf16.mxu0 %v13282_v1  ;;  %v13334_v63 = vld [vmem:[%s18191_s3 + $0xca0] ss:$16 sps:$4 sm:$0xff]   ;;  %v13337_v1 = vld [vmem:[%s18191_s3 + $0xca8] ss:$16 sps:$4 sm:$0xff]  }
 0x406   : > { %4521 = vmatprep.subr.bf16.mxu1 %v13285_v9  ;;  %v13342_v9 = vld [vmem:[%s18191_s3 + $0xcc4] ss:$16 sps:$4 sm:$0xff]  }
 0x408   : > { %4264 = vmatpush1.bf16.msra.mxu0 %v13280_v10  ;;  %v13345_v10 = vld [vmem:[%s18191_s3 + $0xccc] ss:$16 sps:$4 sm:$0xff]  }
 0x409   : > { %4522 = vmatpush1.bf16.msra.mxu1 %v13283_v11  ;;  %4265 = vmatprep.subr.bf16.mxu0 %v13288_v3  ;;  %v13340_v11 = vld [vmem:[%s18191_s3 + $0xcc0] ss:$16 sps:$4 sm:$0xff]   ;;  %v13343_v3 = vld [vmem:[%s18191_s3 + $0xcc8] ss:$16 sps:$4 sm:$0xff]  }
 0x40a   : > { %4523 = vmatprep.subr.bf16.mxu1 %v13291_v14  ;;  %v13348_v14 = vld [vmem:[%s18191_s3 + $0xce4] ss:$16 sps:$4 sm:$0xff]  }
 0x40c   : > { %4266 = vmatpush1.bf16.msra.mxu0 %v13286_v16  ;;  %v13351_v16 = vld [vmem:[%s18191_s3 + $0xcec] ss:$16 sps:$4 sm:$0xff]  }
 0x40d   : > { %4524 = vmatpush1.bf16.msra.mxu1 %v13289_v18  ;;  %4267 = vmatprep.subr.bf16.mxu0 %v13294_v19  ;;  %v13346_v18 = vld [vmem:[%s18191_s3 + $0xce0] ss:$16 sps:$4 sm:$0xff]   ;;  %v13349_v19 = vld [vmem:[%s18191_s3 + $0xce8] ss:$16 sps:$4 sm:$0xff]  }
 0x40e   : > { %4525 = vmatprep.subr.bf16.mxu1 %v13297_v20  ;;  %v13354_v20 = vld [vmem:[%s18191_s3 + $0xd04] ss:$16 sps:$4 sm:$0xff]  }
 0x410   : > { %4268 = vmatpush1.bf16.msra.mxu0 %v13292_v21  ;;  %v13357_v21 = vld [vmem:[%s18191_s3 + $0xd0c] ss:$16 sps:$4 sm:$0xff]  }
 0x411   : > { %4526 = vmatpush1.bf16.msra.mxu1 %v13295_v36  ;;  %4269 = vmatprep.subr.bf16.mxu0 %v13300_v38  ;;  %v13352_v36 = vld [vmem:[%s18191_s3 + $0xd00] ss:$16 sps:$4 sm:$0xff]   ;;  %v13355_v38 = vld [vmem:[%s18191_s3 + $0xd08] ss:$16 sps:$4 sm:$0xff]  }
 0x412   : > { %4527 = vmatprep.subr.bf16.mxu1 %v13303_v39  ;;  %v13360_v39 = vld [vmem:[%s18191_s3 + $0xd24] ss:$16 sps:$4 sm:$0xff]  }
 0x414   : > { %4270 = vmatpush1.bf16.msra.mxu0 %v13298_v40  ;;  %v13363_v40 = vld [vmem:[%s18191_s3 + $0xd2c] ss:$16 sps:$4 sm:$0xff]  }
 0x415   : > { %4528 = vmatpush1.bf16.msra.mxu1 %v13301_v41  ;;  %6845 = vmatprep.subr.bf16.mxu0 %v13306_v45  ;;  %v13358_v41 = vld [vmem:[%s18191_s3 + $0xd20] ss:$16 sps:$4 sm:$0xff]   ;;  %v13361_v45 = vld [vmem:[%s18191_s3 + $0xd28] ss:$16 sps:$4 sm:$0xff]  }
 0x416   : > { %7103 = vmatprep.subr.bf16.mxu1 %v13309_v46  ;;  %v13366_v46 = vld [vmem:[%s18191_s3 + $0xd44] ss:$16 sps:$4 sm:$0xff]  }
 0x417   : > { %10735 = vmatmul.mubr.msk.bf16.vlgmr.msra.gmra.mrb[16].mxu0 %vm14263_vm2, %v15010_v24 }
 0x418   : > { %10771 = vmatmul.mubr.msk.bf16.vlgmr.msra.gmra.mrb[16].mxu1 %vm14263_vm2, %v15010_v24  ;;  %6846 = vmatpush1.bf16.msra.mxu0 %v13304_v48  ;;  %v13369_v48 = vld [vmem:[%s18191_s3 + $0xd4c] ss:$16 sps:$4 sm:$0xff]  }
 0x419   : > { %11543 = vmatprep.mubr.msk.bf16.mxu0 %vm14979_vm15, %v14988_v4  ;;  %7104 = vmatpush1.bf16.msra.mxu1 %v13307_v49  ;;  %v13364_v49 = vld [vmem:[%s18191_s3 + $0xd40] ss:$16 sps:$4 sm:$0xff]  }
 0x41a   : > { %11579 = vmatprep.mubr.msk.bf16.mxu1 %vm14979_vm15, %v14988_v4  ;;  %6847 = vmatprep.subr.bf16.mxu0 %v13312_v50  ;;  %v13324_v4 = vld [vmem:[%s18191_s3 + $0xc64] ss:$16 sps:$4 sm:$0xff]   ;;  %v13367_v50 = vld [vmem:[%s18191_s3 + $0xd48] ss:$16 sps:$4 sm:$0xff]  }
 0x41b   : > { %7105 = vmatprep.subr.bf16.mxu1 %v13315_v51  ;;  %v13372_v51 = vld [vmem:[%s18191_s3 + $0xd64] ss:$16 sps:$4 sm:$0xff]  }
 0x41c   : > { %6848 = vmatpush1.bf16.msra.mxu0 %v13310_v52  ;;  %v13375_v52 = vld [vmem:[%s18191_s3 + $0xd6c] ss:$16 sps:$4 sm:$0xff]  }
 0x41d   : > { %7106 = vmatpush1.bf16.msra.mxu1 %v13313_v53  ;;  %6849 = vmatprep.subr.bf16.mxu0 %v13318_v55  ;;  %v13370_v53 = vld [vmem:[%s18191_s3 + $0xd60] ss:$16 sps:$4 sm:$0xff]   ;;  %v13373_v55 = vld [vmem:[%s18191_s3 + $0xd68] ss:$16 sps:$4 sm:$0xff]  }
 0x41e   : > { %7107 = vmatprep.subr.bf16.mxu1 %v13321_v27  ;;  %v13378_v27 = vld [vmem:[%s18191_s3 + $0xd84] ss:$16 sps:$4 sm:$0xff]  }
 0x420   : > { %6850 = vmatpush1.bf16.msra.mxu0 %v13316_v58  ;;  %v13381_v58 = vld [vmem:[%s18191_s3 + $0xd8c] ss:$16 sps:$4 sm:$0xff]  }
 0x421   : > { %7108 = vmatpush1.bf16.msra.mxu1 %v13319_v59  ;;  %6851 = vmatprep.subr.bf16.mxu0 %v13324_v4  ;;  %v13376_v59 = vld [vmem:[%s18191_s3 + $0xd80] ss:$16 sps:$4 sm:$0xff]   ;;  %v13379_v4 = vld [vmem:[%s18191_s3 + $0xd88] ss:$16 sps:$4 sm:$0xff]  }
 0x422   : > { %7109 = vmatprep.subr.bf16.mxu1 %v13327_v62  ;;  %v13384_v62 = vld [vmem:[%s18191_s3 + $0xda4] ss:$16 sps:$4 sm:$0xff]  }
 0x424   : > { %6852 = vmatpush1.bf16.msra.mxu0 %v13322_v2  ;;  %v13387_v2 = vld [vmem:[%s18191_s3 + $0xdac] ss:$16 sps:$4 sm:$0xff]  }
 0x425   : > { %7110 = vmatpush1.bf16.msra.mxu1 %v13325_v56  ;;  %6853 = vmatprep.subr.bf16.mxu0 %v13330_v5  ;;  %v13382_v56 = vld [vmem:[%s18191_s3 + $0xda0] ss:$16 sps:$4 sm:$0xff]   ;;  %v13385_v5 = vld [vmem:[%s18191_s3 + $0xda8] ss:$16 sps:$4 sm:$0xff]  }
 0x426   : > { %7111 = vmatprep.subr.bf16.mxu1 %v13333_v57  ;;  %v13390_v57 = vld [vmem:[%s18191_s3 + $0xdc4] ss:$16 sps:$4 sm:$0xff]  }
 0x428   : > { %6854 = vmatpush1.bf16.msra.mxu0 %v13328_v6  ;;  %v13393_v6 = vld [vmem:[%s18191_s3 + $0xdcc] ss:$16 sps:$4 sm:$0xff]  }
 0x429   : > { %7112 = vmatpush1.bf16.msra.mxu1 %v13331_v7  ;;  %6855 = vmatprep.subr.bf16.mxu0 %v13336_v60  ;;  %v13388_v7 = vld [vmem:[%s18191_s3 + $0xdc0] ss:$16 sps:$4 sm:$0xff]   ;;  %v13391_v60 = vld [vmem:[%s18191_s3 + $0xdc8] ss:$16 sps:$4 sm:$0xff]  }
 0x42a   : > { %7113 = vmatprep.subr.bf16.mxu1 %v13339_v61  ;;  %v13396_v61 = vld [vmem:[%s18191_s3 + $0xde4] ss:$16 sps:$4 sm:$0xff]  }
 0x42c   : > { %6856 = vmatpush1.bf16.msra.mxu0 %v13334_v63  ;;  %v13399_v63 = vld [vmem:[%s18191_s3 + $0xdec] ss:$16 sps:$4 sm:$0xff]  }
 0x42d   : > { %7114 = vmatpush1.bf16.msra.mxu1 %v13337_v1  ;;  %6857 = vmatprep.subr.bf16.mxu0 %v13342_v9  ;;  %v13394_v1 = vld [vmem:[%s18191_s3 + $0xde0] ss:$16 sps:$4 sm:$0xff]   ;;  %v13397_v9 = vld [vmem:[%s18191_s3 + $0xde8] ss:$16 sps:$4 sm:$0xff]  }
 0x42e   : > { %7115 = vmatprep.subr.bf16.mxu1 %v13345_v10  ;;  %v13402_v10 = vld [vmem:[%s18191_s3 + $0xe04] ss:$16 sps:$4 sm:$0xff]  }
 0x430   : > { %6858 = vmatpush1.bf16.msra.mxu0 %v13340_v11  ;;  %v13405_v11 = vld [vmem:[%s18191_s3 + $0xe0c] ss:$16 sps:$4 sm:$0xff]  }
 0x431   : > { %7116 = vmatpush1.bf16.msra.mxu1 %v13343_v3  ;;  %6859 = vmatprep.subr.bf16.mxu0 %v13348_v14  ;;  %v13400_v3 = vld [vmem:[%s18191_s3 + $0xe00] ss:$16 sps:$4 sm:$0xff]   ;;  %v13403_v14 = vld [vmem:[%s18191_s3 + $0xe08] ss:$16 sps:$4 sm:$0xff]  }
 0x432   : > { %7117 = vmatprep.subr.bf16.mxu1 %v13351_v16  ;;  %v13408_v16 = vld [vmem:[%s18191_s3 + $0xe24] ss:$16 sps:$4 sm:$0xff]  }
 0x434   : > { %6860 = vmatpush1.bf16.msra.mxu0 %v13346_v18  ;;  %v13411_v18 = vld [vmem:[%s18191_s3 + $0xe2c] ss:$16 sps:$4 sm:$0xff]  }
 0x435   : > { %7118 = vmatpush1.bf16.msra.mxu1 %v13349_v19  ;;  %6861 = vmatprep.subr.bf16.mxu0 %v13354_v20  ;;  %v13406_v19 = vld [vmem:[%s18191_s3 + $0xe20] ss:$16 sps:$4 sm:$0xff]   ;;  %v13409_v20 = vld [vmem:[%s18191_s3 + $0xe28] ss:$16 sps:$4 sm:$0xff]  }
 0x436   : > { %7119 = vmatprep.subr.bf16.mxu1 %v13357_v21  ;;  %v13414_v21 = vld [vmem:[%s18191_s3 + $0xe44] ss:$16 sps:$4 sm:$0xff]  }
 0x438   : > { %6862 = vmatpush1.bf16.msra.mxu0 %v13352_v36  ;;  %v13412_v36 = vld [vmem:[%s18191_s3 + $0xe40] ss:$16 sps:$4 sm:$0xff]  }
 0x439   : > { %7120 = vmatpush1.bf16.msra.mxu1 %v13355_v38  ;;  %6863 = vmatprep.subr.bf16.mxu0 %v13360_v39  ;;  %v13415_v38 = vld [vmem:[%s18191_s3 + $0xe48] ss:$16 sps:$4 sm:$0xff]   ;;  %v13423_v39 = vld [vmem:[%s18191_s3 + $0xe6c] ss:$16 sps:$4 sm:$0xff]  }
 0x43a   : > { %7121 = vmatprep.subr.bf16.mxu1 %v13363_v40  ;;  %v13418_v40 = vld [vmem:[%s18191_s3 + $0xe60] ss:$16 sps:$4 sm:$0xff]  }
 0x43c   : > { %6864 = vmatpush1.bf16.msra.mxu0 %v13358_v41  ;;  %v13421_v41 = vld [vmem:[%s18191_s3 + $0xe68] ss:$16 sps:$4 sm:$0xff]  }
 0x43d   : > { %7122 = vmatpush1.bf16.msra.mxu1 %v13361_v45  ;;  %6865 = vmatprep.subr.bf16.mxu0 %v13366_v46  ;;  %v13426_v45 = vld [vmem:[%s18191_s3 + $0xe84] ss:$16 sps:$4 sm:$0xff]   ;;  %v13429_v46 = vld [vmem:[%s18191_s3 + $0xe8c] ss:$16 sps:$4 sm:$0xff]  }
 0x43e   : > { %7123 = vmatprep.subr.bf16.mxu1 %v13369_v48  ;;  %v13424_v48 = vld [vmem:[%s18191_s3 + $0xe80] ss:$16 sps:$4 sm:$0xff]  }
 0x440   : > { %6866 = vmatpush1.bf16.msra.mxu0 %v13364_v49  ;;  %v13427_v49 = vld [vmem:[%s18191_s3 + $0xe88] ss:$16 sps:$4 sm:$0xff]  }
 0x441   : > { %7124 = vmatpush1.bf16.msra.mxu1 %v13367_v50  ;;  %6867 = vmatprep.subr.bf16.mxu0 %v13372_v51  ;;  %v13432_v50 = vld [vmem:[%s18191_s3 + $0xea4] ss:$16 sps:$4 sm:$0xff]   ;;  %v13435_v51 = vld [vmem:[%s18191_s3 + $0xeac] ss:$16 sps:$4 sm:$0xff]  }
 0x442   : > { %7125 = vmatprep.subr.bf16.mxu1 %v13375_v52  ;;  %v13430_v52 = vld [vmem:[%s18191_s3 + $0xea0] ss:$16 sps:$4 sm:$0xff]  }
 0x444   : > { %6868 = vmatpush1.bf16.msra.mxu0 %v13370_v53  ;;  %v13433_v53 = vld [vmem:[%s18191_s3 + $0xea8] ss:$16 sps:$4 sm:$0xff]  }
 0x445   : > { %7126 = vmatpush1.bf16.msra.mxu1 %v13373_v55  ;;  %6869 = vmatprep.subr.bf16.mxu0 %v13378_v27  ;;  %v13438_v55 = vld [vmem:[%s18191_s3 + $0xec4] ss:$16 sps:$4 sm:$0xff]   ;;  %v13441_v27 = vld [vmem:[%s18191_s3 + $0xecc] ss:$16 sps:$4 sm:$0xff]  }
 0x446   : > { %7127 = vmatprep.subr.bf16.mxu1 %v13381_v58  ;;  %v13436_v58 = vld [vmem:[%s18191_s3 + $0xec0] ss:$16 sps:$4 sm:$0xff]  }
 0x448   : > { %6870 = vmatpush1.bf16.msra.mxu0 %v13376_v59  ;;  %v13439_v59 = vld [vmem:[%s18191_s3 + $0xec8] ss:$16 sps:$4 sm:$0xff]  }
 0x449   : > { %7128 = vmatpush1.bf16.msra.mxu1 %v13379_v4  ;;  %6871 = vmatprep.subr.bf16.mxu0 %v13384_v62  ;;  %v13444_v4 = vld [vmem:[%s18191_s3 + $0xee4] ss:$16 sps:$4 sm:$0xff]   ;;  %v13447_v62 = vld [vmem:[%s18191_s3 + $0xeec] ss:$16 sps:$4 sm:$0xff]  }
 0x44a   : > { %7129 = vmatprep.subr.bf16.mxu1 %v13387_v2  ;;  %v13442_v2 = vld [vmem:[%s18191_s3 + $0xee0] ss:$16 sps:$4 sm:$0xff]  }
 0x44c   : > { %6872 = vmatpush1.bf16.msra.mxu0 %v13382_v56  ;;  %v13445_v56 = vld [vmem:[%s18191_s3 + $0xee8] ss:$16 sps:$4 sm:$0xff]  }
 0x44d   : > { %7130 = vmatpush1.bf16.msra.mxu1 %v13385_v5  ;;  %6873 = vmatprep.subr.bf16.mxu0 %v13390_v57  ;;  %v13450_v5 = vld [vmem:[%s18191_s3 + $0xf04] ss:$16 sps:$4 sm:$0xff]   ;;  %v13453_v57 = vld [vmem:[%s18191_s3 + $0xf0c] ss:$16 sps:$4 sm:$0xff]  }
 0x44e   : > { %7131 = vmatprep.subr.bf16.mxu1 %v13393_v6  ;;  %v13448_v6 = vld [vmem:[%s18191_s3 + $0xf00] ss:$16 sps:$4 sm:$0xff]  }
 0x450   : > { %6874 = vmatpush1.bf16.msra.mxu0 %v13388_v7  ;;  %v13451_v7 = vld [vmem:[%s18191_s3 + $0xf08] ss:$16 sps:$4 sm:$0xff]  }
 0x451   : > { %7132 = vmatpush1.bf16.msra.mxu1 %v13391_v60  ;;  %6875 = vmatprep.subr.bf16.mxu0 %v13396_v61  ;;  %v13456_v60 = vld [vmem:[%s18191_s3 + $0xf24] ss:$16 sps:$4 sm:$0xff]   ;;  %v13459_v61 = vld [vmem:[%s18191_s3 + $0xf2c] ss:$16 sps:$4 sm:$0xff]  }
 0x452   : > { %7133 = vmatprep.subr.bf16.mxu1 %v13399_v63  ;;  %v13454_v63 = vld [vmem:[%s18191_s3 + $0xf20] ss:$16 sps:$4 sm:$0xff]  }
 0x454   : > { %6876 = vmatpush1.bf16.msra.mxu0 %v13394_v1  ;;  %v13457_v1 = vld [vmem:[%s18191_s3 + $0xf28] ss:$16 sps:$4 sm:$0xff]  }
 0x455   : > { %7134 = vmatpush1.bf16.msra.mxu1 %v13397_v9  ;;  %6888 = vmatprep.subr.bf16.mxu0 %v13402_v10  ;;  %v13462_v9 = vld [vmem:[%s18191_s3 + $0xf44] ss:$16 sps:$4 sm:$0xff]   ;;  %v13465_v10 = vld [vmem:[%s18191_s3 + $0xf4c] ss:$16 sps:$4 sm:$0xff]  }
 0x456   : > { %7146 = vmatprep.subr.bf16.mxu1 %v13405_v11  ;;  %v13460_v11 = vld [vmem:[%s18191_s3 + $0xf40] ss:$16 sps:$4 sm:$0xff]  }
 0x457   : > { %11547 = vmatmul.mubr.msk.bf16.vlgmr.msra.gmra.mrb[20].mxu0 %vm14979_vm15, %v14996_v17 }
 0x458   : > { %11583 = vmatmul.mubr.msk.bf16.vlgmr.msra.gmra.mrb[20].mxu1 %vm14979_vm15, %v14996_v17  ;;  %6889 = vmatpush1.bf16.msra.mxu0 %v13400_v3  ;;  %v13417_v17 = vld [vmem:[%s18191_s3 + $0xe4c] ss:$16 sps:$4 sm:$0xff]   ;;  %v13463_v3 = vld [vmem:[%s18191_s3 + $0xf48] ss:$16 sps:$4 sm:$0xff]  }
 0x459   : > { %11551 = vmatprep.mubr.msk.bf16.mxu0 %vm14979_vm15, %v15018_v29  ;;  %7147 = vmatpush1.bf16.msra.mxu1 %v13403_v14  ;;  %v13468_v14 = vld [vmem:[%s18191_s3 + $0xf64] ss:$16 sps:$4 sm:$0xff]  }
 0x45a   : > { %11587 = vmatprep.mubr.msk.bf16.mxu1 %vm14979_vm15, %v15018_v29  ;;  %6890 = vmatprep.subr.bf16.mxu0 %v13408_v16  ;;  %v13420_v29 = vld [vmem:[%s18191_s3 + $0xe64] ss:$16 sps:$4 sm:$0xff]   ;;  %v13471_v16 = vld [vmem:[%s18191_s3 + $0xf6c] ss:$16 sps:$4 sm:$0xff]  }
 0x45b   : > { %7148 = vmatprep.subr.bf16.mxu1 %v13411_v18  ;;  %v13466_v18 = vld [vmem:[%s18191_s3 + $0xf60] ss:$16 sps:$4 sm:$0xff]  }
 0x45c   : > { %6891 = vmatpush1.bf16.msra.mxu0 %v13406_v19  ;;  %v13469_v19 = vld [vmem:[%s18191_s3 + $0xf68] ss:$16 sps:$4 sm:$0xff]  }
 0x45d   : > { %7149 = vmatpush1.bf16.msra.mxu1 %v13409_v20  ;;  %6892 = vmatprep.subr.bf16.mxu0 %v13414_v21  ;;  %v13474_v20 = vld [vmem:[%s18191_s3 + $0xf84] ss:$16 sps:$4 sm:$0xff]   ;;  %v13477_v21 = vld [vmem:[%s18191_s3 + $0xf8c] ss:$16 sps:$4 sm:$0xff]  }
 0x45e   : > { %7150 = vmatprep.subr.bf16.mxu1 %v13417_v17  ;;  %v13472_v17 = vld [vmem:[%s18191_s3 + $0xf80] ss:$16 sps:$4 sm:$0xff]  }
 0x460   : > { %6893 = vmatpush1.bf16.msra.mxu0 %v13412_v36  ;;  %v13475_v36 = vld [vmem:[%s18191_s3 + $0xf88] ss:$16 sps:$4 sm:$0xff]  }
 0x461   : > { %7151 = vmatpush1.bf16.msra.mxu1 %v13415_v38  ;;  %6894 = vmatprep.subr.bf16.mxu0 %v13420_v29  ;;  %v13480_v38 = vld [vmem:[%s18191_s3 + $0xfa4] ss:$16 sps:$4 sm:$0xff]   ;;  %v13483_v29 = vld [vmem:[%s18191_s3 + $0xfac] ss:$16 sps:$4 sm:$0xff]  }
 0x462   : > { %7152 = vmatprep.subr.bf16.mxu1 %v13423_v39  ;;  %v13478_v39 = vld [vmem:[%s18191_s3 + $0xfa0] ss:$16 sps:$4 sm:$0xff]  }
 0x464   : > { %6895 = vmatpush1.bf16.msra.mxu0 %v13418_v40  ;;  %v13481_v40 = vld [vmem:[%s18191_s3 + $0xfa8] ss:$16 sps:$4 sm:$0xff]  }
 0x465   : > { %7153 = vmatpush1.bf16.msra.mxu1 %v13421_v41  ;;  %6896 = vmatprep.subr.bf16.mxu0 %v13426_v45  ;;  %v13486_v41 = vld [vmem:[%s18191_s3 + $0xfc4] ss:$16 sps:$4 sm:$0xff]   ;;  %v13489_v45 = vld [vmem:[%s18191_s3 + $0xfcc] ss:$16 sps:$4 sm:$0xff]  }
 0x466   : > { %7154 = vmatprep.subr.bf16.mxu1 %v13429_v46  ;;  %v13484_v46 = vld [vmem:[%s18191_s3 + $0xfc0] ss:$16 sps:$4 sm:$0xff]  }
 0x468   : > { %6897 = vmatpush1.bf16.msra.mxu0 %v13424_v48  ;;  %v13487_v48 = vld [vmem:[%s18191_s3 + $0xfc8] ss:$16 sps:$4 sm:$0xff]  }
 0x469   : > { %7155 = vmatpush1.bf16.msra.mxu1 %v13427_v49  ;;  %6898 = vmatprep.subr.bf16.mxu0 %v13432_v50  ;;  %v13492_v49 = vld [vmem:[%s18191_s3 + $0xfe4] ss:$16 sps:$4 sm:$0xff]   ;;  %v13495_v50 = vld [vmem:[%s18191_s3 + $0xfec] ss:$16 sps:$4 sm:$0xff]  }
 0x46a   : > { %7156 = vmatprep.subr.bf16.mxu1 %v13435_v51  ;;  %v13490_v51 = vld [vmem:[%s18191_s3 + $0xfe0] ss:$16 sps:$4 sm:$0xff]  }
 0x46c   : > { %6899 = vmatpush1.bf16.msra.mxu0 %v13430_v52  ;;  %v13493_v52 = vld [vmem:[%s18191_s3 + $0xfe8] ss:$16 sps:$4 sm:$0xff]  }
 0x46d   : > { %7157 = vmatpush1.bf16.msra.mxu1 %v13433_v53  ;;  %6900 = vmatprep.subr.bf16.mxu0 %v13438_v55  ;;  %v13498_v53 = vld [vmem:[%s18191_s3 + $0x1004] ss:$16 sps:$4 sm:$0xff]   ;;  %v13501_v55 = vld [vmem:[%s18191_s3 + $0x100c] ss:$16 sps:$4 sm:$0xff]  }
 0x46e   : > { %7158 = vmatprep.subr.bf16.mxu1 %v13441_v27  ;;  %v13496_v27 = vld [vmem:[%s18191_s3 + $0x1000] ss:$16 sps:$4 sm:$0xff]  }
 0x470   : > { %6901 = vmatpush1.bf16.msra.mxu0 %v13436_v58  ;;  %v13499_v58 = vld [vmem:[%s18191_s3 + $0x1008] ss:$16 sps:$4 sm:$0xff]  }
 0x471   : > { %7159 = vmatpush1.bf16.msra.mxu1 %v13439_v59  ;;  %6902 = vmatprep.subr.bf16.mxu0 %v13444_v4  ;;  %v13504_v59 = vld [vmem:[%s18191_s3 + $0x1024] ss:$16 sps:$4 sm:$0xff]   ;;  %v13507_v4 = vld [vmem:[%s18191_s3 + $0x102c] ss:$16 sps:$4 sm:$0xff]  }
 0x472   : > { %7160 = vmatprep.subr.bf16.mxu1 %v13447_v62  ;;  %v13502_v62 = vld [vmem:[%s18191_s3 + $0x1020] ss:$16 sps:$4 sm:$0xff]  }
 0x474   : > { %6903 = vmatpush1.bf16.msra.mxu0 %v13442_v2  ;;  %v13505_v2 = vld [vmem:[%s18191_s3 + $0x1028] ss:$16 sps:$4 sm:$0xff]  }
 0x475   : > { %7161 = vmatpush1.bf16.msra.mxu1 %v13445_v56  ;;  %6904 = vmatprep.subr.bf16.mxu0 %v13450_v5  ;;  %v13510_v56 = vld [vmem:[%s18191_s3 + $0x1044] ss:$16 sps:$4 sm:$0xff]   ;;  %v13511_v5 = vld [vmem:[%s18191_s3 + $0x1048] ss:$16 sps:$4 sm:$0xff]  }
 0x476   : > { %7162 = vmatprep.subr.bf16.mxu1 %v13453_v57  ;;  %v13519_v57 = vld [vmem:[%s18191_s3 + $0x106c] ss:$16 sps:$4 sm:$0xff]  }
 0x478   : > { %6905 = vmatpush1.bf16.msra.mxu0 %v13448_v6  ;;  %v13514_v6 = vld [vmem:[%s18191_s3 + $0x1060] ss:$16 sps:$4 sm:$0xff]  }
 0x479   : > { %7163 = vmatpush1.bf16.msra.mxu1 %v13451_v7  ;;  %6906 = vmatprep.subr.bf16.mxu0 %v13456_v60  ;;  %v13517_v7 = vld [vmem:[%s18191_s3 + $0x1068] ss:$16 sps:$4 sm:$0xff]   ;;  %v13522_v60 = vld [vmem:[%s18191_s3 + $0x1084] ss:$16 sps:$4 sm:$0xff]  }
 0x47a   : > { %7164 = vmatprep.subr.bf16.mxu1 %v13459_v61  ;;  %v13525_v61 = vld [vmem:[%s18191_s3 + $0x108c] ss:$16 sps:$4 sm:$0xff]  }
 0x47c   : > { %6907 = vmatpush1.bf16.msra.mxu0 %v13454_v63  ;;  %v13520_v63 = vld [vmem:[%s18191_s3 + $0x1080] ss:$16 sps:$4 sm:$0xff]  }
 0x47d   : > { %7165 = vmatpush1.bf16.msra.mxu1 %v13457_v1  ;;  %6908 = vmatprep.subr.bf16.mxu0 %v13462_v9  ;;  %v13523_v1 = vld [vmem:[%s18191_s3 + $0x1088] ss:$16 sps:$4 sm:$0xff]   ;;  %v13528_v9 = vld [vmem:[%s18191_s3 + $0x10a4] ss:$16 sps:$4 sm:$0xff]  }
 0x47e   : > { %7166 = vmatprep.subr.bf16.mxu1 %v13465_v10  ;;  %v13531_v10 = vld [vmem:[%s18191_s3 + $0x10ac] ss:$16 sps:$4 sm:$0xff]  }
 0x480   : > { %6909 = vmatpush1.bf16.msra.mxu0 %v13460_v11  ;;  %v13526_v11 = vld [vmem:[%s18191_s3 + $0x10a0] ss:$16 sps:$4 sm:$0xff]  }
 0x481   : > { %7167 = vmatpush1.bf16.msra.mxu1 %v13463_v3  ;;  %6910 = vmatprep.subr.bf16.mxu0 %v13468_v14  ;;  %v13529_v3 = vld [vmem:[%s18191_s3 + $0x10a8] ss:$16 sps:$4 sm:$0xff]   ;;  %v13534_v14 = vld [vmem:[%s18191_s3 + $0x10c4] ss:$16 sps:$4 sm:$0xff]  }
 0x482   : > { %7168 = vmatprep.subr.bf16.mxu1 %v13471_v16  ;;  %v13537_v16 = vld [vmem:[%s18191_s3 + $0x10cc] ss:$16 sps:$4 sm:$0xff]  }
 0x484   : > { %6911 = vmatpush1.bf16.msra.mxu0 %v13466_v18  ;;  %v13532_v18 = vld [vmem:[%s18191_s3 + $0x10c0] ss:$16 sps:$4 sm:$0xff]  }
 0x485   : > { %7169 = vmatpush1.bf16.msra.mxu1 %v13469_v19  ;;  %6912 = vmatprep.subr.bf16.mxu0 %v13474_v20  ;;  %v13535_v19 = vld [vmem:[%s18191_s3 + $0x10c8] ss:$16 sps:$4 sm:$0xff]   ;;  %v13540_v20 = vld [vmem:[%s18191_s3 + $0x10e4] ss:$16 sps:$4 sm:$0xff]  }
 0x486   : > { %7170 = vmatprep.subr.bf16.mxu1 %v13477_v21  ;;  %v13543_v21 = vld [vmem:[%s18191_s3 + $0x10ec] ss:$16 sps:$4 sm:$0xff]  }
 0x488   : > { %6913 = vmatpush1.bf16.msra.mxu0 %v13472_v17  ;;  %v13538_v17 = vld [vmem:[%s18191_s3 + $0x10e0] ss:$16 sps:$4 sm:$0xff]  }
 0x489   : > { %7171 = vmatpush1.bf16.msra.mxu1 %v13475_v36  ;;  %6914 = vmatprep.subr.bf16.mxu0 %v13480_v38  ;;  %v13541_v36 = vld [vmem:[%s18191_s3 + $0x10e8] ss:$16 sps:$4 sm:$0xff]   ;;  %v13546_v38 = vld [vmem:[%s18191_s3 + $0x1104] ss:$16 sps:$4 sm:$0xff]  }
 0x48a   : > { %7172 = vmatprep.subr.bf16.mxu1 %v13483_v29  ;;  %v13549_v29 = vld [vmem:[%s18191_s3 + $0x110c] ss:$16 sps:$4 sm:$0xff]  }
 0x48c   : > { %6915 = vmatpush1.bf16.msra.mxu0 %v13478_v39  ;;  %v13544_v39 = vld [vmem:[%s18191_s3 + $0x1100] ss:$16 sps:$4 sm:$0xff]  }
 0x48d   : > { %7173 = vmatpush1.bf16.msra.mxu1 %v13481_v40  ;;  %6916 = vmatprep.subr.bf16.mxu0 %v13486_v41  ;;  %v13547_v40 = vld [vmem:[%s18191_s3 + $0x1108] ss:$16 sps:$4 sm:$0xff]   ;;  %v13552_v41 = vld [vmem:[%s18191_s3 + $0x1124] ss:$16 sps:$4 sm:$0xff]  }
 0x48e   : > { %7174 = vmatprep.subr.bf16.mxu1 %v13489_v45  ;;  %v13555_v45 = vld [vmem:[%s18191_s3 + $0x112c] ss:$16 sps:$4 sm:$0xff]  }
 0x490   : > { %6917 = vmatpush1.bf16.msra.mxu0 %v13484_v46  ;;  %v13550_v46 = vld [vmem:[%s18191_s3 + $0x1120] ss:$16 sps:$4 sm:$0xff]  }
 0x491   : > { %7175 = vmatpush1.bf16.msra.mxu1 %v13487_v48  ;;  %6918 = vmatprep.subr.bf16.mxu0 %v13492_v49  ;;  %v13553_v48 = vld [vmem:[%s18191_s3 + $0x1128] ss:$16 sps:$4 sm:$0xff]   ;;  %v13558_v49 = vld [vmem:[%s18191_s3 + $0x1144] ss:$16 sps:$4 sm:$0xff]  }
 0x492   : > { %7176 = vmatprep.subr.bf16.mxu1 %v13495_v50  ;;  %v13561_v50 = vld [vmem:[%s18191_s3 + $0x114c] ss:$16 sps:$4 sm:$0xff]  }
 0x494   : > { %6919 = vmatpush1.bf16.msra.mxu0 %v13490_v51  ;;  %v13556_v51 = vld [vmem:[%s18191_s3 + $0x1140] ss:$16 sps:$4 sm:$0xff]  }
 0x495   : > { %7177 = vmatpush1.bf16.msra.mxu1 %v13493_v52  ;;  %6931 = vmatprep.subr.bf16.mxu0 %v13498_v53  ;;  %v13559_v52 = vld [vmem:[%s18191_s3 + $0x1148] ss:$16 sps:$4 sm:$0xff]   ;;  %v13564_v53 = vld [vmem:[%s18191_s3 + $0x1164] ss:$16 sps:$4 sm:$0xff]  }
 0x496   : > { %7189 = vmatprep.subr.bf16.mxu1 %v13501_v55  ;;  %v13567_v55 = vld [vmem:[%s18191_s3 + $0x116c] ss:$16 sps:$4 sm:$0xff]  }
 0x497   : > { %11555 = vmatmul.mubr.msk.bf16.vlgmr.msra.gmra.mrb[20].mxu0 %vm14979_vm15, %v15006_v22 }
 0x498   : > { %11591 = vmatmul.mubr.msk.bf16.vlgmr.msra.gmra.mrb[20].mxu1 %vm14979_vm15, %v15006_v22  ;;  %6932 = vmatpush1.bf16.msra.mxu0 %v13496_v27  ;;  %v13508_v22 = vld [vmem:[%s18191_s3 + $0x1040] ss:$16 sps:$4 sm:$0xff]  }
 0x499   : > { %6963 = vmatprep.mubr.bf16.mxu0 %v14963_v54  ;;  %7190 = vmatpush1.bf16.msra.mxu1 %v13499_v58  ;;  %v13562_v27 = vld [vmem:[%s18191_s3 + $0x1160] ss:$16 sps:$4 sm:$0xff]   ;;  %v13565_v58 = vld [vmem:[%s18191_s3 + $0x1168] ss:$16 sps:$4 sm:$0xff]  }
 0x49a   : > { %7221 = vmatprep.mubr.bf16.mxu1 %v14963_v54  ;;  %6933 = vmatprep.subr.bf16.mxu0 %v13504_v59  ;;  %v13516_v54 = vld [vmem:[%s18191_s3 + $0x1064] ss:$16 sps:$4 sm:$0xff]  }
 0x49b   : > { %7191 = vmatprep.subr.bf16.mxu1 %v13507_v4  ;;  %v13570_v59 = vld [vmem:[%s18191_s3 + $0x1184] ss:$16 sps:$4 sm:$0xff]   ;;  %v13573_v4 = vld [vmem:[%s18191_s3 + $0x118c] ss:$16 sps:$4 sm:$0xff]  }
 0x49c   : > { %6934 = vmatpush1.bf16.msra.mxu0 %v13502_v62  ;;  %v13568_v62 = vld [vmem:[%s18191_s3 + $0x1180] ss:$16 sps:$4 sm:$0xff]  }
 0x49d   : > { %7192 = vmatpush1.bf16.msra.mxu1 %v13505_v2  ;;  %6935 = vmatprep.subr.bf16.mxu0 %v13510_v56  ;;  %v13571_v2 = vld [vmem:[%s18191_s3 + $0x1188] ss:$16 sps:$4 sm:$0xff]   ;;  %v13576_v56 = vld [vmem:[%s18191_s3 + $0x11a4] ss:$16 sps:$4 sm:$0xff]  }
 0x49e   : > { %7193 = vmatprep.subr.bf16.mxu1 %v13513_v8  ;;  %v13579_v8 = vld [vmem:[%s18191_s3 + $0x11ac] ss:$16 sps:$4 sm:$0xff]  }
 0x4a0   : > { %6936 = vmatpush1.bf16.msra.mxu0 %v13508_v22  ;;  %v13574_v22 = vld [vmem:[%s18191_s3 + $0x11a0] ss:$16 sps:$4 sm:$0xff]  }
 0x4a1   : > { %7194 = vmatpush1.bf16.msra.mxu1 %v13511_v5  ;;  %6937 = vmatprep.subr.bf16.mxu0 %v13516_v54  ;;  %v13577_v5 = vld [vmem:[%s18191_s3 + $0x11a8] ss:$16 sps:$4 sm:$0xff]   ;;  %v13582_v54 = vld [vmem:[%s18191_s3 + $0x11c4] ss:$16 sps:$4 sm:$0xff]  }
 0x4a2   : > { %7195 = vmatprep.subr.bf16.mxu1 %v13519_v57  ;;  %v13585_v57 = vld [vmem:[%s18191_s3 + $0x11cc] ss:$16 sps:$4 sm:$0xff]  }
 0x4a4   : > { %6938 = vmatpush1.bf16.msra.mxu0 %v13514_v6  ;;  %v13580_v6 = vld [vmem:[%s18191_s3 + $0x11c0] ss:$16 sps:$4 sm:$0xff]  }
 0x4a5   : > { %7196 = vmatpush1.bf16.msra.mxu1 %v13517_v7  ;;  %6939 = vmatprep.subr.bf16.mxu0 %v13522_v60  ;;  %v13583_v7 = vld [vmem:[%s18191_s3 + $0x11c8] ss:$16 sps:$4 sm:$0xff]   ;;  %v13588_v60 = vld [vmem:[%s18191_s3 + $0x11e4] ss:$16 sps:$4 sm:$0xff]  }
 0x4a6   : > { %7197 = vmatprep.subr.bf16.mxu1 %v13525_v61  ;;  %v13591_v61 = vld [vmem:[%s18191_s3 + $0x11ec] ss:$16 sps:$4 sm:$0xff]  }
 0x4a8   : > { %6940 = vmatpush1.bf16.msra.mxu0 %v13520_v63  ;;  %v13586_v63 = vld [vmem:[%s18191_s3 + $0x11e0] ss:$16 sps:$4 sm:$0xff]  }
 0x4a9   : > { %7198 = vmatpush1.bf16.msra.mxu1 %v13523_v1  ;;  %6941 = vmatprep.subr.bf16.mxu0 %v13528_v9  ;;  %v13589_v1 = vld [vmem:[%s18191_s3 + $0x11e8] ss:$16 sps:$4 sm:$0xff]   ;;  %v13594_v9 = vld [vmem:[%s18191_s3 + $0x1204] ss:$16 sps:$4 sm:$0xff]  }
 0x4aa   : > { %7199 = vmatprep.subr.bf16.mxu1 %v13531_v10  ;;  %v13597_v10 = vld [vmem:[%s18191_s3 + $0x120c] ss:$16 sps:$4 sm:$0xff]  }
 0x4ac   : > { %6942 = vmatpush1.bf16.msra.mxu0 %v13526_v11  ;;  %v13592_v11 = vld [vmem:[%s18191_s3 + $0x1200] ss:$16 sps:$4 sm:$0xff]  }
 0x4ad   : > { %7200 = vmatpush1.bf16.msra.mxu1 %v13529_v3  ;;  %6943 = vmatprep.subr.bf16.mxu0 %v13534_v14  ;;  %v13595_v3 = vld [vmem:[%s18191_s3 + $0x1208] ss:$16 sps:$4 sm:$0xff]   ;;  %v13600_v14 = vld [vmem:[%s18191_s3 + $0x1224] ss:$16 sps:$4 sm:$0xff]  }
 0x4ae   : > { %7201 = vmatprep.subr.bf16.mxu1 %v13537_v16  ;;  %v13603_v16 = vld [vmem:[%s18191_s3 + $0x122c] ss:$16 sps:$4 sm:$0xff]  }
 0x4b0   : > { %6944 = vmatpush1.bf16.msra.mxu0 %v13532_v18  ;;  %v13598_v18 = vld [vmem:[%s18191_s3 + $0x1220] ss:$16 sps:$4 sm:$0xff]  }
 0x4b1   : > { %7202 = vmatpush1.bf16.msra.mxu1 %v13535_v19  ;;  %6945 = vmatprep.subr.bf16.mxu0 %v13540_v20  ;;  %v13601_v19 = vld [vmem:[%s18191_s3 + $0x1228] ss:$16 sps:$4 sm:$0xff]   ;;  %v13606_v20 = vld [vmem:[%s18191_s3 + $0x1244] ss:$16 sps:$4 sm:$0xff]  }
 0x4b2   : > { %7203 = vmatprep.subr.bf16.mxu1 %v13543_v21  ;;  %v13607_v21 = vld [vmem:[%s18191_s3 + $0x1248] ss:$16 sps:$4 sm:$0xff]  }
 0x4b4   : > { %6946 = vmatpush1.bf16.msra.mxu0 %v13538_v17  ;;  %v13610_v17 = vld [vmem:[%s18191_s3 + $0x1260] ss:$16 sps:$4 sm:$0xff]  }
 0x4b5   : > { %7204 = vmatpush1.bf16.msra.mxu1 %v13541_v36  ;;  %6947 = vmatprep.subr.bf16.mxu0 %v13546_v38  ;;  %v13613_v36 = vld [vmem:[%s18191_s3 + $0x1268] ss:$16 sps:$4 sm:$0xff]   ;;  %v13618_v38 = vld [vmem:[%s18191_s3 + $0x1284] ss:$16 sps:$4 sm:$0xff]  }
 0x4b6   : > { %7205 = vmatprep.subr.bf16.mxu1 %v13549_v29  ;;  %v13621_v29 = vld [vmem:[%s18191_s3 + $0x128c] ss:$16 sps:$4 sm:$0xff]  }
 0x4b8   : > { %6948 = vmatpush1.bf16.msra.mxu0 %v13544_v39  ;;  %v13616_v39 = vld [vmem:[%s18191_s3 + $0x1280] ss:$16 sps:$4 sm:$0xff]  }
 0x4b9   : > { %7206 = vmatpush1.bf16.msra.mxu1 %v13547_v40  ;;  %6949 = vmatprep.subr.bf16.mxu0 %v13552_v41  ;;  %v13619_v40 = vld [vmem:[%s18191_s3 + $0x1288] ss:$16 sps:$4 sm:$0xff]   ;;  %v13624_v41 = vld [vmem:[%s18191_s3 + $0x12a4] ss:$16 sps:$4 sm:$0xff]  }
 0x4ba   : > { %7207 = vmatprep.subr.bf16.mxu1 %v13555_v45  ;;  %v13627_v45 = vld [vmem:[%s18191_s3 + $0x12ac] ss:$16 sps:$4 sm:$0xff]  }
 0x4bc   : > { %6950 = vmatpush1.bf16.msra.mxu0 %v13550_v46  ;;  %v13622_v46 = vld [vmem:[%s18191_s3 + $0x12a0] ss:$16 sps:$4 sm:$0xff]  }
 0x4bd   : > { %7208 = vmatpush1.bf16.msra.mxu1 %v13553_v48  ;;  %6951 = vmatprep.subr.bf16.mxu0 %v13558_v49  ;;  %v13625_v48 = vld [vmem:[%s18191_s3 + $0x12a8] ss:$16 sps:$4 sm:$0xff]   ;;  %v13630_v49 = vld [vmem:[%s18191_s3 + $0x12c4] ss:$16 sps:$4 sm:$0xff]  }
 0x4be   : > { %7209 = vmatprep.subr.bf16.mxu1 %v13561_v50 }
 0x4c0   : > { %6952 = vmatpush1.bf16.msra.mxu0 %v13556_v51  ;;  %v13633_v51 = vld [vmem:[%s18191_s3 + $0x12cc] ss:$16 sps:$4 sm:$0xff]  }
 0x4c1   : > { %7210 = vmatpush1.bf16.msra.mxu1 %v13559_v52  ;;  %6953 = vmatprep.subr.bf16.mxu0 %v13564_v53 }
 0x4c2   : > { %7211 = vmatprep.subr.bf16.mxu1 %v13567_v55 }
 0x4c4   : > { %6954 = vmatpush1.bf16.msra.mxu0 %v13562_v27 }
 0x4c5   : > { %7212 = vmatpush1.bf16.msra.mxu1 %v13565_v58  ;;  %6955 = vmatprep.subr.bf16.mxu0 %v13570_v59  ;;  %v13628_v58 = vld [vmem:[%s18191_s3 + $0x12c0] ss:$16 sps:$4 sm:$0xff]  }
 0x4c6   : > { %7213 = vmatprep.subr.bf16.mxu1 %v13573_v4 }
 0x4c8   : > { %6956 = vmatpush1.bf16.msra.mxu0 %v13568_v62  ;;  %v13631_v62 = vld [vmem:[%s18191_s3 + $0x12c8] ss:$16 sps:$4 sm:$0xff]  }
 0x4c9   : > { %7214 = vmatpush1.bf16.msra.mxu1 %v13571_v2  ;;  %6957 = vmatprep.subr.bf16.mxu0 %v13576_v56  ;;  %v13636_v2 = vld [vmem:[%s18191_s3 + $0x12e4] ss:$16 sps:$4 sm:$0xff]  }
 0x4ca   : > { %7215 = vmatprep.subr.bf16.mxu1 %v13579_v8  ;;  %v13639_v8 = vld [vmem:[%s18191_s3 + $0x12ec] ss:$16 sps:$4 sm:$0xff]  }
 0x4cc   : > { %6958 = vmatpush1.bf16.msra.mxu0 %v13574_v22  ;;  %v13634_v22 = vld [vmem:[%s18191_s3 + $0x12e0] ss:$16 sps:$4 sm:$0xff]  }
 0x4cd   : > { %7216 = vmatpush1.bf16.msra.mxu1 %v13577_v5  ;;  %6959 = vmatprep.subr.bf16.mxu0 %v13582_v54  ;;  %v13637_v5 = vld [vmem:[%s18191_s3 + $0x12e8] ss:$16 sps:$4 sm:$0xff]   ;;  %v13642_v54 = vld [vmem:[%s18191_s3 + $0x1304] ss:$16 sps:$4 sm:$0xff]  }
 0x4ce   : > { %7217 = vmatprep.subr.bf16.mxu1 %v13585_v57  ;;  %v13645_v57 = vld [vmem:[%s18191_s3 + $0x130c] ss:$16 sps:$4 sm:$0xff]  }
 0x4d0   : > { %6960 = vmatpush1.bf16.msra.mxu0 %v13580_v6  ;;  %v13640_v6 = vld [vmem:[%s18191_s3 + $0x1300] ss:$16 sps:$4 sm:$0xff]  }
 0x4d1   : > { %7218 = vmatpush1.bf16.msra.mxu1 %v13583_v7  ;;  %6961 = vmatprep.subr.bf16.mxu0 %v13588_v60  ;;  %v13643_v7 = vld [vmem:[%s18191_s3 + $0x1308] ss:$16 sps:$4 sm:$0xff]   ;;  %v13648_v60 = vld [vmem:[%s18191_s3 + $0x1324] ss:$16 sps:$4 sm:$0xff]  }
 0x4d2   : > { %7219 = vmatprep.subr.bf16.mxu1 %v13591_v61  ;;  %v13651_v61 = vld [vmem:[%s18191_s3 + $0x132c] ss:$16 sps:$4 sm:$0xff]  }
 0x4d4   : > { %6962 = vmatpush1.bf16.msra.mxu0 %v13586_v63  ;;  %v13646_v63 = vld [vmem:[%s18191_s3 + $0x1320] ss:$16 sps:$4 sm:$0xff]  }
 0x4d5   : > { %7220 = vmatpush1.bf16.msra.mxu1 %v13589_v1  ;;  %6974 = vmatprep.subr.bf16.mxu0 %v13594_v9  ;;  %v13649_v1 = vld [vmem:[%s18191_s3 + $0x1328] ss:$16 sps:$4 sm:$0xff]   ;;  %v13654_v9 = vld [vmem:[%s18191_s3 + $0x1344] ss:$16 sps:$4 sm:$0xff]  }
 0x4d6   : > { %7232 = vmatprep.subr.bf16.mxu1 %v13597_v10  ;;  %v13657_v10 = vld [vmem:[%s18191_s3 + $0x134c] ss:$16 sps:$4 sm:$0xff]  }
 0x4d7   : > { %11560 = vmatmul.mubr.msk.bf16.vlgmr.msra.gmra.mrb[20].mxu0 %vm15416_vm1, %v14961_v43 }
 0x4d8   : > { %11596 = vmatmul.mubr.msk.bf16.vlgmr.msra.gmra.mrb[20].mxu1 %vm15416_vm1, %v14961_v43  ;;  %6975 = vmatpush1.bf16.msra.mxu0 %v13592_v11  ;;  %v13609_v43 = vld [vmem:[%s18191_s3 + $0x124c] ss:$16 sps:$4 sm:$0xff]   ;;  %v13652_v11 = vld [vmem:[%s18191_s3 + $0x1340] ss:$16 sps:$4 sm:$0xff]  }
 0x4d9   : > { %11563 = vmatprep.mubr.msk.bf16.mxu0 %vm15428_vm3, %v14986_v13  ;;  %7233 = vmatpush1.bf16.msra.mxu1 %v13595_v3  ;;  %v13655_v3 = vld [vmem:[%s18191_s3 + $0x1348] ss:$16 sps:$4 sm:$0xff]  }
 0x4da   : > { %11599 = vmatprep.mubr.msk.bf16.mxu1 %vm15428_vm3, %v14986_v13  ;;  %6976 = vmatprep.subr.bf16.mxu0 %v13600_v14  ;;  %v13612_v13 = vld [vmem:[%s18191_s3 + $0x1264] ss:$16 sps:$4 sm:$0xff]  }
 0x4db   : > { %7234 = vmatprep.subr.bf16.mxu1 %v13603_v16  ;;  %v13660_v14 = vld [vmem:[%s18191_s3 + $0x1364] ss:$16 sps:$4 sm:$0xff]   ;;  %v13663_v16 = vld [vmem:[%s18191_s3 + $0x136c] ss:$16 sps:$4 sm:$0xff]  }
 0x4dc   : > { %6977 = vmatpush1.bf16.msra.mxu0 %v13598_v18  ;;  %v13658_v18 = vld [vmem:[%s18191_s3 + $0x1360] ss:$16 sps:$4 sm:$0xff]  }
 0x4dd   : > { %7235 = vmatpush1.bf16.msra.mxu1 %v13601_v19  ;;  %6978 = vmatprep.subr.bf16.mxu0 %v13606_v20  ;;  %v13661_v19 = vld [vmem:[%s18191_s3 + $0x1368] ss:$16 sps:$4 sm:$0xff]   ;;  %v13666_v20 = vld [vmem:[%s18191_s3 + $0x1384] ss:$16 sps:$4 sm:$0xff]  }
 0x4de   : > { %7236 = vmatprep.subr.bf16.mxu1 %v13609_v43  ;;  %v13669_v43 = vld [vmem:[%s18191_s3 + $0x138c] ss:$16 sps:$4 sm:$0xff]  }
 0x4e0   : > { %6979 = vmatpush1.bf16.msra.mxu0 %v13604_v42  ;;  %v13664_v42 = vld [vmem:[%s18191_s3 + $0x1380] ss:$16 sps:$4 sm:$0xff]  }
 0x4e1   : > { %7237 = vmatpush1.bf16.msra.mxu1 %v13607_v21  ;;  %6980 = vmatprep.subr.bf16.mxu0 %v13612_v13  ;;  %v13667_v21 = vld [vmem:[%s18191_s3 + $0x1388] ss:$16 sps:$4 sm:$0xff]   ;;  %v13672_v13 = vld [vmem:[%s18191_s3 + $0x13a4] ss:$16 sps:$4 sm:$0xff]  }
 0x4e2   : > { %7238 = vmatprep.subr.bf16.mxu1 %v13615_v47  ;;  %v13675_v47 = vld [vmem:[%s18191_s3 + $0x13ac] ss:$16 sps:$4 sm:$0xff]  }
 0x4e4   : > { %6981 = vmatpush1.bf16.msra.mxu0 %v13610_v17  ;;  %v13670_v17 = vld [vmem:[%s18191_s3 + $0x13a0] ss:$16 sps:$4 sm:$0xff]  }
 0x4e5   : > { %7239 = vmatpush1.bf16.msra.mxu1 %v13613_v36  ;;  %6982 = vmatprep.subr.bf16.mxu0 %v13618_v38  ;;  %v13673_v36 = vld [vmem:[%s18191_s3 + $0x13a8] ss:$16 sps:$4 sm:$0xff]   ;;  %v13678_v38 = vld [vmem:[%s18191_s3 + $0x13c4] ss:$16 sps:$4 sm:$0xff]  }
 0x4e6   : > { %7240 = vmatprep.subr.bf16.mxu1 %v13621_v29  ;;  %v13681_v29 = vld [vmem:[%s18191_s3 + $0x13cc] ss:$16 sps:$4 sm:$0xff]  }
 0x4e8   : > { %6983 = vmatpush1.bf16.msra.mxu0 %v13616_v39  ;;  %v13676_v39 = vld [vmem:[%s18191_s3 + $0x13c0] ss:$16 sps:$4 sm:$0xff]  }
 0x4e9   : > { %7241 = vmatpush1.bf16.msra.mxu1 %v13619_v40  ;;  %6984 = vmatprep.subr.bf16.mxu0 %v13624_v41  ;;  %v13679_v40 = vld [vmem:[%s18191_s3 + $0x13c8] ss:$16 sps:$4 sm:$0xff]   ;;  %v13684_v41 = vld [vmem:[%s18191_s3 + $0x13e4] ss:$16 sps:$4 sm:$0xff]  }
 0x4ea   : > { %v16723_v50 = vpop.f32.mrb[16].mxu0  ;;  %7242 = vmatprep.subr.bf16.mxu1 %v13627_v45  ;;  %v13687_v45 = vld [vmem:[%s18191_s3 + $0x13ec] ss:$16 sps:$4 sm:$0xff]  }
 0x4eb   : > { %v16728_v52 = vpop.f32.mrb[16].mxu1  ;;  %v16730_v53 = vpop.f32.mrb[17].mxu0 }
 0x4ec   : > { %v16732_v55 = vpop.f32.mrb[17].mxu1  ;;  %v16734_v27 = vpop.f32.mrb[18].mxu0  ;;  %6985 = vmatpush1.bf16.msra.mxu0 %v13622_v46  ;;  %v13682_v46 = vld [vmem:[%s18191_s3 + $0x13e0] ss:$16 sps:$4 sm:$0xff]  }
 0x4ed   : > { %v16739_v59 = vpop.f32.mrb[18].mxu1  ;;  %7243 = vmatpush1.bf16.msra.mxu1 %v13625_v48  ;;  %v16741_v4 = vpop.f32.mrb[19].mxu0  ;;  %6986 = vmatprep.subr.bf16.mxu0 %v13630_v49  ;;  %v13685_v48 = vld [vmem:[%s18191_s3 + $0x13e8] ss:$16 sps:$4 sm:$0xff]   ;;  %v13690_v49 = vld [vmem:[%s18191_s3 + $0x1404] ss:$16 sps:$4 sm:$0xff]  }
 0x4ee   : > { %v16749_v56 = vpop.f32.mrb[19].mxu1  ;;  %7244 = vmatprep.subr.bf16.mxu1 %v13633_v51  ;;  %v13693_v51 = vld [vmem:[%s18191_s3 + $0x140c] ss:$16 sps:$4 sm:$0xff]  }
 0x4f0   : > { %6987 = vmatpush1.bf16.msra.mxu0 %v13628_v58  ;;  %v13688_v58 = vld [vmem:[%s18191_s3 + $0x1400] ss:$16 sps:$4 sm:$0xff]  }
 0x4f1   : > { %7245 = vmatpush1.bf16.msra.mxu1 %v13631_v62  ;;  %6988 = vmatprep.subr.bf16.mxu0 %v13636_v2  ;;  %v13691_v62 = vld [vmem:[%s18191_s3 + $0x1408] ss:$16 sps:$4 sm:$0xff]   ;;  %v13696_v2 = vld [vmem:[%s18191_s3 + $0x1424] ss:$16 sps:$4 sm:$0xff]  }
 0x4f2   : > { %7246 = vmatprep.subr.bf16.mxu1 %v13639_v8  ;;  %v13699_v8 = vld [vmem:[%s18191_s3 + $0x142c] ss:$16 sps:$4 sm:$0xff]  }
 0x4f4   : > { %6989 = vmatpush1.bf16.msra.mxu0 %v13634_v22  ;;  %v13694_v22 = vld [vmem:[%s18191_s3 + $0x1420] ss:$16 sps:$4 sm:$0xff]  }
 0x4f5   : > { %7247 = vmatpush1.bf16.msra.mxu1 %v13637_v5  ;;  %6990 = vmatprep.subr.bf16.mxu0 %v13642_v54  ;;  %v13697_v5 = vld [vmem:[%s18191_s3 + $0x1428] ss:$16 sps:$4 sm:$0xff]   ;;  %v13702_v54 = vld [vmem:[%s18191_s3 + $0x1444] ss:$16 sps:$4 sm:$0xff]  }
 0x4f6   : > { %7248 = vmatprep.subr.bf16.mxu1 %v13645_v57  ;;  %v13700_v57 = vld [vmem:[%s18191_s3 + $0x1440] ss:$16 sps:$4 sm:$0xff]  }
 0x4f8   : > { %6991 = vmatpush1.bf16.msra.mxu0 %v13640_v6  ;;  %v13703_v6 = vld [vmem:[%s18191_s3 + $0x1448] ss:$16 sps:$4 sm:$0xff]  }
 0x4f9   : > { %7249 = vmatpush1.bf16.msra.mxu1 %v13643_v7  ;;  %6992 = vmatprep.subr.bf16.mxu0 %v13648_v60  ;;  %v13711_v7 = vld [vmem:[%s18191_s3 + $0x146c] ss:$16 sps:$4 sm:$0xff]   ;;  %v13706_v60 = vld [vmem:[%s18191_s3 + $0x1460] ss:$16 sps:$4 sm:$0xff]  }
 0x4fa   : > { %7250 = vmatprep.subr.bf16.mxu1 %v13651_v61  ;;  %v13709_v61 = vld [vmem:[%s18191_s3 + $0x1468] ss:$16 sps:$4 sm:$0xff]  }
 0x4fc   : > { %6993 = vmatpush1.bf16.msra.mxu0 %v13646_v63  ;;  %v13714_v63 = vld [vmem:[%s18191_s3 + $0x1484] ss:$16 sps:$4 sm:$0xff]  }
 0x4fd   : > { %7251 = vmatpush1.bf16.msra.mxu1 %v13649_v1  ;;  %6994 = vmatprep.subr.bf16.mxu0 %v13654_v9  ;;  %v13717_v1 = vld [vmem:[%s18191_s3 + $0x148c] ss:$16 sps:$4 sm:$0xff]   ;;  %v13712_v9 = vld [vmem:[%s18191_s3 + $0x1480] ss:$16 sps:$4 sm:$0xff]  }
 0x4fe   : > { %7252 = vmatprep.subr.bf16.mxu1 %v13657_v10  ;;  %v13715_v10 = vld [vmem:[%s18191_s3 + $0x1488] ss:$16 sps:$4 sm:$0xff]  }
 0x500   : > { %6995 = vmatpush1.bf16.msra.mxu0 %v13652_v11  ;;  %v13720_v11 = vld [vmem:[%s18191_s3 + $0x14a4] ss:$16 sps:$4 sm:$0xff]  }
 0x501   : > { %7253 = vmatpush1.bf16.msra.mxu1 %v13655_v3  ;;  %6996 = vmatprep.subr.bf16.mxu0 %v13660_v14  ;;  %v13723_v3 = vld [vmem:[%s18191_s3 + $0x14ac] ss:$16 sps:$4 sm:$0xff]   ;;  %v13718_v14 = vld [vmem:[%s18191_s3 + $0x14a0] ss:$16 sps:$4 sm:$0xff]  }
 0x502   : > { %7254 = vmatprep.subr.bf16.mxu1 %v13663_v16  ;;  %v13721_v16 = vld [vmem:[%s18191_s3 + $0x14a8] ss:$16 sps:$4 sm:$0xff]  }
 0x504   : > { %6997 = vmatpush1.bf16.msra.mxu0 %v13658_v18  ;;  %v13726_v18 = vld [vmem:[%s18191_s3 + $0x14c4] ss:$16 sps:$4 sm:$0xff]  }
 0x505   : > { %7255 = vmatpush1.bf16.msra.mxu1 %v13661_v19  ;;  %6998 = vmatprep.subr.bf16.mxu0 %v13666_v20  ;;  %v13729_v19 = vld [vmem:[%s18191_s3 + $0x14cc] ss:$16 sps:$4 sm:$0xff]   ;;  %v13724_v20 = vld [vmem:[%s18191_s3 + $0x14c0] ss:$16 sps:$4 sm:$0xff]  }
 0x506   : > { %7256 = vmatprep.subr.bf16.mxu1 %v13669_v43  ;;  %v13727_v43 = vld [vmem:[%s18191_s3 + $0x14c8] ss:$16 sps:$4 sm:$0xff]  }
 0x508   : > { %6999 = vmatpush1.bf16.msra.mxu0 %v13664_v42  ;;  %v13732_v42 = vld [vmem:[%s18191_s3 + $0x14e4] ss:$16 sps:$4 sm:$0xff]  }
 0x509   : > { %7257 = vmatpush1.bf16.msra.mxu1 %v13667_v21  ;;  %7000 = vmatprep.subr.bf16.mxu0 %v13672_v13  ;;  %v13735_v21 = vld [vmem:[%s18191_s3 + $0x14ec] ss:$16 sps:$4 sm:$0xff]   ;;  %v13730_v13 = vld [vmem:[%s18191_s3 + $0x14e0] ss:$16 sps:$4 sm:$0xff]  }
 0x50a   : > { %7258 = vmatprep.subr.bf16.mxu1 %v13675_v47  ;;  %v13733_v47 = vld [vmem:[%s18191_s3 + $0x14e8] ss:$16 sps:$4 sm:$0xff]  }
 0x50c   : > { %7001 = vmatpush1.bf16.msra.mxu0 %v13670_v17  ;;  %v13738_v17 = vld [vmem:[%s18191_s3 + $0x1504] ss:$16 sps:$4 sm:$0xff]  }
 0x50d   : > { %7259 = vmatpush1.bf16.msra.mxu1 %v13673_v36  ;;  %7002 = vmatprep.subr.bf16.mxu0 %v13678_v38  ;;  %v13741_v36 = vld [vmem:[%s18191_s3 + $0x150c] ss:$16 sps:$4 sm:$0xff]   ;;  %v13736_v38 = vld [vmem:[%s18191_s3 + $0x1500] ss:$16 sps:$4 sm:$0xff]  }
 0x50e   : > { %7260 = vmatprep.subr.bf16.mxu1 %v13681_v29  ;;  %v13739_v29 = vld [vmem:[%s18191_s3 + $0x1508] ss:$16 sps:$4 sm:$0xff]  }
 0x510   : > { %7003 = vmatpush1.bf16.msra.mxu0 %v13676_v39  ;;  %v13744_v39 = vld [vmem:[%s18191_s3 + $0x1524] ss:$16 sps:$4 sm:$0xff]  }
 0x511   : > { %7261 = vmatpush1.bf16.msra.mxu1 %v13679_v40  ;;  %7004 = vmatprep.subr.bf16.mxu0 %v13684_v41  ;;  %v13747_v40 = vld [vmem:[%s18191_s3 + $0x152c] ss:$16 sps:$4 sm:$0xff]   ;;  %v13742_v41 = vld [vmem:[%s18191_s3 + $0x1520] ss:$16 sps:$4 sm:$0xff]  }
 0x512   : > { %7262 = vmatprep.subr.bf16.mxu1 %v13687_v45  ;;  %v13745_v45 = vld [vmem:[%s18191_s3 + $0x1528] ss:$16 sps:$4 sm:$0xff]  }
 0x514   : > { %7005 = vmatpush1.bf16.msra.mxu0 %v13682_v46  ;;  %v13750_v46 = vld [vmem:[%s18191_s3 + $0x1544] ss:$16 sps:$4 sm:$0xff]  }
 0x515   : > { %7263 = vmatpush1.bf16.msra.mxu1 %v13685_v48  ;;  %7017 = vmatprep.subr.bf16.mxu0 %v13690_v49  ;;  %v13753_v48 = vld [vmem:[%s18191_s3 + $0x154c] ss:$16 sps:$4 sm:$0xff]   ;;  %v13748_v49 = vld [vmem:[%s18191_s3 + $0x1540] ss:$16 sps:$4 sm:$0xff]  }
 0x516   : > { %7275 = vmatprep.subr.bf16.mxu1 %v13693_v51  ;;  %v13751_v51 = vld [vmem:[%s18191_s3 + $0x1548] ss:$16 sps:$4 sm:$0xff]  }
 0x517   : > { %7007 = vmatmul.mubr.bf16.vlgmr.msra.gmra.mrb[20].mxu0 %v14983_v12 }
 0x518   : > { %7265 = vmatmul.mubr.bf16.vlgmr.msra.gmra.mrb[20].mxu1 %v14983_v12  ;;  %7018 = vmatpush1.bf16.msra.mxu0 %v13688_v58  ;;  %v13705_v12 = vld [vmem:[%s18191_s3 + $0x144c] ss:$16 sps:$4 sm:$0xff]   ;;  %v13756_v58 = vld [vmem:[%s18191_s3 + $0x1564] ss:$16 sps:$4 sm:$0xff]  }
 0x519   : > { %11566 = vmatprep.mubr.msk.bf16.mxu0 %vm14263_vm2, %v15008_v23  ;;  %7276 = vmatpush1.bf16.msra.mxu1 %v13691_v62  ;;  %v13759_v62 = vld [vmem:[%s18191_s3 + $0x156c] ss:$16 sps:$4 sm:$0xff]  }
 0x51a   : > { %11602 = vmatprep.mubr.msk.bf16.mxu1 %vm14263_vm2, %v15008_v23  ;;  %7019 = vmatprep.subr.bf16.mxu0 %v13696_v2  ;;  %v13708_v23 = vld [vmem:[%s18191_s3 + $0x1464] ss:$16 sps:$4 sm:$0xff]   ;;  %v13754_v2 = vld [vmem:[%s18191_s3 + $0x1560] ss:$16 sps:$4 sm:$0xff]  }
 0x51b   : > { %7277 = vmatprep.subr.bf16.mxu1 %v13699_v8  ;;  %v13757_v8 = vld [vmem:[%s18191_s3 + $0x1568] ss:$16 sps:$4 sm:$0xff]  }
 0x51c   : > { %7020 = vmatpush1.bf16.msra.mxu0 %v13694_v22  ;;  %v13762_v22 = vld [vmem:[%s18191_s3 + $0x1584] ss:$16 sps:$4 sm:$0xff]  }
 0x51d   : > { %7278 = vmatpush1.bf16.msra.mxu1 %v13697_v5  ;;  %7021 = vmatprep.subr.bf16.mxu0 %v13702_v54  ;;  %v13765_v5 = vld [vmem:[%s18191_s3 + $0x158c] ss:$16 sps:$4 sm:$0xff]   ;;  %v13760_v54 = vld [vmem:[%s18191_s3 + $0x1580] ss:$16 sps:$4 sm:$0xff]  }
 0x51e   : > { %7279 = vmatprep.subr.bf16.mxu1 %v13705_v12  ;;  %v13763_v12 = vld [vmem:[%s18191_s3 + $0x1588] ss:$16 sps:$4 sm:$0xff]  }
 0x520   : > { %7022 = vmatpush1.bf16.msra.mxu0 %v13700_v57  ;;  %v13768_v57 = vld [vmem:[%s18191_s3 + $0x15a4] ss:$16 sps:$4 sm:$0xff]  }
 0x521   : > { %7280 = vmatpush1.bf16.msra.mxu1 %v13703_v6  ;;  %7023 = vmatprep.subr.bf16.mxu0 %v13708_v23  ;;  %v13771_v6 = vld [vmem:[%s18191_s3 + $0x15ac] ss:$16 sps:$4 sm:$0xff]   ;;  %v13766_v23 = vld [vmem:[%s18191_s3 + $0x15a0] ss:$16 sps:$4 sm:$0xff]  }
 0x522   : > { %7281 = vmatprep.subr.bf16.mxu1 %v13711_v7  ;;  %v13769_v7 = vld [vmem:[%s18191_s3 + $0x15a8] ss:$16 sps:$4 sm:$0xff]  }
 0x524   : > { %7024 = vmatpush1.bf16.msra.mxu0 %v13706_v60  ;;  %v13774_v60 = vld [vmem:[%s18191_s3 + $0x15c4] ss:$16 sps:$4 sm:$0xff]  }
 0x525   : > { %7282 = vmatpush1.bf16.msra.mxu1 %v13709_v61  ;;  %7025 = vmatprep.subr.bf16.mxu0 %v13714_v63  ;;  %v13777_v61 = vld [vmem:[%s18191_s3 + $0x15cc] ss:$16 sps:$4 sm:$0xff]   ;;  %v13772_v63 = vld [vmem:[%s18191_s3 + $0x15c0] ss:$16 sps:$4 sm:$0xff]  }
 0x526   : > { %7283 = vmatprep.subr.bf16.mxu1 %v13717_v1  ;;  %v13775_v1 = vld [vmem:[%s18191_s3 + $0x15c8] ss:$16 sps:$4 sm:$0xff]  }
 0x528   : > { %7026 = vmatpush1.bf16.msra.mxu0 %v13712_v9  ;;  %v13780_v9 = vld [vmem:[%s18191_s3 + $0x15e4] ss:$16 sps:$4 sm:$0xff]  }
 0x529   : > { %7284 = vmatpush1.bf16.msra.mxu1 %v13715_v10  ;;  %7027 = vmatprep.subr.bf16.mxu0 %v13720_v11  ;;  %v13783_v10 = vld [vmem:[%s18191_s3 + $0x15ec] ss:$16 sps:$4 sm:$0xff]   ;;  %v13778_v11 = vld [vmem:[%s18191_s3 + $0x15e0] ss:$16 sps:$4 sm:$0xff]  }
 0x52a   : > { %7285 = vmatprep.subr.bf16.mxu1 %v13723_v3  ;;  %v13781_v3 = vld [vmem:[%s18191_s3 + $0x15e8] ss:$16 sps:$4 sm:$0xff]  }
 0x52c   : > { %7028 = vmatpush1.bf16.msra.mxu0 %v13718_v14  ;;  %v13786_v14 = vld [vmem:[%s18191_s3 + $0x1604] ss:$16 sps:$4 sm:$0xff]  }
 0x52d   : > { %7286 = vmatpush1.bf16.msra.mxu1 %v13721_v16  ;;  %7029 = vmatprep.subr.bf16.mxu0 %v13726_v18  ;;  %v13789_v16 = vld [vmem:[%s18191_s3 + $0x160c] ss:$16 sps:$4 sm:$0xff]   ;;  %v13784_v18 = vld [vmem:[%s18191_s3 + $0x1600] ss:$16 sps:$4 sm:$0xff]  }
 0x52e   : > { %7287 = vmatprep.subr.bf16.mxu1 %v13729_v19  ;;  %v13787_v19 = vld [vmem:[%s18191_s3 + $0x1608] ss:$16 sps:$4 sm:$0xff]  }
 0x530   : > { %7030 = vmatpush1.bf16.msra.mxu0 %v13724_v20  ;;  %v13792_v20 = vld [vmem:[%s18191_s3 + $0x1624] ss:$16 sps:$4 sm:$0xff]  }
 0x531   : > { %7288 = vmatpush1.bf16.msra.mxu1 %v13727_v43  ;;  %7031 = vmatprep.subr.bf16.mxu0 %v13732_v42  ;;  %v13795_v43 = vld [vmem:[%s18191_s3 + $0x162c] ss:$16 sps:$4 sm:$0xff]   ;;  %v13790_v42 = vld [vmem:[%s18191_s3 + $0x1620] ss:$16 sps:$4 sm:$0xff]  }
 0x532   : > { %7289 = vmatprep.subr.bf16.mxu1 %v13735_v21  ;;  %v13793_v21 = vld [vmem:[%s18191_s3 + $0x1628] ss:$16 sps:$4 sm:$0xff]  }
 0x534   : > { %7032 = vmatpush1.bf16.msra.mxu0 %v13730_v13  ;;  %v13798_v13 = vld [vmem:[%s18191_s3 + $0x1644] ss:$16 sps:$4 sm:$0xff]  }
 0x535   : > { %7290 = vmatpush1.bf16.msra.mxu1 %v13733_v47  ;;  %7033 = vmatprep.subr.bf16.mxu0 %v13738_v17  ;;  %v13796_v47 = vld [vmem:[%s18191_s3 + $0x1640] ss:$16 sps:$4 sm:$0xff]   ;;  %v13799_v17 = vld [vmem:[%s18191_s3 + $0x1648] ss:$16 sps:$4 sm:$0xff]  }
 0x536   : > { %7291 = vmatprep.subr.bf16.mxu1 %v13741_v36  ;;  %v13807_v36 = vld [vmem:[%s18191_s3 + $0x166c] ss:$16 sps:$4 sm:$0xff]  }
 0x538   : > { %7034 = vmatpush1.bf16.msra.mxu0 %v13736_v38  ;;  %v13802_v38 = vld [vmem:[%s18191_s3 + $0x1660] ss:$16 sps:$4 sm:$0xff]  }
 0x539   : > { %7292 = vmatpush1.bf16.msra.mxu1 %v13739_v29  ;;  %7035 = vmatprep.subr.bf16.mxu0 %v13744_v39  ;;  %v13805_v29 = vld [vmem:[%s18191_s3 + $0x1668] ss:$16 sps:$4 sm:$0xff]   ;;  %v13810_v39 = vld [vmem:[%s18191_s3 + $0x1684] ss:$16 sps:$4 sm:$0xff]  }
 0x53a   : > { %7293 = vmatprep.subr.bf16.mxu1 %v13747_v40  ;;  %v13813_v40 = vld [vmem:[%s18191_s3 + $0x168c] ss:$16 sps:$4 sm:$0xff]  }
 0x53c   : > { %7036 = vmatpush1.bf16.msra.mxu0 %v13742_v41  ;;  %v13808_v41 = vld [vmem:[%s18191_s3 + $0x1680] ss:$16 sps:$4 sm:$0xff]  }
 0x53d   : > { %7294 = vmatpush1.bf16.msra.mxu1 %v13745_v45  ;;  %7037 = vmatprep.subr.bf16.mxu0 %v13750_v46  ;;  %v13811_v45 = vld [vmem:[%s18191_s3 + $0x1688] ss:$16 sps:$4 sm:$0xff]   ;;  %v13816_v46 = vld [vmem:[%s18191_s3 + $0x16a4] ss:$16 sps:$4 sm:$0xff]  }
 0x53e   : > { %7295 = vmatprep.subr.bf16.mxu1 %v13753_v48  ;;  %v13819_v48 = vld [vmem:[%s18191_s3 + $0x16ac] ss:$16 sps:$4 sm:$0xff]  }
 0x540   : > { %7038 = vmatpush1.bf16.msra.mxu0 %v13748_v49  ;;  %v13814_v49 = vld [vmem:[%s18191_s3 + $0x16a0] ss:$16 sps:$4 sm:$0xff]  }
 0x541   : > { %7296 = vmatpush1.bf16.msra.mxu1 %v13751_v51  ;;  %7039 = vmatprep.subr.bf16.mxu0 %v13756_v58  ;;  %v13817_v51 = vld [vmem:[%s18191_s3 + $0x16a8] ss:$16 sps:$4 sm:$0xff]   ;;  %v13822_v58 = vld [vmem:[%s18191_s3 + $0x16c4] ss:$16 sps:$4 sm:$0xff]  }
 0x542   : > { %7297 = vmatprep.subr.bf16.mxu1 %v13759_v62  ;;  %v13825_v62 = vld [vmem:[%s18191_s3 + $0x16cc] ss:$16 sps:$4 sm:$0xff]  }
 0x544   : > { %7040 = vmatpush1.bf16.msra.mxu0 %v13754_v2  ;;  %v13820_v2 = vld [vmem:[%s18191_s3 + $0x16c0] ss:$16 sps:$4 sm:$0xff]  }
 0x545   : > { %7298 = vmatpush1.bf16.msra.mxu1 %v13757_v8  ;;  %7041 = vmatprep.subr.bf16.mxu0 %v13762_v22  ;;  %v13823_v8 = vld [vmem:[%s18191_s3 + $0x16c8] ss:$16 sps:$4 sm:$0xff]   ;;  %v13828_v22 = vld [vmem:[%s18191_s3 + $0x16e4] ss:$16 sps:$4 sm:$0xff]  }
 0x546   : > { %7299 = vmatprep.subr.bf16.mxu1 %v13765_v5  ;;  %v13831_v5 = vld [vmem:[%s18191_s3 + $0x16ec] ss:$16 sps:$4 sm:$0xff]  }
 0x548   : > { %7042 = vmatpush1.bf16.msra.mxu0 %v13760_v54  ;;  %v13826_v54 = vld [vmem:[%s18191_s3 + $0x16e0] ss:$16 sps:$4 sm:$0xff]  }
 0x549   : > { %7300 = vmatpush1.bf16.msra.mxu1 %v13763_v12  ;;  %7043 = vmatprep.subr.bf16.mxu0 %v13768_v57  ;;  %v13829_v12 = vld [vmem:[%s18191_s3 + $0x16e8] ss:$16 sps:$4 sm:$0xff]   ;;  %v13834_v57 = vld [vmem:[%s18191_s3 + $0x1704] ss:$16 sps:$4 sm:$0xff]  }
 0x54a   : > { %7301 = vmatprep.subr.bf16.mxu1 %v13771_v6  ;;  %v13837_v6 = vld [vmem:[%s18191_s3 + $0x170c] ss:$16 sps:$4 sm:$0xff]  }
 0x54c   : > { %7044 = vmatpush1.bf16.msra.mxu0 %v13766_v23  ;;  %v13832_v23 = vld [vmem:[%s18191_s3 + $0x1700] ss:$16 sps:$4 sm:$0xff]  }
 0x54d   : > { %7302 = vmatpush1.bf16.msra.mxu1 %v13769_v7  ;;  %7045 = vmatprep.subr.bf16.mxu0 %v13774_v60  ;;  %v13835_v7 = vld [vmem:[%s18191_s3 + $0x1708] ss:$16 sps:$4 sm:$0xff]   ;;  %v13840_v60 = vld [vmem:[%s18191_s3 + $0x1724] ss:$16 sps:$4 sm:$0xff]  }
 0x54e   : > { %7303 = vmatprep.subr.bf16.mxu1 %v13777_v61  ;;  %v13843_v61 = vld [vmem:[%s18191_s3 + $0x172c] ss:$16 sps:$4 sm:$0xff]  }
 0x550   : > { %7046 = vmatpush1.bf16.msra.mxu0 %v13772_v63  ;;  %v13838_v63 = vld [vmem:[%s18191_s3 + $0x1720] ss:$16 sps:$4 sm:$0xff]  }
 0x551   : > { %7304 = vmatpush1.bf16.msra.mxu1 %v13775_v1  ;;  %7047 = vmatprep.subr.bf16.mxu0 %v13780_v9  ;;  %v13841_v1 = vld [vmem:[%s18191_s3 + $0x1728] ss:$16 sps:$4 sm:$0xff]   ;;  %v13846_v9 = vld [vmem:[%s18191_s3 + $0x1744] ss:$16 sps:$4 sm:$0xff]  }
 0x552   : > { %7305 = vmatprep.subr.bf16.mxu1 %v13783_v10  ;;  %v13849_v10 = vld [vmem:[%s18191_s3 + $0x174c] ss:$16 sps:$4 sm:$0xff]  }
 0x554   : > { %7048 = vmatpush1.bf16.msra.mxu0 %v13778_v11  ;;  %v13844_v11 = vld [vmem:[%s18191_s3 + $0x1740] ss:$16 sps:$4 sm:$0xff]  }
 0x555   : > { %7306 = vmatpush1.bf16.msra.mxu1 %v13781_v3  ;;  %7060 = vmatprep.subr.bf16.mxu0 %v13786_v14  ;;  %v13847_v3 = vld [vmem:[%s18191_s3 + $0x1748] ss:$16 sps:$4 sm:$0xff]   ;;  %v13852_v14 = vld [vmem:[%s18191_s3 + $0x1764] ss:$16 sps:$4 sm:$0xff]  }
 0x556   : > { %7318 = vmatprep.subr.bf16.mxu1 %v13789_v16  ;;  %v13855_v16 = vld [vmem:[%s18191_s3 + $0x176c] ss:$16 sps:$4 sm:$0xff]  }
 0x557   : > { %11569 = vmatmul.mubr.msk.bf16.vlgmr.msra.gmra.mrb[20].mxu0 %vm14263_vm2, %v14970_v30 }
 0x558   : > { %11605 = vmatmul.mubr.msk.bf16.vlgmr.msra.gmra.mrb[20].mxu1 %vm14263_vm2, %v14970_v30  ;;  %7061 = vmatpush1.bf16.msra.mxu0 %v13784_v18  ;;  %v13801_v30 = vld [vmem:[%s18191_s3 + $0x164c] ss:$16 sps:$4 sm:$0xff]   ;;  %v13850_v18 = vld [vmem:[%s18191_s3 + $0x1760] ss:$16 sps:$4 sm:$0xff]  }
 0x559   : > { %11572 = vmatprep.mubr.msk.bf16.mxu0 %vm14263_vm2, %v15027_v37  ;;  %7319 = vmatpush1.bf16.msra.mxu1 %v13787_v19  ;;  %v13853_v19 = vld [vmem:[%s18191_s3 + $0x1768] ss:$16 sps:$4 sm:$0xff]  }
 0x55a   : > { %11608 = vmatprep.mubr.msk.bf16.mxu1 %vm14263_vm2, %v15027_v37  ;;  %7062 = vmatprep.subr.bf16.mxu0 %v13792_v20  ;;  %v13804_v37 = vld [vmem:[%s18191_s3 + $0x1664] ss:$16 sps:$4 sm:$0xff]  }
 0x55b   : > { %7320 = vmatprep.subr.bf16.mxu1 %v13795_v43  ;;  %v13858_v20 = vld [vmem:[%s18191_s3 + $0x1784] ss:$16 sps:$4 sm:$0xff]   ;;  %v13861_v43 = vld [vmem:[%s18191_s3 + $0x178c] ss:$16 sps:$4 sm:$0xff]  }
 0x55c   : > { %7063 = vmatpush1.bf16.msra.mxu0 %v13790_v42  ;;  %v13856_v42 = vld [vmem:[%s18191_s3 + $0x1780] ss:$16 sps:$4 sm:$0xff]  }
 0x55d   : > { %7321 = vmatpush1.bf16.msra.mxu1 %v13793_v21  ;;  %7064 = vmatprep.subr.bf16.mxu0 %v13798_v13  ;;  %v13859_v21 = vld [vmem:[%s18191_s3 + $0x1788] ss:$16 sps:$4 sm:$0xff]   ;;  %v13864_v13 = vld [vmem:[%s18191_s3 + $0x17a4] ss:$16 sps:$4 sm:$0xff]  }
 0x55e   : > { %7322 = vmatprep.subr.bf16.mxu1 %v13801_v30  ;;  %v13867_v30 = vld [vmem:[%s18191_s3 + $0x17ac] ss:$16 sps:$4 sm:$0xff]  }
 0x560   : > { %7065 = vmatpush1.bf16.msra.mxu0 %v13796_v47  ;;  %v13862_v47 = vld [vmem:[%s18191_s3 + $0x17a0] ss:$16 sps:$4 sm:$0xff]  }
 0x561   : > { %7323 = vmatpush1.bf16.msra.mxu1 %v13799_v17  ;;  %7066 = vmatprep.subr.bf16.mxu0 %v13804_v37  ;;  %v13865_v17 = vld [vmem:[%s18191_s3 + $0x17a8] ss:$16 sps:$4 sm:$0xff]   ;;  %v13870_v37 = vld [vmem:[%s18191_s3 + $0x17c4] ss:$16 sps:$4 sm:$0xff]  }
 0x562   : > { %7324 = vmatprep.subr.bf16.mxu1 %v13807_v36  ;;  %v13873_v36 = vld [vmem:[%s18191_s3 + $0x17cc] ss:$16 sps:$4 sm:$0xff]  }
 0x564   : > { %7067 = vmatpush1.bf16.msra.mxu0 %v13802_v38  ;;  %v13868_v38 = vld [vmem:[%s18191_s3 + $0x17c0] ss:$16 sps:$4 sm:$0xff]  }
 0x565   : > { %7325 = vmatpush1.bf16.msra.mxu1 %v13805_v29  ;;  %7068 = vmatprep.subr.bf16.mxu0 %v13810_v39  ;;  %v13871_v29 = vld [vmem:[%s18191_s3 + $0x17c8] ss:$16 sps:$4 sm:$0xff]   ;;  %v13876_v39 = vld [vmem:[%s18191_s3 + $0x17e4] ss:$16 sps:$4 sm:$0xff]  }
 0x566   : > { %7326 = vmatprep.subr.bf16.mxu1 %v13813_v40  ;;  %v13879_v40 = vld [vmem:[%s18191_s3 + $0x17ec] ss:$16 sps:$4 sm:$0xff]  }
 0x568   : > { %7069 = vmatpush1.bf16.msra.mxu0 %v13808_v41  ;;  %v13874_v41 = vld [vmem:[%s18191_s3 + $0x17e0] ss:$16 sps:$4 sm:$0xff]  }
 0x569   : > { %7327 = vmatpush1.bf16.msra.mxu1 %v13811_v45  ;;  %7070 = vmatprep.subr.bf16.mxu0 %v13816_v46  ;;  %v13877_v45 = vld [vmem:[%s18191_s3 + $0x17e8] ss:$16 sps:$4 sm:$0xff]   ;;  %v13884_v46 = vld [vmem:[%s18193_s5 + $0x120] sm:$0xff]  }
 0x56a   : > { %7328 = vmatprep.subr.bf16.mxu1 %v13819_v48  ;;  %v13885_v48 = vld [vmem:[%s18193_s5 + $0xe0] sm:$0xff]  }
 0x56c   : > { %7071 = vmatpush1.bf16.msra.mxu0 %v13814_v49  ;;  %v13880_v49 = vld [vmem:[%s18193_s5 + $0x160] sm:$0xff]  }
 0x56d   : > { %7329 = vmatpush1.bf16.msra.mxu1 %v13817_v51  ;;  %7072 = vmatprep.subr.bf16.mxu0 %v13822_v58  ;;  %v13887_v51 = vld [vmem:[%s18193_s5 + $0x128] sm:$0xff]  }
 0x56e   : > { %7330 = vmatprep.subr.bf16.mxu1 %v13825_v62  ;;  %v13888_v58 = vld [vmem:[%s18193_s5 + $0xe8] sm:$0xff]  }
 0x56f   : > { %v13881_v62 = vld [vmem:[%s18193_s5 + $0x168] sm:$0xff]  }
 0x570   : > { %7073 = vmatpush1.bf16.msra.mxu0 %v13820_v2  ;;  %v13890_v2 = vld [vmem:[%s18193_s5 + $0x130] sm:$0xff]  }
 0x571   : > { %7331 = vmatpush1.bf16.msra.mxu1 %v13823_v8  ;;  %7074 = vmatprep.subr.bf16.mxu0 %v13828_v22  ;;  %v13883_v8 = vld [vmem:[%s18193_s5 + $0x178] sm:$0xff]   ;;  %v13886_v22 = vld [vmem:[%s18193_s5 + $0x180] sm:$0xff]  }
 0x572   : > { %7332 = vmatprep.subr.bf16.mxu1 %v13831_v5  ;;  %v13889_v5 = vld [vmem:[%s18193_s5 + $0x188] sm:$0xff]  }
 0x574   : > { %7075 = vmatpush1.bf16.msra.mxu0 %v13826_v54  ;;  %v13892_v54 = vld [vmem:[%s18193_s5 + $0x190] sm:$0xff]  }
 0x575   : > { %7333 = vmatpush1.bf16.msra.mxu1 %v13829_v12  ;;  %7076 = vmatprep.subr.bf16.mxu0 %v13834_v57  ;;  %v14157_v12 = vmov 1983009808  }
 0x576   : > { %7334 = vmatprep.subr.bf16.mxu1 %v13837_v6  ;;  %v7382_v57 = vunpack.c.l.s4 %v14157_v12 }
 0x578   : > { %7077 = vmatpush1.bf16.msra.mxu0 %v13832_v23  ;;  %v7383_v6 = vunpack.c.0.s8 %v7382_v57  ;;  %v13893_v23 = vld [vmem:[%s18193_s5 + $0x138] sm:$0xff]  }
 0x579   : > { %7335 = vmatpush1.bf16.msra.mxu1 %v13835_v7  ;;  %7078 = vmatprep.subr.bf16.mxu0 %v13840_v60  ;;  %v13894_v7 = vld [vmem:[%s18193_s5 + $0xf8] sm:$0xff]  }
 0x57a   : > { %7336 = vmatprep.subr.bf16.mxu1 %v13843_v61  ;;  %v13895_v60 = vld [vmem:[%s18193_s5 + $0x198] sm:$0xff]   ;;  %v7501_v61 = vcombine.low %v14709_v31, %v14713_v44  ;;  %v13901_v31 = vld [vmem:[%s18193_s5 + $0x1a8] sm:$0xff]  }
 0x57c   : > { %7079 = vmatpush1.bf16.msra.mxu0 %v13838_v63  ;;  %v7503_v63 = vcombine.low %v14716_v32, %v14720_v33  ;;  %v13902_v33 = vld [vmem:[%s18193_s5 + $0x150] sm:$0xff]  }
 0x57d   : > { %7337 = vmatpush1.bf16.msra.mxu1 %v13841_v1  ;;  %7080 = vmatprep.subr.bf16.mxu0 %v13846_v9  ;;  %v17327_v1 = vsub.s32 %v7383_v6, %v14695_v25  ;;  %v13896_v9 = vld [vmem:[%s18193_s5 + $0x140] sm:$0xff]  }
 0x57e   : > { %7338 = vmatprep.subr.bf16.mxu1 %v13849_v10  ;;  %v13897_v10 = vld [vmem:[%s18193_s5 + $0x100] sm:$0xff]  }
 0x580   : > { %7081 = vmatpush1.bf16.msra.mxu0 %v13844_v11  ;;  %v13898_v11 = vld [vmem:[%s18193_s5 + $0x1a0] sm:$0xff]  }
 0x581   : > { %7339 = vmatpush1.bf16.msra.mxu1 %v13847_v3  ;;  %7082 = vmatprep.subr.bf16.mxu0 %v13852_v14  ;;  %v7511_v3 = vrot.slane %v7501_v61, %v17327_v1  ;;  %v7525_v14 = vrot.slane %v7503_v63, %v17327_v1 }
 0x582   : > { %7340 = vmatprep.subr.bf16.mxu1 %v13855_v16  ;;  %v17345_v16 = vrot.slane %v7502_v34, %v17327_v1 }
 0x583   : > { %v17363_v44 = vcombine.low %v7511_v3, %v7525_v14  ;;  %v17365_v34 = vcombine.high %v7511_v3, %v7525_v14 }
 0x584   : > { %7083 = vmatpush1.bf16.msra.mxu0 %v13850_v18  ;;  %v17351_v18 = vrot.slane %v7504_v35, %v17327_v1  ;;  %v13903_v35 = vld [vmem:[%s18193_s5 + $0x110] sm:$0xff]  }
 0x585   : > { %7341 = vmatpush1.bf16.msra.mxu1 %v13853_v19  ;;  %7084 = vmatprep.subr.bf16.mxu0 %v13858_v20  ;;  %v13899_v19 = vld [vmem:[%s18193_s5 + $0x148] sm:$0xff]  }
 0x586   : > { %7342 = vmatprep.subr.bf16.mxu1 %v13861_v43  ;;  %v13900_v20 = vld [vmem:[%s18193_s5 + $0x108] sm:$0xff]   ;;  %v17369_v32 = vcombine.low %v17345_v16, %v17351_v18  ;;  %v13904_v43 = vld [vmem:[%s18193_s5 + $0x1b0] sm:$0xff]  }
 0x588   : > { %7085 = vmatpush1.bf16.msra.mxu0 %v13856_v42  ;;  %v7536_v42 = vcombine.high %v17345_v16, %v17351_v18  ;;  %v13909_v16 = vld [vmem:[%s18193_s5] sm:$0xff]  }
 0x589   : > { %7343 = vmatpush1.bf16.msra.mxu1 %v13859_v21  ;;  %7086 = vmatprep.subr.bf16.mxu0 %v13864_v13  ;;  %v13905_v21 = vld [vmem:[%s18193_s5 + $0x158] sm:$0xff]   ;;  %v13910_v18 = vld [vmem:[%s18193_s5 + $0x80] sm:$0xff]  }
 0x58a   : > { %7344 = vmatprep.subr.bf16.mxu1 %v13867_v30  ;;  %v13906_v13 = vld [vmem:[%s18193_s5 + $0x118] sm:$0xff]  }
 0x58b   : > { %v13907_v30 = vld [vmem:[%s18193_s5 + $0x1b8] sm:$0xff]  }
 0x58c   : > { %7087 = vmatpush1.bf16.msra.mxu0 %v13862_v47  ;;  %v13908_v47 = vld [vmem:[%s18193_s5 + $0x40] sm:$0xff]  }
 0x58d   : > { %7345 = vmatpush1.bf16.msra.mxu1 %v13865_v17  ;;  %7088 = vmatprep.subr.bf16.mxu0 %v13870_v37 }
 0x58e   : > { %7346 = vmatprep.subr.bf16.mxu1 %v13873_v36 }
 0x590   : > { %7089 = vmatpush1.bf16.msra.mxu0 %v13868_v38 }
 0x591   : > { %7347 = vmatpush1.bf16.msra.mxu1 %v13871_v29  ;;  %7090 = vmatprep.subr.bf16.mxu0 %v13876_v39 }
 0x592   : > { %7348 = vmatprep.subr.bf16.mxu1 %v13879_v40 }
 0x594   : > { %7091 = vmatpush1.bf16.msra.mxu0 %v13874_v41 }
 0x595   : > { %7349 = vmatpush1.bf16.msra.mxu1 %v13877_v45  ;;  %12170 = vmatprep.subr.bf16.mxu0 %v13884_v46 }
 0x596   : > { %8061 = vmatprep.subr.bf16.mxu1 %v14152_v15 }
 0x597   : > { %11575 = vmatmul.mubr.msk.bf16.vlgmr.msra.gmra.mrb[20].mxu0 %vm14263_vm2, %v15010_v24 }
 0x598   : > { %11611 = vmatmul.mubr.msk.bf16.vlgmr.msra.gmra.mrb[20].mxu1 %vm14263_vm2, %v15010_v24  ;;  %12171 = vmatpush3.bf16.msra.mxu0 %v13885_v48  ;;  %v13882_v24 = vld [vmem:[%s18193_s5 + $0x170] sm:$0xff]   ;;  %vm8017_vm2 = vcmask 523264  }
 0x599   : > { %8062 = vmatpush1.bf16.msra.mxu1 %v13880_v49  ;;  %12172 = vmatprep.subr.bf16.mxu0 %v13887_v51 }
 0x59a   : > { %8063 = vmatprep.subr.bf16.mxu1 %v14152_v15 }
 0x59c   : > { %12173 = vmatpush3.bf16.msra.mxu0 %v13888_v58 }
 0x59d   : > { %8064 = vmatpush1.bf16.msra.mxu1 %v13881_v62  ;;  %12174 = vmatprep.subr.bf16.mxu0 %v13890_v2 }
 0x59e   : > { %8065 = vmatprep.subr.bf16.mxu1 %v14152_v15 }
 0x5a0   : > { %12175 = vmatpush3.bf16.msra.mxu0 %v13891_v0 }
 0x5a1   : > { %8066 = vmatpush1.bf16.msra.mxu1 %v13882_v24  ;;  %12176 = vmatprep.subr.bf16.mxu0 %v13893_v23 }
 0x5a2   : > { %8067 = vmatprep.subr.bf16.mxu1 %v14152_v15 }
 0x5a4   : > { %12177 = vmatpush3.bf16.msra.mxu0 %v13894_v7 }
 0x5a5   : > { %8068 = vmatpush1.bf16.msra.mxu1 %v13883_v8  ;;  %12178 = vmatprep.subr.bf16.mxu0 %v13896_v9  ;;  %v7539_v9 = vrot.slane %v17369_v32, 1 }
 0x5a6   : > { %8069 = vmatprep.subr.bf16.mxu1 %v14152_v15 }
 0x5a8   : > { %12179 = vmatpush3.bf16.msra.mxu0 %v13897_v10 }
 0x5a9   : > { %8070 = vmatpush1.bf16.msra.mxu1 %v13886_v22  ;;  %12180 = vmatprep.subr.bf16.mxu0 %v13899_v19 }
 0x5aa   : > { %8071 = vmatprep.subr.bf16.mxu1 %v14152_v15 }
 0x5ac   : > { %12181 = vmatpush3.bf16.msra.mxu0 %v13900_v20 }
 0x5ad   : > { %8072 = vmatpush1.bf16.msra.mxu1 %v13889_v5  ;;  %12182 = vmatprep.subr.bf16.mxu0 %v13902_v33  ;;  %v17417_v33 = vsub.s32 6, %v14695_v25 }
 0x5ae   : > { %8073 = vmatprep.subr.bf16.mxu1 %v14152_v15 }
 0x5b0   : > { %12183 = vmatpush3.bf16.msra.mxu0 %v13903_v35 }
 0x5b1   : > { %8074 = vmatpush1.bf16.msra.mxu1 %v13892_v54  ;;  %12184 = vmatprep.subr.bf16.mxu0 %v13905_v21 }
 0x5b2   : > { %8075 = vmatprep.subr.bf16.mxu1 %v14152_v15 }
 0x5b4   : > { %12185 = vmatpush3.bf16.msra.mxu0 %v13906_v13 }
 0x5b5   : > { %8076 = vmatpush1.bf16.msra.mxu1 %v13895_v60  ;;  %12192 = vmatprep.subr.bf16.mxu0 %v13908_v47  ;;  %v7538_v60 = vrot.slane %v17365_v34, 1 }
 0x5b6   : > { %8077 = vmatprep.subr.bf16.mxu1 %v14152_v15 }
 0x5b9   : > { %8078 = vmatpush1.bf16.msra.mxu1 %v13898_v11 }
 0x5ba   : > { %8079 = vmatprep.subr.bf16.mxu1 %v14152_v15 }
 0x5bd   : > { %8080 = vmatpush1.bf16.msra.mxu1 %v13901_v31 }
 0x5be   : > { %8081 = vmatprep.subr.bf16.mxu1 %v14152_v15 }
 0x5c1   : > { %8082 = vmatpush1.bf16.msra.mxu1 %v13904_v43 }
 0x5c2   : > { %8083 = vmatprep.subr.bf16.mxu1 %v14152_v15 }
 0x5c5   : > { %8084 = vmatpush1.bf16.msra.mxu1 %v13907_v30 }
 0x5c6   : > { %8312 = vmatprep.subr.bf16.mxu1 %v14152_v15 }
 0x66a   : > { %v7094_v17 = vpop.f32.mrb[20].mxu0 }
 0x66b   : > { %v7361_v37 = vmax.f32 %v16723_v50, %v7094_v17  ;;  %v7352_v36 = vpop.f32.mrb[20].mxu1  ;;  %v7096_v38 = vpop.f32.mrb[21].mxu0 }
 0x66c   : > { %v7363_v29 = vmax.f32 %v16728_v52, %v7352_v36  ;;  %v7362_v39 = vmax.f32 %v16730_v53, %v7096_v38  ;;  %v7354_v40 = vpop.f32.mrb[21].mxu1  ;;  %v7098_v41 = vpop.f32.mrb[22].mxu0 }
 0x66d   : > { %v7364_v45 = vmax.f32 %v16732_v55, %v7354_v40  ;;  %v7365_v46 = vmax.f32 %v16734_v27, %v7098_v41  ;;  %v7356_v48 = vpop.f32.mrb[22].mxu1  ;;  %v7100_v49 = vpop.f32.mrb[23].mxu0 }
 0x66e   : > { %v7377_v51 = vcombine.low %v7361_v37, %v7362_v39  ;;  %v7378_v58 = vcombine.high %v7361_v37, %v7362_v39  ;;  %v7367_v62 = vmax.f32 %v16739_v59, %v7356_v48  ;;  %v7366_v50 = vmax.f32 %v16741_v4, %v7100_v49  ;;  %v7358_v2 = vpop.f32.mrb[23].mxu1 }
 0x66f   : > { %v7379_v0 = vcombine.low %v7363_v29, %v7364_v45  ;;  %v7380_v24 = vcombine.high %v7363_v29, %v7364_v45  ;;  %v7368_v52 = vmax.f32 %v16749_v56, %v7358_v2  ;;  %v7537_v59 = vrot.slane %v17363_v44, 1 }
 0x670   : > { %v7387_v53 = vrot.slane %v7377_v51, %v17327_v1  ;;  %v7394_v8 = vrot.slane %v7378_v58, %v17327_v1  ;;  %v7413_v55 = vcombine.low %v7365_v46, %v7366_v50  ;;  %v7414_v22 = vcombine.high %v7365_v46, %v7366_v50 }
 0x671   : > { %v7401_v27 = vrot.slane %v7379_v0, %v17327_v1  ;;  %v7408_v5 = vrot.slane %v7380_v24, %v17327_v1  ;;  %v7415_v54 = vcombine.low %v7367_v62, %v7368_v52  ;;  %v7416_v12 = vcombine.high %v7367_v62, %v7368_v52 }
 0x672   : > { %v7423_v4 = vrot.slane %v7413_v55, %v17327_v1  ;;  %v7430_v57 = vrot.slane %v7414_v22, %v17327_v1  ;;  %v13912_v22 = vld [vmem:[%s18193_s5 + $0x8] sm:$0xff]  }
 0x673   : > { %v7409_v6 = vcombine.low %v7387_v53, %v7401_v27  ;;  %v7410_v56 = vcombine.high %v7387_v53, %v7401_v27  ;;  %v7411_v23 = vcombine.low %v7394_v8, %v7408_v5  ;;  %v7412_v7 = vcombine.high %v7394_v8, %v7408_v5  ;;  %v13911_v53 = vld [vmem:[%s18193_s5 + $0x48] sm:$0xff]  }
 0x674   : > { %v7437_v61 = vrot.slane %v7415_v54, %v17327_v1  ;;  %v7444_v63 = vrot.slane %v7416_v12, %v17327_v1  ;;  %v17420_v1 = vsub.s32 4, %v14695_v25  ;;  %v13913_v27 = vld [vmem:[%s18193_s5 + $0x88] sm:$0xff]   ;;  %v13914_v54 = vld [vmem:[%s18193_s5 + $0x50] sm:$0xff]  }
 0x675   : > { %v11612_v10 = vrot.slane %v7409_v6, 9  ;;  %v11613_v11 = vrot.slane %v7410_v56, 9  ;;  %v11614_v3 = vrot.slane %v7411_v23, 9  ;;  %v11615_v14 = vrot.slane %v7412_v7, 9 }
 0x676   : > { %v7445_v19 = vcombine.low %v7423_v4, %v7437_v61  ;;  %v7446_v20 = vcombine.high %v7423_v4, %v7437_v61  ;;  %v7447_v31 = vcombine.low %v7430_v57, %v7444_v63 }
 0x677   : > { %v7476_v35 = vmax.f32 %v7409_v6, %v11612_v10  ;;  %v7477_v43 = vmax.f32 %v7410_v56, %v11613_v11  ;;  %v7478_v21 = vmax.f32 %v7411_v23, %v11614_v3  ;;  %v7479_v13 = vmax.f32 %v7412_v7, %v11615_v14  ;;  %v13915_v56 = vld [vmem:[%s18193_s5 + $0x10] sm:$0xff]   ;;  %v13917_v7 = vld [vmem:[%s18193_s5 + $0x58] sm:$0xff]   ;;  %v13920_v14 = vld [vmem:[%s18193_s5 + $0x60] sm:$0xff]  }
 0x678   : > { %v11616_v30 = vrot.slane %v7445_v19, 9  ;;  %v11617_v47 = vrot.slane %v7446_v20, 9  ;;  %v11618_v17 = vrot.slane %v7447_v31, 9  ;;  %v13916_v23 = vld [vmem:[%s18193_s5 + $0x90] sm:$0xff]   ;;  %v13918_v11 = vld [vmem:[%s18193_s5 + $0x18] sm:$0xff]  }
 0x679   : > { %v7547_v37 = vadd.f32 %v17363_v44, %v7476_v35  ;;  %v7548_v36 = vadd.f32 %v7537_v59, %v7477_v43  ;;  %v7549_v38 = vadd.f32 %v17365_v34, %v7478_v21  ;;  %v7550_v29 = vadd.f32 %v7538_v60, %v7479_v13  ;;  %v13919_v3 = vld [vmem:[%s18193_s5 + $0x98] sm:$0xff]   ;;  %v13922_v35 = vld [vmem:[%s18193_s5 + $0xa0] sm:$0xff]   ;;  %v13924_v43 = vld [vmem:[%s18193_s5 + $0x28] sm:$0xff]  }
 0x67a   : > { %v7480_v39 = vmax.f32 %v7445_v19, %v11616_v30  ;;  %v7481_v40 = vmax.f32 %v7446_v20, %v11617_v47  ;;  %v7482_v41 = vmax.f32 %v7447_v31, %v11618_v17  ;;  %v13921_v31 = vld [vmem:[%s18193_s5 + $0x20] sm:$0xff]   ;;  %v13925_v21 = vld [vmem:[%s18193_s5 + $0xa8] sm:$0xff]   ;;  %v13926_v13 = vld [vmem:[%s18193_s5 + $0x70] sm:$0xff]  }
 0x67b   : > { %v17424_v45 = vmax.f32 %v7547_v37, 0.0  ;;  %v7555_v46 = vmax.f32 %v7548_v36, 0.0  ;;  %v17444_v24 = vmax.f32 %v7550_v29, 0.0  ;;  %v13927_v30 = vld [vmem:[%s18193_s5 + $0x30] sm:$0xff]   ;;  %v13929_v17 = vld [vmem:[%s18193_s5 + $0x78] sm:$0xff]   ;;  %v13932_v29 = vld [vmem:[%s18193_s5 + $0x200] sm:$0xff]  }
 0x67c   : > { %v7551_v48 = vadd.f32 %v17369_v32, %v7480_v39  ;;  %v7552_v49 = vadd.f32 %v7539_v9, %v7481_v40  ;;  %v7553_v25 = vadd.f32 %v7536_v42, %v7482_v41  ;;  %v17442_v42 = vmax.f32 %v7549_v38, 0.0  ;;  %v13928_v47 = vld [vmem:[%s18193_s5 + $0xb0] sm:$0xff]   ;;  %v13930_v37 = vld [vmem:[%s18193_s5 + $0x38] sm:$0xff]   ;;  %v13933_v40 = vld [vmem:[%s18193_s5 + $0xc0] sm:$0xff]  }
 0x67d   : > { %v7591_v51 = vrot.slane %v7555_v46, %v14702_v28  ;;  %v7599_v44 = vrot.slane %v7555_v46, %v17417_v33  ;;  %v7587_v34 = vrot.slane %v7555_v46, %v14698_v26  ;;  %v7595_v58 = vrot.slane %v7555_v46, %v17420_v1  ;;  %v13931_v36 = vld [vmem:[%s18193_s5 + $0xb8] sm:$0xff]   ;;  %v13934_v41 = vld [vmem:[%s18193_s5 + $0x1c0] sm:$0xff]  }
 0x67e   : > { %v7575_v62 = vrot.slane %v17424_v45, %v14702_v28  ;;  %v7583_v52 = vrot.slane %v17424_v45, %v17417_v33  ;;  %v17458_v5 = vmax.f32 %v7551_v48, 0.0  ;;  %v17466_v12 = vrot.slane %v17442_v42, %v17417_v33  ;;  %v13935_v48 = vld [vmem:[%s18193_s5 + $0x208] sm:$0xff]  }
 0x67f   : > { %v7713_v50 = vpack.c.bf16 %v7591_v51, %v7591_v51  ;;  %v7715_v2 = vpack.c.bf16 %v7599_v44, %v7599_v44  ;;  %v7712_v32 = vpack.c.bf16 %v7587_v34, %v7587_v34  ;;  %v7714_v0 = vpack.c.bf16 %v7595_v58, %v7595_v58  ;;  %v13937_v51 = vld [vmem:[%s18193_s5 + $0x1c8] sm:$0xff]   ;;  %v13938_v44 = vld [vmem:[%s18193_s5 + $0x210] sm:$0xff]  }
 0x680   : > { %v7709_v8 = vpack.c.bf16 %v7575_v62, %v7575_v62  ;;  %v7711_v55 = vpack.c.bf16 %v7583_v52, %v7583_v52  ;;  %v17470_v59 = vrot.slane %v17444_v24, %v17417_v33  ;;  %v17472_v4 = vmax.f32 %v7552_v49, 0.0  ;;  %v13939_v34 = vld [vmem:[%s18193_s5 + $0xd0] sm:$0xff]   ;;  %v13941_v62 = vld [vmem:[%s18193_s5 + $0x218] sm:$0xff]   ;;  %v13946_v52 = vld [vmem:[%s18193_s5 + $0x1e0] sm:$0xff]  }
 0x681   : > { %8053 = vmatprep.mubr.bf16.mxu0 %v7713_v50  ;;  %11703 = vmatprep.mubr.msk.bf16.mxu1 %vm8017_vm2, %v7715_v2  ;;  %v17477_v57 = vrot.slane %v17442_v42, %v17420_v1  ;;  %v17481_v6 = vrot.slane %v17444_v24, %v17420_v1  ;;  %v17495_v60 = vrot.slane %v17458_v5, %v17417_v33  ;;  %v17497_v61 = vmax.f32 %v7553_v25, 0.0  ;;  %v13936_v25 = vld [vmem:[%s18193_s5 + $0xc8] sm:$0xff]   ;;  %v13940_v58 = vld [vmem:[%s18193_s5 + $0x1d0] sm:$0xff]   ;;  %v13942_v50 = vld [vmem:[%s18193_s5 + $0xd8] sm:$0xff]  }
 0x682   : > { %8054 = vmatmul.mubr.bf16.vlgmr.msra.gmra.mrb[24].mxu0 %v7712_v32  ;;  %8094 = vmatmul.mubr.bf16.vlgmr.msra.gmra.mrb[24].mxu1 %v7714_v0  ;;  %v17501_v63 = vrot.slane %v17472_v4, %v17417_v33  ;;  %v17505_v9 = vrot.slane %v17458_v5, %v17420_v1  ;;  %v17509_v10 = vrot.slane %v17472_v4, %v17420_v1  ;;  %v13943_v2 = vld [vmem:[%s18193_s5 + $0x1d8] sm:$0xff]   ;;  %v13944_v0 = vld [vmem:[%s18193_s5 + $0x220] sm:$0xff]  }
 0x683   : > { %12193 = vmatpush3.bf16.msra.mxu0 %v13909_v16  ;;  %8313 = vmatpush1.bf16.msra.mxu1 %v13910_v18  ;;  %v17523_v19 = vrot.slane %v17497_v61, %v17417_v33  ;;  %v17527_v20 = vrot.slane %v17497_v61, %v17420_v1  ;;  %v13923_v33 = vld [vmem:[%s18193_s5 + $0x68] sm:$0xff]   ;;  %v7571_v38 = vrot.slane %v17424_v45, %v14698_v26  ;;  %v13945_v16 = vld [vmem:[%s18193_s5 + $0x2e0] sm:$0xff]  }
 0x684   : > { %8304 = vmatprep.mubr.bf16.mxu0 %v7709_v8  ;;  %11732 = vmatprep.mubr.msk.bf16.mxu1 %vm8017_vm2, %v7711_v55  ;;  %v7607_v39 = vrot.slane %v17442_v42, %v14702_v28  ;;  %v7579_v32 = vrot.slane %v17424_v45, %v17420_v1  ;;  %v7623_v18 = vrot.slane %v17444_v24, %v14702_v28  ;;  %v13947_v1 = vld [vmem:[%s18193_s5 + $0x2a0] sm:$0xff]   ;;  %v13949_v8 = vld [vmem:[%s18193_s5 + $0x2e8] sm:$0xff]  }
 0x685   : > { %12194 = vmatprep.subr.bf16.mxu0 %v13911_v53  ;;  %8314 = vmatprep.subr.bf16.mxu1 %v14152_v15  ;;  %v7708_v46 = vpack.c.bf16 %v7571_v38, %v7571_v38  ;;  %v13948_v53 = vld [vmem:[%s18193_s5 + $0x228] sm:$0xff]   ;;  %v13969_v38 = vld [vmem:[%s18193_s5 + $0x318] sm:$0xff]  }
 0x686   : > { %v7717_v49 = vpack.c.bf16 %v7607_v39, %v7607_v39  ;;  %v7710_v45 = vpack.c.bf16 %v7579_v32, %v7579_v32  ;;  %v7721_v55 = vpack.c.bf16 %v7623_v18, %v7623_v18  ;;  %v13971_v39 = vld [vmem:[%s18193_s5 + $0x2d8] sm:$0xff]   ;;  %v13984_v32 = vld [vmem:[%s18193_s5 + $0x290] sm:$0xff]  }
 0x687   : > { %12195 = vmatpush3.bf16.msra.mxu0 %v13912_v22  ;;  %8315 = vmatpush1.bf16.msra.mxu1 %v13913_v27  ;;  %v13950_v22 = vld [vmem:[%s18193_s5 + $0x1e8] sm:$0xff]   ;;  %v13987_v18 = vld [vmem:[%s18193_s5 + $0x358] sm:$0xff]  }
 0x688   : > { %12196 = vmatprep.subr.bf16.mxu0 %v13914_v54  ;;  %8316 = vmatprep.subr.bf16.mxu1 %v14152_v15  ;;  %v13951_v27 = vld [vmem:[%s18193_s5 + $0x2a8] sm:$0xff]   ;;  %v13952_v54 = vld [vmem:[%s18193_s5 + $0x230] sm:$0xff]  }
 0x68b   : > { %12197 = vmatpush3.bf16.msra.mxu0 %v13915_v56  ;;  %8317 = vmatpush1.bf16.msra.mxu1 %v13916_v23  ;;  %v13953_v56 = vld [vmem:[%s18193_s5 + $0x2f0] sm:$0xff]  }
 0x68c   : > { %12198 = vmatprep.subr.bf16.mxu0 %v13917_v7  ;;  %8318 = vmatprep.subr.bf16.mxu1 %v14152_v15  ;;  %v13954_v23 = vld [vmem:[%s18193_s5 + $0x1f0] sm:$0xff]  }
 0x68d   : > { %v13955_v7 = vld [vmem:[%s18193_s5 + $0x2b0] sm:$0xff]  }
 0x68f   : > { %12199 = vmatpush3.bf16.msra.mxu0 %v13918_v11  ;;  %8319 = vmatpush1.bf16.msra.mxu1 %v13919_v3  ;;  %v13956_v11 = vld [vmem:[%s18193_s5 + $0x238] sm:$0xff]  }
 0x690   : > { %12200 = vmatprep.subr.bf16.mxu0 %v13920_v14  ;;  %8320 = vmatprep.subr.bf16.mxu1 %v14152_v15  ;;  %v13957_v3 = vld [vmem:[%s18193_s5 + $0x2f8] sm:$0xff]  }
 0x691   : > { %v13958_v14 = vld [vmem:[%s18193_s5 + $0x1f8] sm:$0xff]  }
 0x693   : > { %12201 = vmatpush3.bf16.msra.mxu0 %v13921_v31  ;;  %8321 = vmatpush1.bf16.msra.mxu1 %v13922_v35  ;;  %v13959_v31 = vld [vmem:[%s18193_s5 + $0x2b8] sm:$0xff]   ;;  %v7603_v35 = vrot.slane %v17442_v42, %v14698_v26  ;;  %v7719_v42 = vpack.c.bf16 %v17466_v12, %v17466_v12  ;;  %v13966_v12 = vld [vmem:[%s18193_s5 + $0x310] sm:$0xff]  }
 0x694   : > { %12202 = vmatprep.subr.bf16.mxu0 %v13923_v33  ;;  %8322 = vmatprep.subr.bf16.mxu1 %v14152_v15  ;;  %v13960_v33 = vld [vmem:[%s18193_s5 + $0x300] sm:$0xff]  }
 0x697   : > { %12203 = vmatpush3.bf16.msra.mxu0 %v13924_v43  ;;  %8323 = vmatpush1.bf16.msra.mxu1 %v13925_v21  ;;  %v13961_v43 = vld [vmem:[%s18193_s5 + $0x240] sm:$0xff]   ;;  %v7716_v21 = vpack.c.bf16 %v7603_v35, %v7603_v35  ;;  %v7655_v35 = vrot.slane %v17472_v4, %v14702_v28 }
 0x698   : > { %12204 = vmatprep.subr.bf16.mxu0 %v13926_v13  ;;  %8324 = vmatprep.subr.bf16.mxu1 %v14152_v15  ;;  %v13962_v13 = vld [vmem:[%s18193_s5 + $0x2c0] sm:$0xff]  }
 0x69b   : > { %12205 = vmatpush3.bf16.msra.mxu0 %v13927_v30  ;;  %8325 = vmatpush1.bf16.msra.mxu1 %v13928_v47  ;;  %v13963_v30 = vld [vmem:[%s18193_s5 + $0x308] sm:$0xff]  }
 0x69c   : > { %12206 = vmatprep.subr.bf16.mxu0 %v13929_v17  ;;  %8326 = vmatprep.subr.bf16.mxu1 %v14152_v15  ;;  %v13964_v47 = vld [vmem:[%s18193_s5 + $0x248] sm:$0xff]  }
 0x69d   : > { %v13965_v17 = vld [vmem:[%s18193_s5 + $0x2c8] sm:$0xff]  }
 0x69f   : > { %12207 = vmatpush3.bf16.msra.mxu0 %v13930_v37  ;;  %8327 = vmatpush1.bf16.msra.mxu1 %v13931_v36  ;;  %v13967_v37 = vld [vmem:[%s18193_s5 + $0x250] sm:$0xff]  }
 0x6a0   : > { %8328 = vmatprep.subr.bf16.mxu1 %v14152_v15  ;;  %12214 = vmatprep.subr.bf16.mxu0 %v13932_v29  ;;  %v13968_v36 = vld [vmem:[%s18193_s5 + $0x2d0] sm:$0xff]   ;;  %v13970_v29 = vld [vmem:[%s18193_s5 + $0x258] sm:$0xff]  }
 0x6a2   : > { %8305 = vmatmul.mubr.bf16.vlgmr.msra.gmra.mrb[28].mxu0 %v7708_v46  ;;  %v13973_v46 = vld [vmem:[%s18193_s5 + $0x320] sm:$0xff]  }
 0x6a3   : > { %8329 = vmatpush1.bf16.msra.mxu1 %v13933_v40  ;;  %12215 = vmatpush3.bf16.msra.mxu0 %v13934_v41  ;;  %v7619_v40 = vrot.slane %v17444_v24, %v14698_v26  ;;  %v13972_v41 = vld [vmem:[%s18193_s5 + $0x260] sm:$0xff]   ;;  %v13974_v24 = vld [vmem:[%s18193_s5 + $0x268] sm:$0xff]  }
 0x6a4   : > { %8612 = vmatprep.mubr.bf16.mxu0 %v7717_v49  ;;  %8330 = vmatprep.subr.bf16.mxu1 %v14152_v15  ;;  %v7723_v49 = vpack.c.bf16 %v17470_v59, %v17470_v59  ;;  %v13976_v59 = vld [vmem:[%s18193_s5 + $0x270] sm:$0xff]  }
 0x6a5   : > { %12216 = vmatprep.subr.bf16.mxu0 %v13935_v48  ;;  %v7720_v48 = vpack.c.bf16 %v7619_v40, %v7619_v40  ;;  %v14015_v40 = vld [vmem:[%s18193_s5 + $0x478] sm:$0xff]  }
 0x6a7   : > { %8331 = vmatpush1.bf16.msra.mxu1 %v13936_v25  ;;  %12217 = vmatpush3.bf16.msra.mxu0 %v13937_v51  ;;  %v13975_v25 = vld [vmem:[%s18193_s5 + $0x328] sm:$0xff]   ;;  %v13977_v51 = vld [vmem:[%s18193_s5 + $0x330] sm:$0xff]  }
 0x6a8   : > { %8332 = vmatprep.subr.bf16.mxu1 %v14152_v15  ;;  %12218 = vmatprep.subr.bf16.mxu0 %v13938_v44  ;;  %v13978_v44 = vld [vmem:[%s18193_s5 + $0x278] sm:$0xff]  }
 0x6ab   : > { %8333 = vmatpush1.bf16.msra.mxu1 %v13939_v34  ;;  %12219 = vmatpush3.bf16.msra.mxu0 %v13940_v58  ;;  %v13979_v34 = vld [vmem:[%s18193_s5 + $0x338] sm:$0xff]   ;;  %v13980_v58 = vld [vmem:[%s18193_s5 + $0x280] sm:$0xff]  }
 0x6ac   : > { %8334 = vmatprep.subr.bf16.mxu1 %v14152_v15  ;;  %12220 = vmatprep.subr.bf16.mxu0 %v13941_v62  ;;  %v13981_v62 = vld [vmem:[%s18193_s5 + $0x340] sm:$0xff]  }
 0x6af   : > { %8335 = vmatpush1.bf16.msra.mxu1 %v13942_v50  ;;  %12221 = vmatpush3.bf16.msra.mxu0 %v13943_v2  ;;  %v13982_v50 = vld [vmem:[%s18193_s5 + $0x288] sm:$0xff]  }
 0x6b0   : > { %12222 = vmatprep.subr.bf16.mxu0 %v13944_v0  ;;  %12236 = vmatprep.subr.bf16.mxu1 %v13945_v16  ;;  %v13983_v2 = vld [vmem:[%s18193_s5 + $0x348] sm:$0xff]   ;;  %v13985_v0 = vld [vmem:[%s18193_s5 + $0x350] sm:$0xff]   ;;  %v13986_v16 = vld [vmem:[%s18193_s5 + $0x298] sm:$0xff]  }
 0x6b2   : > { %8345 = vmatmul.mubr.bf16.vlgmr.msra.gmra.mrb[28].mxu1 %v7710_v45  ;;  %v13990_v45 = vld [vmem:[%s18193_s5 + $0x380] sm:$0xff]  }
 0x6b3   : > { %12223 = vmatpush3.bf16.msra.mxu0 %v13946_v52  ;;  %12237 = vmatpush3.bf16.msra.mxu1 %v13947_v1  ;;  %v13988_v52 = vld [vmem:[%s18193_s5 + $0x3c0] sm:$0xff]   ;;  %v7639_v1 = vrot.slane %v17458_v5, %v14702_v28 }
 0x6b4   : > { %8921 = vmatprep.mubr.bf16.mxu1 %v7721_v55  ;;  %12224 = vmatprep.subr.bf16.mxu0 %v13948_v53  ;;  %v7718_v53 = vpack.c.bf16 %v17477_v57, %v17477_v57  ;;  %v13991_v55 = vld [vmem:[%s18193_s5 + $0x3c8] sm:$0xff]  }
 0x6b5   : > { %12238 = vmatprep.subr.bf16.mxu1 %v13949_v8  ;;  %v13989_v8 = vld [vmem:[%s18193_s5 + $0x360] sm:$0xff]   ;;  %v13992_v57 = vld [vmem:[%s18193_s5 + $0x368] sm:$0xff]  }
 0x6b7   : > { %12225 = vmatpush3.bf16.msra.mxu0 %v13950_v22  ;;  %12239 = vmatpush3.bf16.msra.mxu1 %v13951_v27  ;;  %v7725_v22 = vpack.c.bf16 %v7639_v1, %v7639_v1  ;;  %v13993_v27 = vld [vmem:[%s18193_s5 + $0x388] sm:$0xff]   ;;  %v14033_v1 = vld [vmem:[%s18193_s5 + $0x4f0] sm:$0xff]  }
 0x6b8   : > { %12226 = vmatprep.subr.bf16.mxu0 %v13952_v54  ;;  %12240 = vmatprep.subr.bf16.mxu1 %v13953_v56  ;;  %v13994_v54 = vld [vmem:[%s18193_s5 + $0x3d0] sm:$0xff]  }
 0x6b9   : > { %v13996_v56 = vld [vmem:[%s18193_s5 + $0x390] sm:$0xff]  }
 0x6bb   : > { %12227 = vmatpush3.bf16.msra.mxu0 %v13954_v23  ;;  %12241 = vmatpush3.bf16.msra.mxu1 %v13955_v7  ;;  %v13995_v23 = vld [vmem:[%s18193_s5 + $0x370] sm:$0xff]   ;;  %v13997_v7 = vld [vmem:[%s18193_s5 + $0x3d8] sm:$0xff]  }
 0x6bc   : > { %12228 = vmatprep.subr.bf16.mxu0 %v13956_v11  ;;  %12242 = vmatprep.subr.bf16.mxu1 %v13957_v3  ;;  %v13999_v11 = vld [vmem:[%s18193_s5 + $0x398] sm:$0xff]  }
 0x6bd   : > { %v13998_v3 = vld [vmem:[%s18193_s5 + $0x378] sm:$0xff]  }
 0x6bf   : > { %12229 = vmatpush3.bf16.msra.mxu0 %v13958_v14  ;;  %12243 = vmatpush3.bf16.msra.mxu1 %v13959_v31  ;;  %v14000_v14 = vld [vmem:[%s18193_s5 + $0x3e0] sm:$0xff]  }
 0x6c0   : > { %8620 = vmatprep.subr.bf16.mxu0 %v14152_v15  ;;  %12244 = vmatprep.subr.bf16.mxu1 %v13960_v33  ;;  %v14001_v31 = vld [vmem:[%s18193_s5 + $0x4a0] sm:$0xff]  }
 0x6c1   : > { %v14002_v33 = vld [vmem:[%s18193_s5 + $0x3a0] sm:$0xff]  }
 0x6c2   : > { %8613 = vmatmul.mubr.bf16.vlgmr.msra.gmra.mrb[32].mxu0 %v7716_v21  ;;  %v7722_v21 = vpack.c.bf16 %v17481_v6, %v17481_v6  ;;  %v14007_v6 = vld [vmem:[%s18193_s5 + $0x468] sm:$0xff]  }
 0x6c3   : > { %8621 = vmatpush1.bf16.msra.mxu0 %v13961_v43  ;;  %11817 = vmatprep.mubr.msk.bf16.mxu0 %vm8017_vm2, %v7719_v42  ;;  %v14003_v43 = vld [vmem:[%s18193_s5 + $0x460] sm:$0xff]   ;;  %v14005_v42 = vld [vmem:[%s18193_s5 + $0x4a8] sm:$0xff]  }
 0x6c4   : > { %12245 = vmatpush3.bf16.msra.mxu1 %v13962_v13  ;;  %8622 = vmatprep.subr.bf16.mxu0 %v14152_v15  ;;  %v14004_v13 = vld [vmem:[%s18193_s5 + $0x3e8] sm:$0xff]  }
 0x6c5   : > { %12246 = vmatprep.subr.bf16.mxu1 %v13963_v30  ;;  %v7729_v30 = vpack.c.bf16 %v7655_v35, %v7655_v35  ;;  %v14047_v35 = vld [vmem:[%s18193_s5 + $0x588] sm:$0xff]  }
 0x6c7   : > { %8623 = vmatpush1.bf16.msra.mxu0 %v13964_v47  ;;  %v14006_v47 = vld [vmem:[%s18193_s5 + $0x3a8] sm:$0xff]  }
 0x6c8   : > { %12247 = vmatpush3.bf16.msra.mxu1 %v13965_v17  ;;  %8624 = vmatprep.subr.bf16.mxu0 %v14152_v15  ;;  %v14008_v17 = vld [vmem:[%s18193_s5 + $0x3f0] sm:$0xff]  }
 0x6c9   : > { %12248 = vmatprep.subr.bf16.mxu1 %v13966_v12  ;;  %v14009_v12 = vld [vmem:[%s18193_s5 + $0x4b0] sm:$0xff]  }
 0x6cb   : > { %8625 = vmatpush1.bf16.msra.mxu0 %v13967_v37  ;;  %v14010_v37 = vld [vmem:[%s18193_s5 + $0x3b0] sm:$0xff]  }
 0x6cc   : > { %12249 = vmatpush3.bf16.msra.mxu1 %v13968_v36  ;;  %8626 = vmatprep.subr.bf16.mxu0 %v14152_v15  ;;  %v14011_v36 = vld [vmem:[%s18193_s5 + $0x470] sm:$0xff]  }
 0x6cd   : > { %12250 = vmatprep.subr.bf16.mxu1 %v13969_v38  ;;  %v14012_v38 = vld [vmem:[%s18193_s5 + $0x3f8] sm:$0xff]  }
 0x6cf   : > { %8627 = vmatpush1.bf16.msra.mxu0 %v13970_v29  ;;  %v14013_v29 = vld [vmem:[%s18193_s5 + $0x4b8] sm:$0xff]  }
 0x6d0   : > { %12251 = vmatpush3.bf16.msra.mxu1 %v13971_v39  ;;  %8628 = vmatprep.subr.bf16.mxu0 %v14152_v15  ;;  %v14014_v39 = vld [vmem:[%s18193_s5 + $0x3b8] sm:$0xff]  }
 0x6d1   : > { %8929 = vmatprep.subr.bf16.mxu1 %v14152_v15 }
 0x6d3   : > { %8922 = vmatmul.mubr.bf16.vlgmr.msra.gmra.mrb[32].mxu1 %v7720_v48  ;;  %8629 = vmatpush1.bf16.msra.mxu0 %v13972_v41  ;;  %v7635_v41 = vrot.slane %v17458_v5, %v14698_v26  ;;  %v14017_v48 = vld [vmem:[%s18193_s5 + $0x400] sm:$0xff]   ;;  %v7727_v5 = vpack.c.bf16 %v17495_v60, %v17495_v60  ;;  %v14022_v60 = vld [vmem:[%s18193_s5 + $0x4d0] sm:$0xff]  }
 0x6d4   : > { %8930 = vmatpush1.bf16.msra.mxu1 %v13973_v46  ;;  %11902 = vmatprep.mubr.msk.bf16.mxu1 %vm8017_vm2, %v7723_v49  ;;  %v14016_v46 = vld [vmem:[%s18193_s5 + $0x4c0] sm:$0xff]  }
 0x6d5   : > { %8630 = vmatprep.subr.bf16.mxu0 %v14152_v15  ;;  %8931 = vmatprep.subr.bf16.mxu1 %v14152_v15  ;;  %v7724_v49 = vpack.c.bf16 %v7635_v41, %v7635_v41 }
 0x6d7   : > { %8631 = vmatpush1.bf16.msra.mxu0 %v13974_v24  ;;  %v14018_v24 = vld [vmem:[%s18193_s5 + $0x480] sm:$0xff]  }
 0x6d8   : > { %8932 = vmatpush1.bf16.msra.mxu1 %v13975_v25  ;;  %8632 = vmatprep.subr.bf16.mxu0 %v14152_v15  ;;  %v14019_v25 = vld [vmem:[%s18193_s5 + $0x4c8] sm:$0xff]  }
 0x6d9   : > { %8933 = vmatprep.subr.bf16.mxu1 %v14152_v15 }
 0x6db   : > { %8633 = vmatpush1.bf16.msra.mxu0 %v13976_v59  ;;  %v14020_v59 = vld [vmem:[%s18193_s5 + $0x408] sm:$0xff]  }
 0x6dc   : > { %8934 = vmatpush1.bf16.msra.mxu1 %v13977_v51  ;;  %8634 = vmatprep.subr.bf16.mxu0 %v14152_v15  ;;  %v14021_v51 = vld [vmem:[%s18193_s5 + $0x488] sm:$0xff]  }
 0x6dd   : > { %8935 = vmatprep.subr.bf16.mxu1 %v14152_v15 }
 0x6df   : > { %8635 = vmatpush1.bf16.msra.mxu0 %v13978_v44  ;;  %v14023_v44 = vld [vmem:[%s18193_s5 + $0x410] sm:$0xff]  }
 0x6e0   : > { %8936 = vmatpush1.bf16.msra.mxu1 %v13979_v34  ;;  %8636 = vmatprep.subr.bf16.mxu0 %v14152_v15  ;;  %v14024_v34 = vld [vmem:[%s18193_s5 + $0x490] sm:$0xff]  }
 0x6e1   : > { %8937 = vmatprep.subr.bf16.mxu1 %v14152_v15 }
 0x6e3   : > { %8637 = vmatpush1.bf16.msra.mxu0 %v13980_v58  ;;  %v14025_v58 = vld [vmem:[%s18193_s5 + $0x4d8] sm:$0xff]  }
 0x6e4   : > { %8938 = vmatpush1.bf16.msra.mxu1 %v13981_v62  ;;  %8638 = vmatprep.subr.bf16.mxu0 %v14152_v15  ;;  %v14026_v62 = vld [vmem:[%s18193_s5 + $0x418] sm:$0xff]  }
 0x6e5   : > { %8939 = vmatprep.subr.bf16.mxu1 %v14152_v15 }
 0x6e7   : > { %8639 = vmatpush1.bf16.msra.mxu0 %v13982_v50  ;;  %v14027_v50 = vld [vmem:[%s18193_s5 + $0x498] sm:$0xff]  }
 0x6e8   : > { %8940 = vmatpush1.bf16.msra.mxu1 %v13983_v2  ;;  %8640 = vmatprep.subr.bf16.mxu0 %v14152_v15  ;;  %v7651_v2 = vrot.slane %v17472_v4, %v14698_v26  ;;  %v14030_v4 = vld [vmem:[%s18193_s5 + $0x428] sm:$0xff]  }
 0x6e9   : > { %8941 = vmatprep.subr.bf16.mxu1 %v14152_v15 }
 0x6eb   : > { %8641 = vmatpush1.bf16.msra.mxu0 %v13984_v32  ;;  %v14028_v32 = vld [vmem:[%s18193_s5 + $0x420] sm:$0xff]  }
 0x6ec   : > { %8942 = vmatpush1.bf16.msra.mxu1 %v13985_v0  ;;  %8642 = vmatprep.subr.bf16.mxu0 %v14152_v15  ;;  %v14029_v0 = vld [vmem:[%s18193_s5 + $0x4e0] sm:$0xff]  }
 0x6ed   : > { %8943 = vmatprep.subr.bf16.mxu1 %v14152_v15 }
 0x6ef   : > { %8643 = vmatpush1.bf16.msra.mxu0 %v13986_v16  ;;  %v7728_v16 = vpack.c.bf16 %v7651_v2, %v7651_v2 }
 0x6f0   : > { %8944 = vmatpush1.bf16.msra.mxu1 %v13987_v18  ;;  %12258 = vmatprep.subr.bf16.mxu0 %v13988_v52  ;;  %v7731_v18 = vpack.c.bf16 %v17501_v63, %v17501_v63  ;;  %v14031_v52 = vld [vmem:[%s18193_s5 + $0x4e8] sm:$0xff]   ;;  %v14032_v63 = vld [vmem:[%s18193_s5 + $0x430] sm:$0xff]  }
 0x6f1   : > { %8945 = vmatprep.subr.bf16.mxu1 %v14152_v15 }
 0x6f2   : > { %8653 = vmatmul.mubr.bf16.vlgmr.msra.gmra.mrb[36].mxu0 %v7718_v53  ;;  %v14035_v53 = vld [vmem:[%s18193_s5 + $0x4f8] sm:$0xff]  }
 0x6f3   : > { %12259 = vmatpush3.bf16.msra.mxu0 %v13990_v45  ;;  %9230 = vmatprep.mubr.bf16.mxu0 %v7725_v22  ;;  %v14034_v45 = vld [vmem:[%s18193_s5 + $0x438] sm:$0xff]   ;;  %v14038_v22 = vld [vmem:[%s18193_s5 + $0x448] sm:$0xff]  }
 0x6f4   : > { %8946 = vmatpush1.bf16.msra.mxu1 %v13989_v8  ;;  %12260 = vmatprep.subr.bf16.mxu0 %v13991_v55  ;;  %v14036_v8 = vld [vmem:[%s18193_s5 + $0x440] sm:$0xff]  }
 0x6f5   : > { %8947 = vmatprep.subr.bf16.mxu1 %v14152_v15  ;;  %v14037_v55 = vld [vmem:[%s18193_s5 + $0x500] sm:$0xff]  }
 0x6f7   : > { %12261 = vmatpush3.bf16.msra.mxu0 %v13993_v27  ;;  %v14039_v27 = vld [vmem:[%s18193_s5 + $0x508] sm:$0xff]  }
 0x6f8   : > { %8948 = vmatpush1.bf16.msra.mxu1 %v13992_v57  ;;  %12262 = vmatprep.subr.bf16.mxu0 %v13994_v54  ;;  %v14040_v57 = vld [vmem:[%s18193_s5 + $0x450] sm:$0xff]  }
 0x6f9   : > { %8949 = vmatprep.subr.bf16.mxu1 %v14152_v15  ;;  %v14041_v54 = vld [vmem:[%s18193_s5 + $0x510] sm:$0xff]  }
 0x6fb   : > { %12263 = vmatpush3.bf16.msra.mxu0 %v13996_v56  ;;  %v14042_v56 = vld [vmem:[%s18193_s5 + $0x458] sm:$0xff]  }
 0x6fc   : > { %8950 = vmatpush1.bf16.msra.mxu1 %v13995_v23  ;;  %12264 = vmatprep.subr.bf16.mxu0 %v13997_v7  ;;  %v14043_v23 = vld [vmem:[%s18193_s5 + $0x518] sm:$0xff]   ;;  %v14044_v7 = vld [vmem:[%s18193_s5 + $0x580] sm:$0xff]  }
 0x6fd   : > { %8951 = vmatprep.subr.bf16.mxu1 %v14152_v15 }
 0x6ff   : > { %12265 = vmatpush3.bf16.msra.mxu0 %v13999_v11  ;;  %v7671_v11 = vrot.slane %v17497_v61, %v14702_v28 }
 0x700   : > { %8952 = vmatpush1.bf16.msra.mxu1 %v13998_v3  ;;  %12266 = vmatprep.subr.bf16.mxu0 %v14000_v14  ;;  %v14046_v3 = vld [vmem:[%s18193_s5 + $0x540] sm:$0xff]   ;;  %v7726_v14 = vpack.c.bf16 %v17505_v9, %v17505_v9  ;;  %v14048_v9 = vld [vmem:[%s18193_s5 + $0x528] sm:$0xff]  }
 0x701   : > { %12280 = vmatprep.subr.bf16.mxu1 %v14001_v31  ;;  %v14045_v31 = vld [vmem:[%s18193_s5 + $0x520] sm:$0xff]   ;;  %v7733_v28 = vpack.c.bf16 %v7671_v11, %v7671_v11 }
 0x703   : > { %8962 = vmatmul.mubr.bf16.vlgmr.msra.gmra.mrb[36].mxu1 %v7722_v21  ;;  %12267 = vmatpush3.bf16.msra.mxu0 %v14002_v33  ;;  %v14049_v33 = vld [vmem:[%s18193_s5 + $0x548] sm:$0xff]   ;;  %v14052_v21 = vld [vmem:[%s18193_s5 + $0x550] sm:$0xff]  }
 0x704   : > { %12281 = vmatpush3.bf16.msra.mxu1 %v14003_v43  ;;  %9539 = vmatprep.mubr.bf16.mxu1 %v7729_v30  ;;  %v14050_v43 = vld [vmem:[%s18193_s5 + $0x590] sm:$0xff]   ;;  %v14055_v30 = vld [vmem:[%s18193_s5 + $0x558] sm:$0xff]  }
 0x705   : > { %12268 = vmatprep.subr.bf16.mxu0 %v14004_v13  ;;  %12282 = vmatprep.subr.bf16.mxu1 %v14005_v42  ;;  %v14051_v13 = vld [vmem:[%s18193_s5 + $0x530] sm:$0xff]   ;;  %v14053_v42 = vld [vmem:[%s18193_s5 + $0x598] sm:$0xff]  }
 0x707   : > { %12269 = vmatpush3.bf16.msra.mxu0 %v14006_v47  ;;  %v14054_v47 = vld [vmem:[%s18193_s5 + $0x538] sm:$0xff]  }
 0x708   : > { %12283 = vmatpush3.bf16.msra.mxu1 %v14007_v6  ;;  %12270 = vmatprep.subr.bf16.mxu0 %v14008_v17  ;;  %v14056_v6 = vld [vmem:[%s18193_s5 + $0x5a0] sm:$0xff]  }
 0x709   : > { %12284 = vmatprep.subr.bf16.mxu1 %v14009_v12  ;;  %v14057_v17 = vld [vmem:[%s18193_s5 + $0x560] sm:$0xff]   ;;  %v14058_v12 = vld [vmem:[%s18193_s5 + $0x5a8] sm:$0xff]  }
 0x70b   : > { %12271 = vmatpush3.bf16.msra.mxu0 %v14010_v37  ;;  %v7730_v37 = vpack.c.bf16 %v17509_v10, %v17509_v10  ;;  %v14061_v10 = vld [vmem:[%s18193_s5 + $0x570] sm:$0xff]  }
 0x70c   : > { %12285 = vmatpush3.bf16.msra.mxu1 %v14011_v36  ;;  %12272 = vmatprep.subr.bf16.mxu0 %v14012_v38  ;;  %v14059_v36 = vld [vmem:[%s18193_s5 + $0x568] sm:$0xff]   ;;  %v14060_v38 = vld [vmem:[%s18193_s5 + $0x5b0] sm:$0xff]  }
 0x70d   : > { %12286 = vmatprep.subr.bf16.mxu1 %v14013_v29 }
 0x70f   : > { %12273 = vmatpush3.bf16.msra.mxu0 %v14014_v39 }
 0x710   : > { %12287 = vmatpush3.bf16.msra.mxu1 %v14015_v40  ;;  %9238 = vmatprep.subr.bf16.mxu0 %v14152_v15 }
 0x711   : > { %12288 = vmatprep.subr.bf16.mxu1 %v14016_v46 }
 0x712   : > { %9231 = vmatmul.mubr.bf16.vlgmr.msra.gmra.mrb[40].mxu0 %v7724_v49 }
 0x713   : > { %9239 = vmatpush1.bf16.msra.mxu0 %v14017_v48  ;;  %11987 = vmatprep.mubr.msk.bf16.mxu0 %vm8017_vm2, %v7727_v5 }
 0x714   : > { %12289 = vmatpush3.bf16.msra.mxu1 %v14018_v24  ;;  %9240 = vmatprep.subr.bf16.mxu0 %v14152_v15 }
 0x715   : > { %12290 = vmatprep.subr.bf16.mxu1 %v14019_v25  ;;  %v14062_v25 = vld [vmem:[%s18193_s5 + $0x5b8] sm:$0xff]  }
 0x717   : > { %9241 = vmatpush1.bf16.msra.mxu0 %v14020_v59 }
 0x718   : > { %12291 = vmatpush3.bf16.msra.mxu1 %v14021_v51  ;;  %9242 = vmatprep.subr.bf16.mxu0 %v14152_v15  ;;  %v14063_v51 = vld [vmem:[%s18193_s5 + $0x578] sm:$0xff]  }
 0x719   : > { %12292 = vmatprep.subr.bf16.mxu1 %v14022_v60  ;;  %v7667_v60 = vrot.slane %v17497_v61, %v14698_v26  ;;  %v14066_v26 = vld [vmem:[%s18193_s5 + $0x5d0] sm:$0xff]   ;;  %v14067_v61 = vld [vmem:[%s18193_s5 + $0x5d8] sm:$0xff]  }
 0x71b   : > { %9243 = vmatpush1.bf16.msra.mxu0 %v14023_v44  ;;  %v14064_v44 = vld [vmem:[%s18193_s5 + $0x5c0] sm:$0xff]  }
 0x71c   : > { %12293 = vmatpush3.bf16.msra.mxu1 %v14024_v34  ;;  %9244 = vmatprep.subr.bf16.mxu0 %v14152_v15  ;;  %v7732_v34 = vpack.c.bf16 %v7667_v60, %v7667_v60 }
 0x71d   : > { %12294 = vmatprep.subr.bf16.mxu1 %v14025_v58  ;;  %v7735_v58 = vpack.c.bf16 %v17523_v19, %v17523_v19  ;;  %v14068_v19 = vld [vmem:[%s18193_s5 + $0x5e0] sm:$0xff]  }
 0x71f   : > { %9245 = vmatpush1.bf16.msra.mxu0 %v14026_v62  ;;  %v14065_v62 = vld [vmem:[%s18193_s5 + $0x5c8] sm:$0xff]  }
 0x720   : > { %12295 = vmatpush3.bf16.msra.mxu1 %v14027_v50  ;;  %9246 = vmatprep.subr.bf16.mxu0 %v14152_v15  ;;  %v14069_v50 = vld [vmem:[%s18193_s5 + $0x5e8] sm:$0xff]  }
 0x721   : > { %9547 = vmatprep.subr.bf16.mxu1 %v14152_v15 }
 0x723   : > { %9540 = vmatmul.mubr.bf16.vlgmr.msra.gmra.mrb[40].mxu1 %v7728_v16  ;;  %9247 = vmatpush1.bf16.msra.mxu0 %v14028_v32 }
 0x724   : > { %9548 = vmatpush1.bf16.msra.mxu1 %v14029_v0  ;;  %12072 = vmatprep.mubr.msk.bf16.mxu1 %vm8017_vm2, %v7731_v18  ;;  %v14070_v18 = vld [vmem:[%s18193_s5 + $0x5f0] sm:$0xff]  }
 0x725   : > { %9248 = vmatprep.subr.bf16.mxu0 %v14152_v15  ;;  %9549 = vmatprep.subr.bf16.mxu1 %v14152_v15 }
 0x727   : > { %9249 = vmatpush1.bf16.msra.mxu0 %v14030_v4 }
 0x728   : > { %9550 = vmatpush1.bf16.msra.mxu1 %v14031_v52  ;;  %9250 = vmatprep.subr.bf16.mxu0 %v14152_v15 }
 0x729   : > { %9551 = vmatprep.subr.bf16.mxu1 %v14152_v15 }
 0x72b   : > { %9251 = vmatpush1.bf16.msra.mxu0 %v14032_v63  ;;  %v14071_v63 = vld [vmem:[%s18193_s5 + $0x5f8] sm:$0xff]  }
 0x72c   : > { %9552 = vmatpush1.bf16.msra.mxu1 %v14033_v1  ;;  %9252 = vmatprep.subr.bf16.mxu0 %v14152_v15  ;;  %v14072_v1 = vld [vmem:[%s18193_s5 + $0x600] sm:$0xff]  }
 0x72d   : > { %9553 = vmatprep.subr.bf16.mxu1 %v14152_v15 }
 0x72f   : > { %9253 = vmatpush1.bf16.msra.mxu0 %v14034_v45  ;;  %v14073_v45 = vld [vmem:[%s18193_s5 + $0x608] sm:$0xff]  }
 0x730   : > { %9554 = vmatpush1.bf16.msra.mxu1 %v14035_v53  ;;  %9254 = vmatprep.subr.bf16.mxu0 %v14152_v15 }
 0x731   : > { %9555 = vmatprep.subr.bf16.mxu1 %v14152_v15 }
 0x733   : > { %9255 = vmatpush1.bf16.msra.mxu0 %v14036_v8 }
 0x734   : > { %9556 = vmatpush1.bf16.msra.mxu1 %v14037_v55  ;;  %9256 = vmatprep.subr.bf16.mxu0 %v14152_v15 }
 0x735   : > { %9557 = vmatprep.subr.bf16.mxu1 %v14152_v15 }
 0x737   : > { %9257 = vmatpush1.bf16.msra.mxu0 %v14038_v22 }
 0x738   : > { %9558 = vmatpush1.bf16.msra.mxu1 %v14039_v27  ;;  %9258 = vmatprep.subr.bf16.mxu0 %v14152_v15  ;;  %v14074_v27 = vld [vmem:[%s18193_s5 + $0x610] sm:$0xff]  }
 0x739   : > { %9559 = vmatprep.subr.bf16.mxu1 %v14152_v15 }
 0x73b   : > { %9259 = vmatpush1.bf16.msra.mxu0 %v14040_v57 }
 0x73c   : > { %9560 = vmatpush1.bf16.msra.mxu1 %v14041_v54  ;;  %9260 = vmatprep.subr.bf16.mxu0 %v14152_v15  ;;  %v14075_v54 = vld [vmem:[%s18193_s5 + $0x618] sm:$0xff]  }
 0x73d   : > { %9561 = vmatprep.subr.bf16.mxu1 %v14152_v15 }
 0x73f   : > { %9261 = vmatpush1.bf16.msra.mxu0 %v14042_v56  ;;  %v7734_v56 = vpack.c.bf16 %v17527_v20, %v17527_v20  ;;  %v14077_v20 = vld [vmem:[%s18195_s7 + $0x8] sm:$0xff]  }
 0x740   : > { %9562 = vmatpush1.bf16.msra.mxu1 %v14043_v23  ;;  %12302 = vmatprep.subr.bf16.mxu0 %v14044_v7 }
 0x741   : > { %9563 = vmatprep.subr.bf16.mxu1 %v14152_v15 }
 0x742   : > { %9271 = vmatmul.mubr.bf16.vlgmr.msra.gmra.mrb[44].mxu0 %v7726_v14 }
 0x743   : > { %12303 = vmatpush3.bf16.msra.mxu0 %v14046_v3  ;;  %9848 = vmatprep.mubr.bf16.mxu0 %v7733_v28 }
 0x744   : > { %9564 = vmatpush1.bf16.msra.mxu1 %v14045_v31  ;;  %12304 = vmatprep.subr.bf16.mxu0 %v14047_v35 }
 0x745   : > { %9565 = vmatprep.subr.bf16.mxu1 %v14152_v15 }
 0x747   : > { %12305 = vmatpush3.bf16.msra.mxu0 %v14049_v33 }
 0x748   : > { %9566 = vmatpush1.bf16.msra.mxu1 %v14048_v9  ;;  %12306 = vmatprep.subr.bf16.mxu0 %v14050_v43  ;;  %v14076_v43 = vld [vmem:[%s18195_s7] sm:$0xff]  }
 0x749   : > { %9567 = vmatprep.subr.bf16.mxu1 %v14152_v15 }
 0x74b   : > { %12307 = vmatpush3.bf16.msra.mxu0 %v14052_v21  ;;  %v14078_v21 = vld [vmem:[%s18195_s7 + $0x10] sm:$0xff]  }
 0x74c   : > { %9568 = vmatpush1.bf16.msra.mxu1 %v14051_v13  ;;  %12308 = vmatprep.subr.bf16.mxu0 %v14053_v42  ;;  %v14079_v13 = vld [vmem:[%s18195_s7 + $0x18] sm:$0xff]  }
 0x74d   : > { %9569 = vmatprep.subr.bf16.mxu1 %v14152_v15 }
 0x74f   : > { %12309 = vmatpush3.bf16.msra.mxu0 %v14055_v30 }
 0x750   : > { %9570 = vmatpush1.bf16.msra.mxu1 %v14054_v47  ;;  %12310 = vmatprep.subr.bf16.mxu0 %v14056_v6  ;;  %v14080_v6 = vld [vmem:[%s18195_s7 + $0x20] sm:$0xff]  }
 0x753   : > { %9580 = vmatmul.mubr.bf16.vlgmr.msra.gmra.mrb[44].mxu1 %v7730_v37  ;;  %12311 = vmatpush3.bf16.msra.mxu0 %v14057_v17 }
 0x754   : > { %12312 = vmatprep.subr.bf16.mxu0 %v14058_v12 }
 0x755   : > { %v12186_v29 = vpop.f32.mrb[24].mxu0  ;;  %v8095_v39 = vpop.f32.mrb[24].mxu1 }
 0x756   : > { %v12187_v40 = vpop.f32.mrb[25].mxu0  ;;  %v8097_v41 = vpop.f32.mrb[25].mxu1 }
 0x757   : > { %v12188_v46 = vadd.f32 %v12187_v40, %v12186_v29  ;;  %12313 = vmatpush3.bf16.msra.mxu0 %v14059_v36  ;;  %v12189_v48 = vpop.f32.mrb[26].mxu0  ;;  %v8098_v49 = vpop.f32.mrb[26].mxu1 }
 0x758   : > { %v12190_v24 = vpop.f32.mrb[27].mxu0  ;;  %v8099_v5 = vpop.f32.mrb[27].mxu1  ;;  %12314 = vmatprep.subr.bf16.mxu0 %v14060_v38 }
 0x759   : > { %v8096_v59 = vadd.f32 %v12188_v46, %v8095_v39  ;;  %v14081_v5 = vld [vmem:[%s18195_s7 + $0x28] sm:$0xff]  }
 0x75b   : > { %12315 = vmatpush3.bf16.msra.mxu0 %v14061_v10 }
 0x75c   : > { %12316 = vmatprep.subr.bf16.mxu0 %v14062_v25  ;;  %v14082_v25 = vld [vmem:[%s18195_s7 + $0x30] sm:$0xff]  }
 0x75f   : > { %12317 = vmatpush3.bf16.msra.mxu0 %v14063_v51 }
 0x760   : > { %9856 = vmatprep.subr.bf16.mxu0 %v14152_v15 }
 0x762   : > { %9849 = vmatmul.mubr.bf16.vlgmr.msra.gmra.mrb[48].mxu0 %v7732_v34 }
 0x763   : > { %9857 = vmatpush1.bf16.msra.mxu0 %v14064_v44  ;;  %12157 = vmatprep.mubr.msk.bf16.mxu0 %vm8017_vm2, %v7735_v58 }
 0x764   : > { %9858 = vmatprep.subr.bf16.mxu0 %v14152_v15 }
 0x767   : > { %9859 = vmatpush1.bf16.msra.mxu0 %v14065_v62 }
 0x768   : > { %9860 = vmatprep.subr.bf16.mxu0 %v14152_v15 }
 0x76b   : > { %9861 = vmatpush1.bf16.msra.mxu0 %v14066_v26 }
 0x76c   : > { %9862 = vmatprep.subr.bf16.mxu0 %v14152_v15 }
 0x76f   : > { %9863 = vmatpush1.bf16.msra.mxu0 %v14067_v61 }
 0x770   : > { %9864 = vmatprep.subr.bf16.mxu0 %v14152_v15 }
 0x773   : > { %9865 = vmatpush1.bf16.msra.mxu0 %v14068_v19 }
 0x774   : > { %9866 = vmatprep.subr.bf16.mxu0 %v14152_v15 }
 0x775   : > { %v12208_v2 = vpop.f32.mrb[28].mxu0 }
 0x776   : > { %v12209_v32 = vpop.f32.mrb[29].mxu0 }
 0x777   : > { %v12210_v0 = vadd.f32 %v12209_v32, %v12208_v2  ;;  %v12211_v16 = vpop.f32.mrb[30].mxu0  ;;  %9867 = vmatpush1.bf16.msra.mxu0 %v14069_v50 }
 0x778   : > { %v12212_v4 = vpop.f32.mrb[31].mxu0  ;;  %9868 = vmatprep.subr.bf16.mxu0 %v14152_v15 }
 0x779   : > { %v8307_v52 = vadd.f32 %v12210_v0, %v8096_v59  ;;  %v14083_v59 = vld [vmem:[%s18195_s7 + $0x38] sm:$0xff]  }
 0x77b   : > { %9869 = vmatpush1.bf16.msra.mxu0 %v14070_v18 }
 0x77c   : > { %9870 = vmatprep.subr.bf16.mxu0 %v14152_v15 }
 0x77f   : > { %9871 = vmatpush1.bf16.msra.mxu0 %v14071_v63 }
 0x780   : > { %9872 = vmatprep.subr.bf16.mxu0 %v14152_v15 }
 0x783   : > { %9873 = vmatpush1.bf16.msra.mxu0 %v14072_v1 }
 0x784   : > { %9874 = vmatprep.subr.bf16.mxu0 %v14152_v15 }
 0x785   : > { %v8346_v53 = vpop.f32.mrb[28].mxu1 }
 0x786   : > { %v8347_v8 = vadd.f32 %v8346_v53, %v8307_v52  ;;  %v8348_v55 = vpop.f32.mrb[29].mxu1 }
 0x787   : > { %v8349_v22 = vpop.f32.mrb[30].mxu1  ;;  %9875 = vmatpush1.bf16.msra.mxu0 %v14073_v45 }
 0x788   : > { %v8350_v57 = vpop.f32.mrb[31].mxu1  ;;  %9876 = vmatprep.subr.bf16.mxu0 %v14152_v15 }
 0x789   : > { %v9897_v57 = vld [vmem:[%s18194_s6] sm:$0x1] }
 0x78b   : > { %9877 = vmatpush1.bf16.msra.mxu0 %v14074_v27 }
 0x78c   : > { %9878 = vmatprep.subr.bf16.mxu0 %v14152_v15  ;;  %v14158_v15 = vmov 0.0  }
 0x78d   : > { %12333 = vmatprep.subr.bf16.mxu1 %v14158_v15  ;;  %12349 = vmatprep.mubr.msk.bf16.mxu1 %vm14159_vm4, %v14158_v15 }
 0x78e   : > { %12334 = vmatpush3.bf16.msra.mxu1 %v14076_v43 }
 0x78f   : > { %9879 = vmatpush1.bf16.msra.mxu0 %v14075_v54  ;;  %12335 = vmatprep.subr.bf16.mxu1 %v14158_v15 }
 0x792   : > { %9889 = vmatmul.mubr.bf16.vlgmr.msra.gmra.mrb[52].mxu0 %v7734_v56  ;;  %12336 = vmatpush3.bf16.msra.mxu1 %v14077_v20 }
 0x793   : > { %12337 = vmatprep.subr.bf16.mxu1 %v14158_v15 }
 0x795   : > { %v12230_v23 = vpop.f32.mrb[32].mxu0 }
 0x796   : > { %v12231_v7 = vpop.f32.mrb[33].mxu0  ;;  %12338 = vmatpush3.bf16.msra.mxu1 %v14078_v21 }
 0x797   : > { %v12232_v11 = vadd.f32 %v12231_v7, %v12230_v23  ;;  %v12233_v3 = vpop.f32.mrb[34].mxu0  ;;  %12339 = vmatprep.subr.bf16.mxu1 %v14158_v15 }
 0x798   : > { %v12234_v14 = vpop.f32.mrb[35].mxu0 }
 0x799   : > { %v9917_v14 = vld [vmem:[%s18196_s8] sm:$0x1] }
 0x79a   : > { %12340 = vmatpush3.bf16.msra.mxu1 %v14079_v13 }
 0x79b   : > { %12341 = vmatprep.subr.bf16.mxu1 %v14158_v15 }
 0x79e   : > { %12342 = vmatpush3.bf16.msra.mxu1 %v14080_v6 }
 0x79f   : > { %12343 = vmatprep.subr.bf16.mxu1 %v14158_v15 }
 0x7a2   : > { %12344 = vmatpush3.bf16.msra.mxu1 %v14081_v5 }
 0x7a3   : > { %12345 = vmatprep.subr.bf16.mxu1 %v14158_v15 }
 0x7a6   : > { %v12252_v31 = vpop.f32.mrb[32].mxu1  ;;  %12346 = vmatpush3.bf16.msra.mxu1 %v14082_v25 }
 0x7a7   : > { %v12253_v35 = vpop.f32.mrb[33].mxu1  ;;  %12347 = vmatprep.subr.bf16.mxu1 %v14158_v15 }
 0x7a8   : > { %v12254_v28 = vadd.f32 %v12253_v35, %v12252_v31  ;;  %v12255_v33 = vpop.f32.mrb[34].mxu1 }
 0x7a9   : > { %v12256_v9 = vpop.f32.mrb[35].mxu1 }
 0x7aa   : > { %12348 = vmatpush3.bf16.msra.mxu1 %v14083_v59 }
 0x7c5   : > { %v8654_v42 = vpop.f32.mrb[36].mxu0 }
 0x7c6   : > { %v8655_v30 = vadd.f32 %v12232_v11, %v8654_v42  ;;  %v8656_v47 = vpop.f32.mrb[37].mxu0 }
 0x7c7   : > { %v8657_v17 = vpop.f32.mrb[38].mxu0 }
 0x7c8   : > { %v8660_v12 = vadd.f32 %v8655_v30, %v8347_v8  ;;  %v8658_v37 = vpop.f32.mrb[39].mxu0 }
 0x7d6   : > { %v8963_v36 = vpop.f32.mrb[36].mxu1 }
 0x7d7   : > { %v8964_v38 = vadd.f32 %v12254_v28, %v8963_v36  ;;  %v8965_v29 = vpop.f32.mrb[37].mxu1 }
 0x7d8   : > { %v8966_v39 = vpop.f32.mrb[38].mxu1 }
 0x7d9   : > { %v8969_v40 = vadd.f32 %v8964_v38, %v8660_v12  ;;  %v8967_v41 = vpop.f32.mrb[39].mxu1 }
 0x7e5   : > { %v12274_v46 = vpop.f32.mrb[40].mxu0 }
 0x7e6   : > { %v12275_v48 = vpop.f32.mrb[41].mxu0 }
 0x7e7   : > { %v12276_v49 = vadd.f32 %v12275_v48, %v12274_v46  ;;  %v12277_v10 = vpop.f32.mrb[42].mxu0 }
 0x7e8   : > { %v12278_v24 = vpop.f32.mrb[43].mxu0 }
 0x7f6   : > { %v12296_v51 = vpop.f32.mrb[40].mxu1 }
 0x7f7   : > { %v12297_v60 = vpop.f32.mrb[41].mxu1 }
 0x7f8   : > { %v12298_v44 = vadd.f32 %v12297_v60, %v12296_v51  ;;  %v12299_v34 = vpop.f32.mrb[42].mxu1 }
 0x7f9   : > { %v12300_v58 = vpop.f32.mrb[43].mxu1 }
 0x815   : > { %v9272_v62 = vpop.f32.mrb[44].mxu0 }
 0x816   : > { %v9273_v26 = vadd.f32 %v12276_v49, %v9272_v62  ;;  %v9274_v61 = vpop.f32.mrb[45].mxu0 }
 0x817   : > { %v9275_v19 = vpop.f32.mrb[46].mxu0 }
 0x818   : > { %v9278_v50 = vadd.f32 %v9273_v26, %v8969_v40  ;;  %v9276_v2 = vpop.f32.mrb[47].mxu0 }
 0x826   : > { %v9581_v32 = vpop.f32.mrb[44].mxu1 }
 0x827   : > { %v9582_v0 = vadd.f32 %v12298_v44, %v9581_v32  ;;  %v9583_v16 = vpop.f32.mrb[45].mxu1 }
 0x828   : > { %v9584_v18 = vpop.f32.mrb[46].mxu1 }
 0x829   : > { %v9587_v4 = vadd.f32 %v9582_v0, %v9278_v50  ;;  %v9585_v52 = vpop.f32.mrb[47].mxu1 }
 0x835   : > { %v12318_v63 = vpop.f32.mrb[48].mxu0 }
 0x836   : > { %v12319_v1 = vpop.f32.mrb[49].mxu0 }
 0x837   : > { %v12320_v45 = vadd.f32 %v12319_v1, %v12318_v63  ;;  %v12321_v53 = vpop.f32.mrb[50].mxu0 }
 0x838   : > { %v12322_v8 = vpop.f32.mrb[51].mxu0 }
 0x865   : > { %v9890_v55 = vpop.f32.mrb[52].mxu0 }
 0x866   : > { %v9891_v22 = vadd.f32 %v12320_v45, %v9890_v55  ;;  %v9892_v27 = vpop.f32.mrb[53].mxu0 }
 0x867   : > { %v9893_v54 = vpop.f32.mrb[54].mxu0 }
 0x868   : > { %v9896_v56 = vadd.f32 %v9891_v22, %v9587_v4  ;;  %v9894_v23 = vpop.f32.mrb[55].mxu0 }
 0x86a   : > { %v9898_v7 = vadd.f32 %v9897_v57, %v9896_v56 }
 0x86c   : > { %v9899_v11 = vmax.f32 %v9898_v7, 0.0 }
 0x86e   : > { %v9900_v3 = vpack.c.bf16 %v9899_v11, %v9899_v11 }
 0x870   : > { %12350 = vmatmul.mubr.bf16.vlgmr.msra.gmra.mrb[48].mxu1 %v9900_v3 }
 0x943   : > { %v10000_v31 = vpop.f32.mrb[48].mxu1 }
 0x944   : > { %v10001_v35 = vadd.f32 %v10000_v31, %v9917_v14  ;;  %v12351_v28 = vpop.f32.mrb[49].mxu1 }
 0x945   : > { %v10003_v33 = vpop.f32.mrb[50].mxu1 }
 0x946   : > { %v12352_v9 = vpop.f32.mrb[51].mxu1  ;;  %10007 = vst.msk [vmem:[%s324_s28] sm:$0x1] %vm10006_vm5, %v10001_v35 }
 0x947   : > { %14097 = shalt.err (!%p14094_p3)
}
 0x948   : > { %s14098_s17 = scalar_lea.hbm %s18146_s26, 16  ;;  %s14102_s28 = scalar_lea.hbm %s18197_s9, 32 }
 0x949   : > { %p14099_p4 = scmp.ne.s32.totalorder %s18146_s26, %s14098_s17  ;;  %p14103_p9 = scmp.lt.u32.totalorder %s18146_s26, %s18197_s9 }
 0x94a   : > { %p14104_p10 = scmp.lt.u32.totalorder %s14102_s28, %s14098_s17  ;;  %p14106_p12 = scmp.lt.u32.totalorder %s14098_s17, %s18146_s26 }
 0x94b   : > { %p14100_p7 = pnand %p14099_p4, %p14249_p5 }
 0x94c   : > { %p14105_p11 = por %p14104_p10, %p14103_p9 }
 0x94d   : > { %p14101_p8 = pneg %p14100_p7 }
 0x94e   : > { %p14107_p13 = por %p14106_p12, %p14105_p11 }
 0x950   : > { %p14108_p0 = pnand %p14107_p13, %p14101_p8 }
 0x952   : > { %14111 = shalt.err (!%p14108_p0)
}
 0x953   : > { %12433 = dma.vmem_to_hbm [thread:$0]  (%p14249_p5), %s18148_s24, 16, %s18146_s26, %s10009_s13  }
 0x954 PF: > { %p12439_p1 = scmp.ge.s32.totalorder %s14146_s12, 2  ;;  %s10033_s27 = sand.u32 1, %s14134_s30  }
 0x955   : > { %s10034_s14 = scalar_lea.sflag [#allocation3], %s10033_s27 }
 0x956   : > { %p12436_p2 = pnand %p12439_p1, %p14253_p6 }
 0x958   : > { %14129 = dma.done.wait (!%p12436_p2), %s10034_s14, 16  }
 0x959   : > { %14131 = vsyncadd (!%p12436_p2), %s10034_s14, 4294967280  ;;  %p19_p3 = scmp.ge.s32.totalorder %s14236_s15, 4   ;;  %s18211_s30 = smov %s14138_s10 }
 0x95a   : > { %s18212_s10 = smov %s14142_s11  ;;  %s18213_s11 = smov %s14247_s18 }
 0x95b   : > { %s18214_s12 = smov %s14236_s15  ;;  %21 = sbr.rel (!%p19_p3) target bundleno = 3 (0x3), region = 101 }
 0x962   :  { %10038 = vsyncpa [#allocation3], 1 }
 0x963   :  { %10040 = vsyncpa [#allocation3 + $0x1], 1 }

</bundles_post_ra>
